<compile_context>
chip_gen: v7x
topology: tpu7x:2x2x1
jax: 0.10.0
libtpu: 0.0.40
codegen_flags: <defaults>
</compile_context>

<pallas_src>
import functools
import math

import jax
import jax.numpy as jnp
from jax import lax
from jax.experimental import pallas as pl
from jax.experimental.pallas import tpu as pltpu


def _pick_row_tile(H):
    # Input rows processed per grid step. 2*th (output rows per block) must be
    # a multiple of 8 unless it equals the full output height.
    for cand in (8, 16, 4):
        if H % cand == 0:
            return cand
    return H


# -----------------------------------------------------------------------------
# with_conv=True : fused nearest-upsample(2x) + Conv2d(C, C, 3, stride=1, pad=1)
# -----------------------------------------------------------------------------
def _upsample_conv_kernel(x_ref, wr_ref, b_ref, d_ref, o_ref, *, th, H, W):
    # x_ref : (1, Ci, H, W)      full input image (resident across row blocks)
    # wr_ref: (12, Co, Ci)       combined weights, index (r*2 + dh)*3 + kw
    # b_ref : (Co, 1)
    # d_ref : (W, 2W+2)          width nearest-duplication (+ conv zero pad)
    # o_ref : (1, Co, 2*th, 2W)  output row tile
    hb = pl.program_id(1)
    row0 = hb * th
    Wd = 2 * W

    dmat = d_ref[...].astype(jnp.float32)
    bias = b_ref[...].astype(jnp.float32)                    # (Co, 1)

    def make_row(m):
        # Width-duplicated + zero-padded row of x at raw row index row0 + m,
        # returned as the 3 column-tap slices (each (Ci, 2W)).
        ridx = row0 + m
        if 0 <= m <= th - 1:
            row = x_ref[0, :, pl.ds(ridx, 1), :][:, 0, :].astype(jnp.float32)
        else:
            rclip = jnp.clip(ridx, 0, H - 1)
            row = x_ref[0, :, pl.ds(rclip, 1), :][:, 0, :].astype(jnp.float32)
            valid = jnp.logical_and(ridx >= 0, ridx <= H - 1)
            row = row * valid.astype(jnp.float32)
        full = jnp.dot(row, dmat, preferred_element_type=jnp.float32)  # (Ci, 2W+2)
        return [full[:, kw:kw + Wd] for kw in range(3)]

    # Rows needed by this tile: raw x rows row0-1 .. row0+th (list idx = m + 1).
    xw = [make_row(m) for m in range(-1, th + 1)]

    for t in range(th):
        for r in range(2):                                   # output row parity
            acc = None
            for dh in range(2):                              # row tap
                taps = xw[t + r + dh]
                for kw in range(3):                          # column tap
                    wmat = wr_ref[(r * 2 + dh) * 3 + kw]     # (Co, Ci)
                    contrib = jnp.dot(wmat, taps[kw],
                                      preferred_element_type=jnp.float32)
                    acc = contrib if acc is None else acc + contrib
            o_ref[0, :, 2 * t + r, :] = (acc + bias).astype(o_ref.dtype)


def _combined_weights(weight):
    # weight: (Co, Ci, 3, 3) -> (12, Co, Ci), index (r*2 + dh)*3 + kw
    w = weight
    wr = jnp.stack(
        [
            w[:, :, 0, :],                       # r=0, dh=0
            w[:, :, 1, :] + w[:, :, 2, :],       # r=0, dh=1
            w[:, :, 0, :] + w[:, :, 1, :],       # r=1, dh=0
            w[:, :, 2, :],                       # r=1, dh=1
        ],
        axis=0,
    )                                            # (4, Co, Ci, 3)
    Co, Ci = w.shape[0], w.shape[1]
    return jnp.transpose(wr, (0, 3, 1, 2)).reshape(12, Co, Ci)


def _upsample_conv(x, weight, bias, *, row_tile=None):
    N, C, H, W = x.shape
    Co, Ci = weight.shape[0], weight.shape[1]
    th = _pick_row_tile(H) if row_tile is None else row_tile
    assert H % th == 0
    nb = H // th
    Wd = 2 * W

    wr = _combined_weights(weight)
    bmat = bias.reshape(Co, 1)

    # Width nearest-duplication matrix with the conv zero-pad column on each
    # side: dmat[w, 1 + 2w] = dmat[w, 2 + 2w] = 1.
    cols = jnp.arange(Wd + 2)
    rows = jnp.arange(W)
    dmat = ((cols[None, :] == 2 * rows[:, None] + 1)
            | (cols[None, :] == 2 * rows[:, None] + 2)).astype(jnp.float32)

    itemsize = jnp.dtype(x.dtype).itemsize
    cost = pl.CostEstimate(
        flops=2 * N * (2 * H) * (2 * W) * 9 * Ci * Co,
        transcendentals=0,
        bytes_accessed=(N * Ci * H * W + N * Co * 2 * H * 2 * W) * itemsize
        + wr.size * jnp.dtype(wr.dtype).itemsize,
    )

    kernel = functools.partial(_upsample_conv_kernel, th=th, H=H, W=W)
    return pl.pallas_call(
        kernel,
        out_shape=jax.ShapeDtypeStruct((N, Co, 2 * H, 2 * W), x.dtype),
        grid=(N, nb),
        in_specs=[
            pl.BlockSpec((1, Ci, H, W), lambda n, hb: (n, 0, 0, 0)),
            pl.BlockSpec((12, Co, Ci), lambda n, hb: (0, 0, 0)),
            pl.BlockSpec((Co, 1), lambda n, hb: (0, 0)),
            pl.BlockSpec((W, Wd + 2), lambda n, hb: (0, 0)),
        ],
        out_specs=pl.BlockSpec((1, Co, 2 * th, Wd), lambda n, hb: (n, 0, hb, 0)),
        compiler_params=pltpu.CompilerParams(
            dimension_semantics=("parallel", "arbitrary")),
        cost_estimate=cost,
    )(x, wr, bmat, dmat)


# -----------------------------------------------------------------------------
# with_conv=False : nearest-upsample(2x) only
# -----------------------------------------------------------------------------
def _upsample_kernel(x_ref, d_ref, o_ref, *, th):
    # x_ref: (1, C, H, W); d_ref: (W, 2W); o_ref: (1, C, 2*th, 2W)
    hb = pl.program_id(1)
    row0 = hb * th
    dmat = d_ref[...].astype(jnp.float32)
    for t in range(th):
        row = x_ref[0, :, pl.ds(row0 + t, 1), :][:, 0, :].astype(jnp.float32)
        rowd = jnp.dot(row, dmat,
                       preferred_element_type=jnp.float32).astype(o_ref.dtype)
        o_ref[0, :, 2 * t, :] = rowd
        o_ref[0, :, 2 * t + 1, :] = rowd


def _upsample_nearest(x, *, row_tile=None):
    N, C, H, W = x.shape
    th = _pick_row_tile(H) if row_tile is None else row_tile
    assert H % th == 0
    nb = H // th
    Wd = 2 * W

    cols = jnp.arange(Wd)
    rows = jnp.arange(W)
    dmat = ((cols[None, :] == 2 * rows[:, None])
            | (cols[None, :] == 2 * rows[:, None] + 1)).astype(jnp.float32)

    itemsize = jnp.dtype(x.dtype).itemsize
    cost = pl.CostEstimate(
        flops=2 * N * C * H * W * Wd,
        transcendentals=0,
        bytes_accessed=(N * C * H * W + N * C * 2 * H * 2 * W) * itemsize,
    )

    return pl.pallas_call(
        functools.partial(_upsample_kernel, th=th),
        out_shape=jax.ShapeDtypeStruct((N, C, 2 * H, 2 * W), x.dtype),
        grid=(N, nb),
        in_specs=[
            pl.BlockSpec((1, C, H, W), lambda n, hb: (n, 0, 0, 0)),
            pl.BlockSpec((W, Wd), lambda n, hb: (0, 0)),
        ],
        out_specs=pl.BlockSpec((1, C, 2 * th, Wd), lambda n, hb: (n, 0, hb, 0)),
        compiler_params=pltpu.CompilerParams(
            dimension_semantics=("parallel", "arbitrary")),
        cost_estimate=cost,
    )(x, dmat)


def upsample_forward(x, weight=None, bias=None, *, with_conv=True):
    """Forward pass of the PyTorch `Upsample` module (NCHW in, NCHW out)."""
    if with_conv:
        return _upsample_conv(x, weight, bias)
    return _upsample_nearest(x)


# -----------------------------------------------------------------------------
# Plain-JAX references for correctness checking.
# -----------------------------------------------------------------------------
def _ref_upsample(x):
    return jnp.repeat(jnp.repeat(x, 2, axis=2), 2, axis=3)


def _ref_upsample_conv(x, weight, bias):
    u = _ref_upsample(x)
    out = lax.conv_general_dilated(
        u, weight, window_strides=(1, 1), padding=((1, 1), (1, 1)),
        dimension_numbers=("NCHW", "OIHW", "NCHW"))
    return out + bias[None, :, None, None]


if __name__ == "__main__":
    key = jax.random.PRNGKey(0)
    k_x, k_w, k_b = jax.random.split(key, 3)

    N, C, H, W = 2, 4, 16, 16
    x = jax.random.normal(k_x, (N, C, H, W), dtype=jnp.float32)

    # Deterministic Conv2d(C, C, 3) init (PyTorch-style uniform bound).
    bound = 1.0 / math.sqrt(C * 3 * 3)
    weight = jax.random.uniform(k_w, (C, C, 3, 3), jnp.float32, -bound, bound)
    bias = jax.random.uniform(k_b, (C,), jnp.float32, -bound, bound)

    # with_conv=True path
    y = jax.block_until_ready(upsample_forward(x, weight, bias, with_conv=True))
    y_ref = _ref_upsample_conv(x, weight, bias)
    assert y.shape == (N, C, 2 * H, 2 * W)
    assert jnp.allclose(y, y_ref, rtol=1e-4, atol=1e-4), float(
        jnp.max(jnp.abs(y - y_ref)))

    # with_conv=False path
    y2 = jax.block_until_ready(upsample_forward(x, with_conv=False))
    y2_ref = _ref_upsample(x)
    assert y2.shape == (N, C, 2 * H, 2 * W)
    assert jnp.allclose(y2, y2_ref, rtol=1e-4, atol=1e-4)

    print("KERNEL_OK")
</pallas_src>

<mosaic_0001>
module attributes {stable_mosaic.version = 11 : i64} {
  func.func @_upsample_conv_kernel(%arg0: i32, %arg1: i32, %arg2: memref<1x4x16x16xf32, #tpu.memory_space<vmem>>, %arg3: memref<12x4x4xf32, #tpu.memory_space<vmem>>, %arg4: memref<4x1xf32, #tpu.memory_space<vmem>>, %arg5: memref<16x34xf32, #tpu.memory_space<vmem>>, %arg6: memref<1x4x16x32xf32, #tpu.memory_space<vmem>>) attributes {dimension_semantics = [#tpu.dimension_semantics<parallel>, #tpu.dimension_semantics<arbitrary>], iteration_bounds = array<i64: 2, 2>, scalar_prefetch = 0 : i64, scratch_operands = 0 : i64, tpu.core_type = #tpu.core_type<tc>, window_params = [{transform_indices = @transform_0, window_bounds = array<i64: 1, 4, 16, 16>}, {pipeline_mode = #tpu.pipeline_mode<synchronous>, transform_indices = @transform_1, window_bounds = array<i64: 12, 4, 4>}, {pipeline_mode = #tpu.pipeline_mode<synchronous>, transform_indices = @transform_2, window_bounds = array<i64: 4, 1>}, {pipeline_mode = #tpu.pipeline_mode<synchronous>, transform_indices = @transform_3, window_bounds = array<i64: 16, 34>}, {transform_indices = @transform_4, window_bounds = array<i64: 1, 4, 16, 32>}]} {
    %c8_i32 = arith.constant 8 : i32
    %0 = arith.muli %arg1, %c8_i32 : i32
    %c0 = arith.constant 0 : index
    %c0_0 = arith.constant 0 : index
    %1 = vector.load %arg5[%c0, %c0_0] : memref<16x34xf32, #tpu.memory_space<vmem>>, vector<16x34xf32>
    %c0_1 = arith.constant 0 : index
    %c0_2 = arith.constant 0 : index
    %2 = vector.load %arg4[%c0_1, %c0_2] : memref<4x1xf32, #tpu.memory_space<vmem>>, vector<4x1xf32>
    %c-1_i32 = arith.constant -1 : i32
    %3 = arith.addi %0, %c-1_i32 : i32
    %c0_i32 = arith.constant 0 : i32
    %c15_i32 = arith.constant 15 : i32
    %4 = arith.maxsi %c0_i32, %3 : i32
    %5 = arith.minsi %c15_i32, %4 : i32
    %c0_3 = arith.constant 0 : index
    %c0_4 = arith.constant 0 : index
    %6 = arith.index_cast %5 : i32 to index
    %c0_5 = arith.constant 0 : index
    %7 = vector.load %arg2[%c0_3, %c0_4, %6, %c0_5] : memref<1x4x16x16xf32, #tpu.memory_space<vmem>>, vector<1x4x1x16xf32>
    %8 = vector.shape_cast %7 : vector<1x4x1x16xf32> to vector<4x1x16xf32>
    %9 = vector.shape_cast %8 : vector<4x1x16xf32> to vector<4x16xf32>
    %c0_i32_6 = arith.constant 0 : i32
    %10 = arith.cmpi sge, %3, %c0_i32_6 : i32
    %c15_i32_7 = arith.constant 15 : i32
    %11 = arith.cmpi sle, %3, %c15_i32_7 : i32
    %12 = arith.andi %10, %11 : i1
    %13 = arith.extui %12 : i1 to i32
    %14 = arith.sitofp %13 : i32 to f32
    %15 = vector.broadcast %14 : f32 to vector<4x16xf32>
    %16 = arith.mulf %9, %15 : vector<4x16xf32>
    %cst = arith.constant dense<0.000000e+00> : vector<4x34xf32>
    %17 = tpu.matmul %16, %1, %cst {dimension_numbers = #tpu.dot_dimension_numbers<[1], [0], [0], [1], [0, 0, 1, 1], [], []>} : vector<4x16xf32>, vector<16x34xf32>, vector<4x34xf32> -> vector<4x34xf32>
    %18 = vector.extract_strided_slice %17 {offsets = [0, 0], sizes = [4, 32], strides = [1, 1]} : vector<4x34xf32> to vector<4x32xf32>
    %19 = vector.extract_strided_slice %17 {offsets = [0, 1], sizes = [4, 32], strides = [1, 1]} : vector<4x34xf32> to vector<4x32xf32>
    %20 = vector.extract_strided_slice %17 {offsets = [0, 2], sizes = [4, 32], strides = [1, 1]} : vector<4x34xf32> to vector<4x32xf32>
    %c0_i32_8 = arith.constant 0 : i32
    %21 = arith.addi %0, %c0_i32_8 : i32
    %c0_9 = arith.constant 0 : index
    %c0_10 = arith.constant 0 : index
    %22 = arith.index_cast %21 : i32 to index
    %c0_11 = arith.constant 0 : index
    %23 = vector.load %arg2[%c0_9, %c0_10, %22, %c0_11] : memref<1x4x16x16xf32, #tpu.memory_space<vmem>>, vector<1x4x1x16xf32>
    %24 = vector.shape_cast %23 : vector<1x4x1x16xf32> to vector<4x1x16xf32>
    %25 = vector.shape_cast %24 : vector<4x1x16xf32> to vector<4x16xf32>
    %cst_12 = arith.constant dense<0.000000e+00> : vector<4x34xf32>
    %26 = tpu.matmul %25, %1, %cst_12 {dimension_numbers = #tpu.dot_dimension_numbers<[1], [0], [0], [1], [0, 0, 1, 1], [], []>} : vector<4x16xf32>, vector<16x34xf32>, vector<4x34xf32> -> vector<4x34xf32>
    %27 = vector.extract_strided_slice %26 {offsets = [0, 0], sizes = [4, 32], strides = [1, 1]} : vector<4x34xf32> to vector<4x32xf32>
    %28 = vector.extract_strided_slice %26 {offsets = [0, 1], sizes = [4, 32], strides = [1, 1]} : vector<4x34xf32> to vector<4x32xf32>
    %29 = vector.extract_strided_slice %26 {offsets = [0, 2], sizes = [4, 32], strides = [1, 1]} : vector<4x34xf32> to vector<4x32xf32>
    %c1_i32 = arith.constant 1 : i32
    %30 = arith.addi %0, %c1_i32 : i32
    %c0_13 = arith.constant 0 : index
    %c0_14 = arith.constant 0 : index
    %31 = arith.index_cast %30 : i32 to index
    %c0_15 = arith.constant 0 : index
    %32 = vector.load %arg2[%c0_13, %c0_14, %31, %c0_15] : memref<1x4x16x16xf32, #tpu.memory_space<vmem>>, vector<1x4x1x16xf32>
    %33 = vector.shape_cast %32 : vector<1x4x1x16xf32> to vector<4x1x16xf32>
    %34 = vector.shape_cast %33 : vector<4x1x16xf32> to vector<4x16xf32>
    %cst_16 = arith.constant dense<0.000000e+00> : vector<4x34xf32>
    %35 = tpu.matmul %34, %1, %cst_16 {dimension_numbers = #tpu.dot_dimension_numbers<[1], [0], [0], [1], [0, 0, 1, 1], [], []>} : vector<4x16xf32>, vector<16x34xf32>, vector<4x34xf32> -> vector<4x34xf32>
    %36 = vector.extract_strided_slice %35 {offsets = [0, 0], sizes = [4, 32], strides = [1, 1]} : vector<4x34xf32> to vector<4x32xf32>
    %37 = vector.extract_strided_slice %35 {offsets = [0, 1], sizes = [4, 32], strides = [1, 1]} : vector<4x34xf32> to vector<4x32xf32>
    %38 = vector.extract_strided_slice %35 {offsets = [0, 2], sizes = [4, 32], strides = [1, 1]} : vector<4x34xf32> to vector<4x32xf32>
    %c2_i32 = arith.constant 2 : i32
    %39 = arith.addi %0, %c2_i32 : i32
    %c0_17 = arith.constant 0 : index
    %c0_18 = arith.constant 0 : index
    %40 = arith.index_cast %39 : i32 to index
    %c0_19 = arith.constant 0 : index
    %41 = vector.load %arg2[%c0_17, %c0_18, %40, %c0_19] : memref<1x4x16x16xf32, #tpu.memory_space<vmem>>, vector<1x4x1x16xf32>
    %42 = vector.shape_cast %41 : vector<1x4x1x16xf32> to vector<4x1x16xf32>
    %43 = vector.shape_cast %42 : vector<4x1x16xf32> to vector<4x16xf32>
    %cst_20 = arith.constant dense<0.000000e+00> : vector<4x34xf32>
    %44 = tpu.matmul %43, %1, %cst_20 {dimension_numbers = #tpu.dot_dimension_numbers<[1], [0], [0], [1], [0, 0, 1, 1], [], []>} : vector<4x16xf32>, vector<16x34xf32>, vector<4x34xf32> -> vector<4x34xf32>
    %45 = vector.extract_strided_slice %44 {offsets = [0, 0], sizes = [4, 32], strides = [1, 1]} : vector<4x34xf32> to vector<4x32xf32>
    %46 = vector.extract_strided_slice %44 {offsets = [0, 1], sizes = [4, 32], strides = [1, 1]} : vector<4x34xf32> to vector<4x32xf32>
    %47 = vector.extract_strided_slice %44 {offsets = [0, 2], sizes = [4, 32], strides = [1, 1]} : vector<4x34xf32> to vector<4x32xf32>
    %c3_i32 = arith.constant 3 : i32
    %48 = arith.addi %0, %c3_i32 : i32
    %c0_21 = arith.constant 0 : index
    %c0_22 = arith.constant 0 : index
    %49 = arith.index_cast %48 : i32 to index
    %c0_23 = arith.constant 0 : index
    %50 = vector.load %arg2[%c0_21, %c0_22, %49, %c0_23] : memref<1x4x16x16xf32, #tpu.memory_space<vmem>>, vector<1x4x1x16xf32>
    %51 = vector.shape_cast %50 : vector<1x4x1x16xf32> to vector<4x1x16xf32>
    %52 = vector.shape_cast %51 : vector<4x1x16xf32> to vector<4x16xf32>
    %cst_24 = arith.constant dense<0.000000e+00> : vector<4x34xf32>
    %53 = tpu.matmul %52, %1, %cst_24 {dimension_numbers = #tpu.dot_dimension_numbers<[1], [0], [0], [1], [0, 0, 1, 1], [], []>} : vector<4x16xf32>, vector<16x34xf32>, vector<4x34xf32> -> vector<4x34xf32>
    %54 = vector.extract_strided_slice %53 {offsets = [0, 0], sizes = [4, 32], strides = [1, 1]} : vector<4x34xf32> to vector<4x32xf32>
    %55 = vector.extract_strided_slice %53 {offsets = [0, 1], sizes = [4, 32], strides = [1, 1]} : vector<4x34xf32> to vector<4x32xf32>
    %56 = vector.extract_strided_slice %53 {offsets = [0, 2], sizes = [4, 32], strides = [1, 1]} : vector<4x34xf32> to vector<4x32xf32>
    %c4_i32 = arith.constant 4 : i32
    %57 = arith.addi %0, %c4_i32 : i32
    %c0_25 = arith.constant 0 : index
    %c0_26 = arith.constant 0 : index
    %58 = arith.index_cast %57 : i32 to index
    %c0_27 = arith.constant 0 : index
    %59 = vector.load %arg2[%c0_25, %c0_26, %58, %c0_27] : memref<1x4x16x16xf32, #tpu.memory_space<vmem>>, vector<1x4x1x16xf32>
    %60 = vector.shape_cast %59 : vector<1x4x1x16xf32> to vector<4x1x16xf32>
    %61 = vector.shape_cast %60 : vector<4x1x16xf32> to vector<4x16xf32>
    %cst_28 = arith.constant dense<0.000000e+00> : vector<4x34xf32>
    %62 = tpu.matmul %61, %1, %cst_28 {dimension_numbers = #tpu.dot_dimension_numbers<[1], [0], [0], [1], [0, 0, 1, 1], [], []>} : vector<4x16xf32>, vector<16x34xf32>, vector<4x34xf32> -> vector<4x34xf32>
    %63 = vector.extract_strided_slice %62 {offsets = [0, 0], sizes = [4, 32], strides = [1, 1]} : vector<4x34xf32> to vector<4x32xf32>
    %64 = vector.extract_strided_slice %62 {offsets = [0, 1], sizes = [4, 32], strides = [1, 1]} : vector<4x34xf32> to vector<4x32xf32>
    %65 = vector.extract_strided_slice %62 {offsets = [0, 2], sizes = [4, 32], strides = [1, 1]} : vector<4x34xf32> to vector<4x32xf32>
    %c5_i32 = arith.constant 5 : i32
    %66 = arith.addi %0, %c5_i32 : i32
    %c0_29 = arith.constant 0 : index
    %c0_30 = arith.constant 0 : index
    %67 = arith.index_cast %66 : i32 to index
    %c0_31 = arith.constant 0 : index
    %68 = vector.load %arg2[%c0_29, %c0_30, %67, %c0_31] : memref<1x4x16x16xf32, #tpu.memory_space<vmem>>, vector<1x4x1x16xf32>
    %69 = vector.shape_cast %68 : vector<1x4x1x16xf32> to vector<4x1x16xf32>
    %70 = vector.shape_cast %69 : vector<4x1x16xf32> to vector<4x16xf32>
    %cst_32 = arith.constant dense<0.000000e+00> : vector<4x34xf32>
    %71 = tpu.matmul %70, %1, %cst_32 {dimension_numbers = #tpu.dot_dimension_numbers<[1], [0], [0], [1], [0, 0, 1, 1], [], []>} : vector<4x16xf32>, vector<16x34xf32>, vector<4x34xf32> -> vector<4x34xf32>
    %72 = vector.extract_strided_slice %71 {offsets = [0, 0], sizes = [4, 32], strides = [1, 1]} : vector<4x34xf32> to vector<4x32xf32>
    %73 = vector.extract_strided_slice %71 {offsets = [0, 1], sizes = [4, 32], strides = [1, 1]} : vector<4x34xf32> to vector<4x32xf32>
    %74 = vector.extract_strided_slice %71 {offsets = [0, 2], sizes = [4, 32], strides = [1, 1]} : vector<4x34xf32> to vector<4x32xf32>
    %c6_i32 = arith.constant 6 : i32
    %75 = arith.addi %0, %c6_i32 : i32
    %c0_33 = arith.constant 0 : index
    %c0_34 = arith.constant 0 : index
    %76 = arith.index_cast %75 : i32 to index
    %c0_35 = arith.constant 0 : index
    %77 = vector.load %arg2[%c0_33, %c0_34, %76, %c0_35] : memref<1x4x16x16xf32, #tpu.memory_space<vmem>>, vector<1x4x1x16xf32>
    %78 = vector.shape_cast %77 : vector<1x4x1x16xf32> to vector<4x1x16xf32>
    %79 = vector.shape_cast %78 : vector<4x1x16xf32> to vector<4x16xf32>
    %cst_36 = arith.constant dense<0.000000e+00> : vector<4x34xf32>
    %80 = tpu.matmul %79, %1, %cst_36 {dimension_numbers = #tpu.dot_dimension_numbers<[1], [0], [0], [1], [0, 0, 1, 1], [], []>} : vector<4x16xf32>, vector<16x34xf32>, vector<4x34xf32> -> vector<4x34xf32>
    %81 = vector.extract_strided_slice %80 {offsets = [0, 0], sizes = [4, 32], strides = [1, 1]} : vector<4x34xf32> to vector<4x32xf32>
    %82 = vector.extract_strided_slice %80 {offsets = [0, 1], sizes = [4, 32], strides = [1, 1]} : vector<4x34xf32> to vector<4x32xf32>
    %83 = vector.extract_strided_slice %80 {offsets = [0, 2], sizes = [4, 32], strides = [1, 1]} : vector<4x34xf32> to vector<4x32xf32>
    %c7_i32 = arith.constant 7 : i32
    %84 = arith.addi %0, %c7_i32 : i32
    %c0_37 = arith.constant 0 : index
    %c0_38 = arith.constant 0 : index
    %85 = arith.index_cast %84 : i32 to index
    %c0_39 = arith.constant 0 : index
    %86 = vector.load %arg2[%c0_37, %c0_38, %85, %c0_39] : memref<1x4x16x16xf32, #tpu.memory_space<vmem>>, vector<1x4x1x16xf32>
    %87 = vector.shape_cast %86 : vector<1x4x1x16xf32> to vector<4x1x16xf32>
    %88 = vector.shape_cast %87 : vector<4x1x16xf32> to vector<4x16xf32>
    %cst_40 = arith.constant dense<0.000000e+00> : vector<4x34xf32>
    %89 = tpu.matmul %88, %1, %cst_40 {dimension_numbers = #tpu.dot_dimension_numbers<[1], [0], [0], [1], [0, 0, 1, 1], [], []>} : vector<4x16xf32>, vector<16x34xf32>, vector<4x34xf32> -> vector<4x34xf32>
    %90 = vector.extract_strided_slice %89 {offsets = [0, 0], sizes = [4, 32], strides = [1, 1]} : vector<4x34xf32> to vector<4x32xf32>
    %91 = vector.extract_strided_slice %89 {offsets = [0, 1], sizes = [4, 32], strides = [1, 1]} : vector<4x34xf32> to vector<4x32xf32>
    %92 = vector.extract_strided_slice %89 {offsets = [0, 2], sizes = [4, 32], strides = [1, 1]} : vector<4x34xf32> to vector<4x32xf32>
    %c8_i32_41 = arith.constant 8 : i32
    %93 = arith.addi %0, %c8_i32_41 : i32
    %c0_i32_42 = arith.constant 0 : i32
    %c15_i32_43 = arith.constant 15 : i32
    %94 = arith.maxsi %c0_i32_42, %93 : i32
    %95 = arith.minsi %c15_i32_43, %94 : i32
    %c0_44 = arith.constant 0 : index
    %c0_45 = arith.constant 0 : index
    %96 = arith.index_cast %95 : i32 to index
    %c0_46 = arith.constant 0 : index
    %97 = vector.load %arg2[%c0_44, %c0_45, %96, %c0_46] : memref<1x4x16x16xf32, #tpu.memory_space<vmem>>, vector<1x4x1x16xf32>
    %98 = vector.shape_cast %97 : vector<1x4x1x16xf32> to vector<4x1x16xf32>
    %99 = vector.shape_cast %98 : vector<4x1x16xf32> to vector<4x16xf32>
    %c0_i32_47 = arith.constant 0 : i32
    %100 = arith.cmpi sge, %93, %c0_i32_47 : i32
    %c15_i32_48 = arith.constant 15 : i32
    %101 = arith.cmpi sle, %93, %c15_i32_48 : i32
    %102 = arith.andi %100, %101 : i1
    %103 = arith.extui %102 : i1 to i32
    %104 = arith.sitofp %103 : i32 to f32
    %105 = vector.broadcast %104 : f32 to vector<4x16xf32>
    %106 = arith.mulf %99, %105 : vector<4x16xf32>
    %cst_49 = arith.constant dense<0.000000e+00> : vector<4x34xf32>
    %107 = tpu.matmul %106, %1, %cst_49 {dimension_numbers = #tpu.dot_dimension_numbers<[1], [0], [0], [1], [0, 0, 1, 1], [], []>} : vector<4x16xf32>, vector<16x34xf32>, vector<4x34xf32> -> vector<4x34xf32>
    %108 = vector.extract_strided_slice %107 {offsets = [0, 0], sizes = [4, 32], strides = [1, 1]} : vector<4x34xf32> to vector<4x32xf32>
    %109 = vector.extract_strided_slice %107 {offsets = [0, 1], sizes = [4, 32], strides = [1, 1]} : vector<4x34xf32> to vector<4x32xf32>
    %110 = vector.extract_strided_slice %107 {offsets = [0, 2], sizes = [4, 32], strides = [1, 1]} : vector<4x34xf32> to vector<4x32xf32>
    %c0_50 = arith.constant 0 : index
    %c0_51 = arith.constant 0 : index
    %c0_52 = arith.constant 0 : index
    %111 = vector.load %arg3[%c0_50, %c0_51, %c0_52] : memref<12x4x4xf32, #tpu.memory_space<vmem>>, vector<1x4x4xf32>
    %112 = vector.shape_cast %111 : vector<1x4x4xf32> to vector<4x4xf32>
    %cst_53 = arith.constant dense<0.000000e+00> : vector<4x32xf32>
    %113 = tpu.matmul %112, %18, %cst_53 {dimension_numbers = #tpu.dot_dimension_numbers<[1], [0], [0], [1], [0, 0, 1, 1], [], []>} : vector<4x4xf32>, vector<4x32xf32>, vector<4x32xf32> -> vector<4x32xf32>
    %c1 = arith.constant 1 : index
    %c0_54 = arith.constant 0 : index
    %c0_55 = arith.constant 0 : index
    %114 = vector.load %arg3[%c1, %c0_54, %c0_55] : memref<12x4x4xf32, #tpu.memory_space<vmem>>, vector<1x4x4xf32>
    %115 = vector.shape_cast %114 : vector<1x4x4xf32> to vector<4x4xf32>
    %cst_56 = arith.constant dense<0.000000e+00> : vector<4x32xf32>
    %116 = tpu.matmul %115, %19, %cst_56 {dimension_numbers = #tpu.dot_dimension_numbers<[1], [0], [0], [1], [0, 0, 1, 1], [], []>} : vector<4x4xf32>, vector<4x32xf32>, vector<4x32xf32> -> vector<4x32xf32>
    %117 = arith.addf %113, %116 : vector<4x32xf32>
    %c2 = arith.constant 2 : index
    %c0_57 = arith.constant 0 : index
    %c0_58 = arith.constant 0 : index
    %118 = vector.load %arg3[%c2, %c0_57, %c0_58] : memref<12x4x4xf32, #tpu.memory_space<vmem>>, vector<1x4x4xf32>
    %119 = vector.shape_cast %118 : vector<1x4x4xf32> to vector<4x4xf32>
    %cst_59 = arith.constant dense<0.000000e+00> : vector<4x32xf32>
    %120 = tpu.matmul %119, %20, %cst_59 {dimension_numbers = #tpu.dot_dimension_numbers<[1], [0], [0], [1], [0, 0, 1, 1], [], []>} : vector<4x4xf32>, vector<4x32xf32>, vector<4x32xf32> -> vector<4x32xf32>
    %121 = arith.addf %117, %120 : vector<4x32xf32>
    %c3 = arith.constant 3 : index
    %c0_60 = arith.constant 0 : index
    %c0_61 = arith.constant 0 : index
    %122 = vector.load %arg3[%c3, %c0_60, %c0_61] : memref<12x4x4xf32, #tpu.memory_space<vmem>>, vector<1x4x4xf32>
    %123 = vector.shape_cast %122 : vector<1x4x4xf32> to vector<4x4xf32>
    %cst_62 = arith.constant dense<0.000000e+00> : vector<4x32xf32>
    %124 = tpu.matmul %123, %27, %cst_62 {dimension_numbers = #tpu.dot_dimension_numbers<[1], [0], [0], [1], [0, 0, 1, 1], [], []>} : vector<4x4xf32>, vector<4x32xf32>, vector<4x32xf32> -> vector<4x32xf32>
    %125 = arith.addf %121, %124 : vector<4x32xf32>
    %c4 = arith.constant 4 : index
    %c0_63 = arith.constant 0 : index
    %c0_64 = arith.constant 0 : index
    %126 = vector.load %arg3[%c4, %c0_63, %c0_64] : memref<12x4x4xf32, #tpu.memory_space<vmem>>, vector<1x4x4xf32>
    %127 = vector.shape_cast %126 : vector<1x4x4xf32> to vector<4x4xf32>
    %cst_65 = arith.constant dense<0.000000e+00> : vector<4x32xf32>
    %128 = tpu.matmul %127, %28, %cst_65 {dimension_numbers = #tpu.dot_dimension_numbers<[1], [0], [0], [1], [0, 0, 1, 1], [], []>} : vector<4x4xf32>, vector<4x32xf32>, vector<4x32xf32> -> vector<4x32xf32>
    %129 = arith.addf %125, %128 : vector<4x32xf32>
    %c5 = arith.constant 5 : index
    %c0_66 = arith.constant 0 : index
    %c0_67 = arith.constant 0 : index
    %130 = vector.load %arg3[%c5, %c0_66, %c0_67] : memref<12x4x4xf32, #tpu.memory_space<vmem>>, vector<1x4x4xf32>
    %131 = vector.shape_cast %130 : vector<1x4x4xf32> to vector<4x4xf32>
    %cst_68 = arith.constant dense<0.000000e+00> : vector<4x32xf32>
    %132 = tpu.matmul %131, %29, %cst_68 {dimension_numbers = #tpu.dot_dimension_numbers<[1], [0], [0], [1], [0, 0, 1, 1], [], []>} : vector<4x4xf32>, vector<4x32xf32>, vector<4x32xf32> -> vector<4x32xf32>
    %133 = arith.addf %129, %132 : vector<4x32xf32>
    %134 = vector.broadcast %2 : vector<4x1xf32> to vector<4x32xf32>
    %135 = arith.addf %133, %134 : vector<4x32xf32>
    %c0_69 = arith.constant 0 : index
    %c0_70 = arith.constant 0 : index
    %c0_71 = arith.constant 0 : index
    %c0_72 = arith.constant 0 : index
    %136 = vector.load %arg6[%c0_69, %c0_70, %c0_71, %c0_72] : memref<1x4x16x32xf32, #tpu.memory_space<vmem>>, vector<1x4x1x32xf32>
    %137 = vector.shape_cast %136 : vector<1x4x1x32xf32> to vector<4x32xf32>
    %138 = vector.shape_cast %135 : vector<4x32xf32> to vector<1x4x1x32xf32>
    tpu.vector_store %arg6[%c0_69, %c0_70, %c0_71, %c0_72], %138 {strides = array<i32>} : memref<1x4x16x32xf32, #tpu.memory_space<vmem>>, vector<1x4x1x32xf32>,
    %c6 = arith.constant 6 : index
    %c0_73 = arith.constant 0 : index
    %c0_74 = arith.constant 0 : index
    %139 = vector.load %arg3[%c6, %c0_73, %c0_74] : memref<12x4x4xf32, #tpu.memory_space<vmem>>, vector<1x4x4xf32>
    %140 = vector.shape_cast %139 : vector<1x4x4xf32> to vector<4x4xf32>
    %cst_75 = arith.constant dense<0.000000e+00> : vector<4x32xf32>
    %141 = tpu.matmul %140, %27, %cst_75 {dimension_numbers = #tpu.dot_dimension_numbers<[1], [0], [0], [1], [0, 0, 1, 1], [], []>} : vector<4x4xf32>, vector<4x32xf32>, vector<4x32xf32> -> vector<4x32xf32>
    %c7 = arith.constant 7 : index
    %c0_76 = arith.constant 0 : index
    %c0_77 = arith.constant 0 : index
    %142 = vector.load %arg3[%c7, %c0_76, %c0_77] : memref<12x4x4xf32, #tpu.memory_space<vmem>>, vector<1x4x4xf32>
    %143 = vector.shape_cast %142 : vector<1x4x4xf32> to vector<4x4xf32>
    %cst_78 = arith.constant dense<0.000000e+00> : vector<4x32xf32>
    %144 = tpu.matmul %143, %28, %cst_78 {dimension_numbers = #tpu.dot_dimension_numbers<[1], [0], [0], [1], [0, 0, 1, 1], [], []>} : vector<4x4xf32>, vector<4x32xf32>, vector<4x32xf32> -> vector<4x32xf32>
    %145 = arith.addf %141, %144 : vector<4x32xf32>
    %c8 = arith.constant 8 : index
    %c0_79 = arith.constant 0 : index
    %c0_80 = arith.constant 0 : index
    %146 = vector.load %arg3[%c8, %c0_79, %c0_80] : memref<12x4x4xf32, #tpu.memory_space<vmem>>, vector<1x4x4xf32>
    %147 = vector.shape_cast %146 : vector<1x4x4xf32> to vector<4x4xf32>
    %cst_81 = arith.constant dense<0.000000e+00> : vector<4x32xf32>
    %148 = tpu.matmul %147, %29, %cst_81 {dimension_numbers = #tpu.dot_dimension_numbers<[1], [0], [0], [1], [0, 0, 1, 1], [], []>} : vector<4x4xf32>, vector<4x32xf32>, vector<4x32xf32> -> vector<4x32xf32>
    %149 = arith.addf %145, %148 : vector<4x32xf32>
    %c9 = arith.constant 9 : index
    %c0_82 = arith.constant 0 : index
    %c0_83 = arith.constant 0 : index
    %150 = vector.load %arg3[%c9, %c0_82, %c0_83] : memref<12x4x4xf32, #tpu.memory_space<vmem>>, vector<1x4x4xf32>
    %151 = vector.shape_cast %150 : vector<1x4x4xf32> to vector<4x4xf32>
    %cst_84 = arith.constant dense<0.000000e+00> : vector<4x32xf32>
    %152 = tpu.matmul %151, %36, %cst_84 {dimension_numbers = #tpu.dot_dimension_numbers<[1], [0], [0], [1], [0, 0, 1, 1], [], []>} : vector<4x4xf32>, vector<4x32xf32>, vector<4x32xf32> -> vector<4x32xf32>
    %153 = arith.addf %149, %152 : vector<4x32xf32>
    %c10 = arith.constant 10 : index
    %c0_85 = arith.constant 0 : index
    %c0_86 = arith.constant 0 : index
    %154 = vector.load %arg3[%c10, %c0_85, %c0_86] : memref<12x4x4xf32, #tpu.memory_space<vmem>>, vector<1x4x4xf32>
    %155 = vector.shape_cast %154 : vector<1x4x4xf32> to vector<4x4xf32>
    %cst_87 = arith.constant dense<0.000000e+00> : vector<4x32xf32>
    %156 = tpu.matmul %155, %37, %cst_87 {dimension_numbers = #tpu.dot_dimension_numbers<[1], [0], [0], [1], [0, 0, 1, 1], [], []>} : vector<4x4xf32>, vector<4x32xf32>, vector<4x32xf32> -> vector<4x32xf32>
    %157 = arith.addf %153, %156 : vector<4x32xf32>
    %c11 = arith.constant 11 : index
    %c0_88 = arith.constant 0 : index
    %c0_89 = arith.constant 0 : index
    %158 = vector.load %arg3[%c11, %c0_88, %c0_89] : memref<12x4x4xf32, #tpu.memory_space<vmem>>, vector<1x4x4xf32>
    %159 = vector.shape_cast %158 : vector<1x4x4xf32> to vector<4x4xf32>
    %cst_90 = arith.constant dense<0.000000e+00> : vector<4x32xf32>
    %160 = tpu.matmul %159, %38, %cst_90 {dimension_numbers = #tpu.dot_dimension_numbers<[1], [0], [0], [1], [0, 0, 1, 1], [], []>} : vector<4x4xf32>, vector<4x32xf32>, vector<4x32xf32> -> vector<4x32xf32>
    %161 = arith.addf %157, %160 : vector<4x32xf32>
    %162 = vector.broadcast %2 : vector<4x1xf32> to vector<4x32xf32>
    %163 = arith.addf %161, %162 : vector<4x32xf32>
    %c0_91 = arith.constant 0 : index
    %c0_92 = arith.constant 0 : index
    %c1_93 = arith.constant 1 : index
    %c0_94 = arith.constant 0 : index
    %164 = vector.load %arg6[%c0_91, %c0_92, %c1_93, %c0_94] : memref<1x4x16x32xf32, #tpu.memory_space<vmem>>, vector<1x4x1x32xf32>
    %165 = vector.shape_cast %164 : vector<1x4x1x32xf32> to vector<4x32xf32>
    %166 = vector.shape_cast %163 : vector<4x32xf32> to vector<1x4x1x32xf32>
    tpu.vector_store %arg6[%c0_91, %c0_92, %c1_93, %c0_94], %166 {strides = array<i32>} : memref<1x4x16x32xf32, #tpu.memory_space<vmem>>, vector<1x4x1x32xf32>,
    %c0_95 = arith.constant 0 : index
    %c0_96 = arith.constant 0 : index
    %c0_97 = arith.constant 0 : index
    %167 = vector.load %arg3[%c0_95, %c0_96, %c0_97] : memref<12x4x4xf32, #tpu.memory_space<vmem>>, vector<1x4x4xf32>
    %168 = vector.shape_cast %167 : vector<1x4x4xf32> to vector<4x4xf32>
    %cst_98 = arith.constant dense<0.000000e+00> : vector<4x32xf32>
    %169 = tpu.matmul %168, %27, %cst_98 {dimension_numbers = #tpu.dot_dimension_numbers<[1], [0], [0], [1], [0, 0, 1, 1], [], []>} : vector<4x4xf32>, vector<4x32xf32>, vector<4x32xf32> -> vector<4x32xf32>
    %c1_99 = arith.constant 1 : index
    %c0_100 = arith.constant 0 : index
    %c0_101 = arith.constant 0 : index
    %170 = vector.load %arg3[%c1_99, %c0_100, %c0_101] : memref<12x4x4xf32, #tpu.memory_space<vmem>>, vector<1x4x4xf32>
    %171 = vector.shape_cast %170 : vector<1x4x4xf32> to vector<4x4xf32>
    %cst_102 = arith.constant dense<0.000000e+00> : vector<4x32xf32>
    %172 = tpu.matmul %171, %28, %cst_102 {dimension_numbers = #tpu.dot_dimension_numbers<[1], [0], [0], [1], [0, 0, 1, 1], [], []>} : vector<4x4xf32>, vector<4x32xf32>, vector<4x32xf32> -> vector<4x32xf32>
    %173 = arith.addf %169, %172 : vector<4x32xf32>
    %c2_103 = arith.constant 2 : index
    %c0_104 = arith.constant 0 : index
    %c0_105 = arith.constant 0 : index
    %174 = vector.load %arg3[%c2_103, %c0_104, %c0_105] : memref<12x4x4xf32, #tpu.memory_space<vmem>>, vector<1x4x4xf32>
    %175 = vector.shape_cast %174 : vector<1x4x4xf32> to vector<4x4xf32>
    %cst_106 = arith.constant dense<0.000000e+00> : vector<4x32xf32>
    %176 = tpu.matmul %175, %29, %cst_106 {dimension_numbers = #tpu.dot_dimension_numbers<[1], [0], [0], [1], [0, 0, 1, 1], [], []>} : vector<4x4xf32>, vector<4x32xf32>, vector<4x32xf32> -> vector<4x32xf32>
    %177 = arith.addf %173, %176 : vector<4x32xf32>
    %c3_107 = arith.constant 3 : index
    %c0_108 = arith.constant 0 : index
    %c0_109 = arith.constant 0 : index
    %178 = vector.load %arg3[%c3_107, %c0_108, %c0_109] : memref<12x4x4xf32, #tpu.memory_space<vmem>>, vector<1x4x4xf32>
    %179 = vector.shape_cast %178 : vector<1x4x4xf32> to vector<4x4xf32>
    %cst_110 = arith.constant dense<0.000000e+00> : vector<4x32xf32>
    %180 = tpu.matmul %179, %36, %cst_110 {dimension_numbers = #tpu.dot_dimension_numbers<[1], [0], [0], [1], [0, 0, 1, 1], [], []>} : vector<4x4xf32>, vector<4x32xf32>, vector<4x32xf32> -> vector<4x32xf32>
    %181 = arith.addf %177, %180 : vector<4x32xf32>
    %c4_111 = arith.constant 4 : index
    %c0_112 = arith.constant 0 : index
    %c0_113 = arith.constant 0 : index
    %182 = vector.load %arg3[%c4_111, %c0_112, %c0_113] : memref<12x4x4xf32, #tpu.memory_space<vmem>>, vector<1x4x4xf32>
    %183 = vector.shape_cast %182 : vector<1x4x4xf32> to vector<4x4xf32>
    %cst_114 = arith.constant dense<0.000000e+00> : vector<4x32xf32>
    %184 = tpu.matmul %183, %37, %cst_114 {dimension_numbers = #tpu.dot_dimension_numbers<[1], [0], [0], [1], [0, 0, 1, 1], [], []>} : vector<4x4xf32>, vector<4x32xf32>, vector<4x32xf32> -> vector<4x32xf32>
    %185 = arith.addf %181, %184 : vector<4x32xf32>
    %c5_115 = arith.constant 5 : index
    %c0_116 = arith.constant 0 : index
    %c0_117 = arith.constant 0 : index
    %186 = vector.load %arg3[%c5_115, %c0_116, %c0_117] : memref<12x4x4xf32, #tpu.memory_space<vmem>>, vector<1x4x4xf32>
    %187 = vector.shape_cast %186 : vector<1x4x4xf32> to vector<4x4xf32>
    %cst_118 = arith.constant dense<0.000000e+00> : vector<4x32xf32>
    %188 = tpu.matmul %187, %38, %cst_118 {dimension_numbers = #tpu.dot_dimension_numbers<[1], [0], [0], [1], [0, 0, 1, 1], [], []>} : vector<4x4xf32>, vector<4x32xf32>, vector<4x32xf32> -> vector<4x32xf32>
    %189 = arith.addf %185, %188 : vector<4x32xf32>
    %190 = vector.broadcast %2 : vector<4x1xf32> to vector<4x32xf32>
    %191 = arith.addf %189, %190 : vector<4x32xf32>
    %c0_119 = arith.constant 0 : index
    %c0_120 = arith.constant 0 : index
    %c2_121 = arith.constant 2 : index
    %c0_122 = arith.constant 0 : index
    %192 = vector.load %arg6[%c0_119, %c0_120, %c2_121, %c0_122] : memref<1x4x16x32xf32, #tpu.memory_space<vmem>>, vector<1x4x1x32xf32>
    %193 = vector.shape_cast %192 : vector<1x4x1x32xf32> to vector<4x32xf32>
    %194 = vector.shape_cast %191 : vector<4x32xf32> to vector<1x4x1x32xf32>
    tpu.vector_store %arg6[%c0_119, %c0_120, %c2_121, %c0_122], %194 {strides = array<i32>} : memref<1x4x16x32xf32, #tpu.memory_space<vmem>>, vector<1x4x1x32xf32>,
    %c6_123 = arith.constant 6 : index
    %c0_124 = arith.constant 0 : index
    %c0_125 = arith.constant 0 : index
    %195 = vector.load %arg3[%c6_123, %c0_124, %c0_125] : memref<12x4x4xf32, #tpu.memory_space<vmem>>, vector<1x4x4xf32>
    %196 = vector.shape_cast %195 : vector<1x4x4xf32> to vector<4x4xf32>
    %cst_126 = arith.constant dense<0.000000e+00> : vector<4x32xf32>
    %197 = tpu.matmul %196, %36, %cst_126 {dimension_numbers = #tpu.dot_dimension_numbers<[1], [0], [0], [1], [0, 0, 1, 1], [], []>} : vector<4x4xf32>, vector<4x32xf32>, vector<4x32xf32> -> vector<4x32xf32>
    %c7_127 = arith.constant 7 : index
    %c0_128 = arith.constant 0 : index
    %c0_129 = arith.constant 0 : index
    %198 = vector.load %arg3[%c7_127, %c0_128, %c0_129] : memref<12x4x4xf32, #tpu.memory_space<vmem>>, vector<1x4x4xf32>
    %199 = vector.shape_cast %198 : vector<1x4x4xf32> to vector<4x4xf32>
    %cst_130 = arith.constant dense<0.000000e+00> : vector<4x32xf32>
    %200 = tpu.matmul %199, %37, %cst_130 {dimension_numbers = #tpu.dot_dimension_numbers<[1], [0], [0], [1], [0, 0, 1, 1], [], []>} : vector<4x4xf32>, vector<4x32xf32>, vector<4x32xf32> -> vector<4x32xf32>
    %201 = arith.addf %197, %200 : vector<4x32xf32>
    %c8_131 = arith.constant 8 : index
    %c0_132 = arith.constant 0 : index
    %c0_133 = arith.constant 0 : index
    %202 = vector.load %arg3[%c8_131, %c0_132, %c0_133] : memref<12x4x4xf32, #tpu.memory_space<vmem>>, vector<1x4x4xf32>
    %203 = vector.shape_cast %202 : vector<1x4x4xf32> to vector<4x4xf32>
    %cst_134 = arith.constant dense<0.000000e+00> : vector<4x32xf32>
    %204 = tpu.matmul %203, %38, %cst_134 {dimension_numbers = #tpu.dot_dimension_numbers<[1], [0], [0], [1], [0, 0, 1, 1], [], []>} : vector<4x4xf32>, vector<4x32xf32>, vector<4x32xf32> -> vector<4x32xf32>
    %205 = arith.addf %201, %204 : vector<4x32xf32>
    %c9_135 = arith.constant 9 : index
    %c0_136 = arith.constant 0 : index
    %c0_137 = arith.constant 0 : index
    %206 = vector.load %arg3[%c9_135, %c0_136, %c0_137] : memref<12x4x4xf32, #tpu.memory_space<vmem>>, vector<1x4x4xf32>
    %207 = vector.shape_cast %206 : vector<1x4x4xf32> to vector<4x4xf32>
    %cst_138 = arith.constant dense<0.000000e+00> : vector<4x32xf32>
    %208 = tpu.matmul %207, %45, %cst_138 {dimension_numbers = #tpu.dot_dimension_numbers<[1], [0], [0], [1], [0, 0, 1, 1], [], []>} : vector<4x4xf32>, vector<4x32xf32>, vector<4x32xf32> -> vector<4x32xf32>
    %209 = arith.addf %205, %208 : vector<4x32xf32>
    %c10_139 = arith.constant 10 : index
    %c0_140 = arith.constant 0 : index
    %c0_141 = arith.constant 0 : index
    %210 = vector.load %arg3[%c10_139, %c0_140, %c0_141] : memref<12x4x4xf32, #tpu.memory_space<vmem>>, vector<1x4x4xf32>
    %211 = vector.shape_cast %210 : vector<1x4x4xf32> to vector<4x4xf32>
    %cst_142 = arith.constant dense<0.000000e+00> : vector<4x32xf32>
    %212 = tpu.matmul %211, %46, %cst_142 {dimension_numbers = #tpu.dot_dimension_numbers<[1], [0], [0], [1], [0, 0, 1, 1], [], []>} : vector<4x4xf32>, vector<4x32xf32>, vector<4x32xf32> -> vector<4x32xf32>
    %213 = arith.addf %209, %212 : vector<4x32xf32>
    %c11_143 = arith.constant 11 : index
    %c0_144 = arith.constant 0 : index
    %c0_145 = arith.constant 0 : index
    %214 = vector.load %arg3[%c11_143, %c0_144, %c0_145] : memref<12x4x4xf32, #tpu.memory_space<vmem>>, vector<1x4x4xf32>
    %215 = vector.shape_cast %214 : vector<1x4x4xf32> to vector<4x4xf32>
    %cst_146 = arith.constant dense<0.000000e+00> : vector<4x32xf32>
    %216 = tpu.matmul %215, %47, %cst_146 {dimension_numbers = #tpu.dot_dimension_numbers<[1], [0], [0], [1], [0, 0, 1, 1], [], []>} : vector<4x4xf32>, vector<4x32xf32>, vector<4x32xf32> -> vector<4x32xf32>
    %217 = arith.addf %213, %216 : vector<4x32xf32>
    %218 = vector.broadcast %2 : vector<4x1xf32> to vector<4x32xf32>
    %219 = arith.addf %217, %218 : vector<4x32xf32>
    %c0_147 = arith.constant 0 : index
    %c0_148 = arith.constant 0 : index
    %c3_149 = arith.constant 3 : index
    %c0_150 = arith.constant 0 : index
    %220 = vector.load %arg6[%c0_147, %c0_148, %c3_149, %c0_150] : memref<1x4x16x32xf32, #tpu.memory_space<vmem>>, vector<1x4x1x32xf32>
    %221 = vector.shape_cast %220 : vector<1x4x1x32xf32> to vector<4x32xf32>
    %222 = vector.shape_cast %219 : vector<4x32xf32> to vector<1x4x1x32xf32>
    tpu.vector_store %arg6[%c0_147, %c0_148, %c3_149, %c0_150], %222 {strides = array<i32>} : memref<1x4x16x32xf32, #tpu.memory_space<vmem>>, vector<1x4x1x32xf32>,
    %c0_151 = arith.constant 0 : index
    %c0_152 = arith.constant 0 : index
    %c0_153 = arith.constant 0 : index
    %223 = vector.load %arg3[%c0_151, %c0_152, %c0_153] : memref<12x4x4xf32, #tpu.memory_space<vmem>>, vector<1x4x4xf32>
    %224 = vector.shape_cast %223 : vector<1x4x4xf32> to vector<4x4xf32>
    %cst_154 = arith.constant dense<0.000000e+00> : vector<4x32xf32>
    %225 = tpu.matmul %224, %36, %cst_154 {dimension_numbers = #tpu.dot_dimension_numbers<[1], [0], [0], [1], [0, 0, 1, 1], [], []>} : vector<4x4xf32>, vector<4x32xf32>, vector<4x32xf32> -> vector<4x32xf32>
    %c1_155 = arith.constant 1 : index
    %c0_156 = arith.constant 0 : index
    %c0_157 = arith.constant 0 : index
    %226 = vector.load %arg3[%c1_155, %c0_156, %c0_157] : memref<12x4x4xf32, #tpu.memory_space<vmem>>, vector<1x4x4xf32>
    %227 = vector.shape_cast %226 : vector<1x4x4xf32> to vector<4x4xf32>
    %cst_158 = arith.constant dense<0.000000e+00> : vector<4x32xf32>
    %228 = tpu.matmul %227, %37, %cst_158 {dimension_numbers = #tpu.dot_dimension_numbers<[1], [0], [0], [1], [0, 0, 1, 1], [], []>} : vector<4x4xf32>, vector<4x32xf32>, vector<4x32xf32> -> vector<4x32xf32>
    %229 = arith.addf %225, %228 : vector<4x32xf32>
    %c2_159 = arith.constant 2 : index
    %c0_160 = arith.constant 0 : index
    %c0_161 = arith.constant 0 : index
    %230 = vector.load %arg3[%c2_159, %c0_160, %c0_161] : memref<12x4x4xf32, #tpu.memory_space<vmem>>, vector<1x4x4xf32>
    %231 = vector.shape_cast %230 : vector<1x4x4xf32> to vector<4x4xf32>
    %cst_162 = arith.constant dense<0.000000e+00> : vector<4x32xf32>
    %232 = tpu.matmul %231, %38, %cst_162 {dimension_numbers = #tpu.dot_dimension_numbers<[1], [0], [0], [1], [0, 0, 1, 1], [], []>} : vector<4x4xf32>, vector<4x32xf32>, vector<4x32xf32> -> vector<4x32xf32>
    %233 = arith.addf %229, %232 : vector<4x32xf32>
    %c3_163 = arith.constant 3 : index
    %c0_164 = arith.constant 0 : index
    %c0_165 = arith.constant 0 : index
    %234 = vector.load %arg3[%c3_163, %c0_164, %c0_165] : memref<12x4x4xf32, #tpu.memory_space<vmem>>, vector<1x4x4xf32>
    %235 = vector.shape_cast %234 : vector<1x4x4xf32> to vector<4x4xf32>
    %cst_166 = arith.constant dense<0.000000e+00> : vector<4x32xf32>
    %236 = tpu.matmul %235, %45, %cst_166 {dimension_numbers = #tpu.dot_dimension_numbers<[1], [0], [0], [1], [0, 0, 1, 1], [], []>} : vector<4x4xf32>, vector<4x32xf32>, vector<4x32xf32> -> vector<4x32xf32>
    %237 = arith.addf %233, %236 : vector<4x32xf32>
    %c4_167 = arith.constant 4 : index
    %c0_168 = arith.constant 0 : index
    %c0_169 = arith.constant 0 : index
    %238 = vector.load %arg3[%c4_167, %c0_168, %c0_169] : memref<12x4x4xf32, #tpu.memory_space<vmem>>, vector<1x4x4xf32>
    %239 = vector.shape_cast %238 : vector<1x4x4xf32> to vector<4x4xf32>
    %cst_170 = arith.constant dense<0.000000e+00> : vector<4x32xf32>
    %240 = tpu.matmul %239, %46, %cst_170 {dimension_numbers = #tpu.dot_dimension_numbers<[1], [0], [0], [1], [0, 0, 1, 1], [], []>} : vector<4x4xf32>, vector<4x32xf32>, vector<4x32xf32> -> vector<4x32xf32>
    %241 = arith.addf %237, %240 : vector<4x32xf32>
    %c5_171 = arith.constant 5 : index
    %c0_172 = arith.constant 0 : index
    %c0_173 = arith.constant 0 : index
    %242 = vector.load %arg3[%c5_171, %c0_172, %c0_173] : memref<12x4x4xf32, #tpu.memory_space<vmem>>, vector<1x4x4xf32>
    %243 = vector.shape_cast %242 : vector<1x4x4xf32> to vector<4x4xf32>
    %cst_174 = arith.constant dense<0.000000e+00> : vector<4x32xf32>
    %244 = tpu.matmul %243, %47, %cst_174 {dimension_numbers = #tpu.dot_dimension_numbers<[1], [0], [0], [1], [0, 0, 1, 1], [], []>} : vector<4x4xf32>, vector<4x32xf32>, vector<4x32xf32> -> vector<4x32xf32>
    %245 = arith.addf %241, %244 : vector<4x32xf32>
    %246 = vector.broadcast %2 : vector<4x1xf32> to vector<4x32xf32>
    %247 = arith.addf %245, %246 : vector<4x32xf32>
    %c0_175 = arith.constant 0 : index
    %c0_176 = arith.constant 0 : index
    %c4_177 = arith.constant 4 : index
    %c0_178 = arith.constant 0 : index
    %248 = vector.load %arg6[%c0_175, %c0_176, %c4_177, %c0_178] : memref<1x4x16x32xf32, #tpu.memory_space<vmem>>, vector<1x4x1x32xf32>
    %249 = vector.shape_cast %248 : vector<1x4x1x32xf32> to vector<4x32xf32>
    %250 = vector.shape_cast %247 : vector<4x32xf32> to vector<1x4x1x32xf32>
    tpu.vector_store %arg6[%c0_175, %c0_176, %c4_177, %c0_178], %250 {strides = array<i32>} : memref<1x4x16x32xf32, #tpu.memory_space<vmem>>, vector<1x4x1x32xf32>,
    %c6_179 = arith.constant 6 : index
    %c0_180 = arith.constant 0 : index
    %c0_181 = arith.constant 0 : index
    %251 = vector.load %arg3[%c6_179, %c0_180, %c0_181] : memref<12x4x4xf32, #tpu.memory_space<vmem>>, vector<1x4x4xf32>
    %252 = vector.shape_cast %251 : vector<1x4x4xf32> to vector<4x4xf32>
    %cst_182 = arith.constant dense<0.000000e+00> : vector<4x32xf32>
    %253 = tpu.matmul %252, %45, %cst_182 {dimension_numbers = #tpu.dot_dimension_numbers<[1], [0], [0], [1], [0, 0, 1, 1], [], []>} : vector<4x4xf32>, vector<4x32xf32>, vector<4x32xf32> -> vector<4x32xf32>
    %c7_183 = arith.constant 7 : index
    %c0_184 = arith.constant 0 : index
    %c0_185 = arith.constant 0 : index
    %254 = vector.load %arg3[%c7_183, %c0_184, %c0_185] : memref<12x4x4xf32, #tpu.memory_space<vmem>>, vector<1x4x4xf32>
    %255 = vector.shape_cast %254 : vector<1x4x4xf32> to vector<4x4xf32>
    %cst_186 = arith.constant dense<0.000000e+00> : vector<4x32xf32>
    %256 = tpu.matmul %255, %46, %cst_186 {dimension_numbers = #tpu.dot_dimension_numbers<[1], [0], [0], [1], [0, 0, 1, 1], [], []>} : vector<4x4xf32>, vector<4x32xf32>, vector<4x32xf32> -> vector<4x32xf32>
    %257 = arith.addf %253, %256 : vector<4x32xf32>
    %c8_187 = arith.constant 8 : index
    %c0_188 = arith.constant 0 : index
    %c0_189 = arith.constant 0 : index
    %258 = vector.load %arg3[%c8_187, %c0_188, %c0_189] : memref<12x4x4xf32, #tpu.memory_space<vmem>>, vector<1x4x4xf32>
    %259 = vector.shape_cast %258 : vector<1x4x4xf32> to vector<4x4xf32>
    %cst_190 = arith.constant dense<0.000000e+00> : vector<4x32xf32>
    %260 = tpu.matmul %259, %47, %cst_190 {dimension_numbers = #tpu.dot_dimension_numbers<[1], [0], [0], [1], [0, 0, 1, 1], [], []>} : vector<4x4xf32>, vector<4x32xf32>, vector<4x32xf32> -> vector<4x32xf32>
    %261 = arith.addf %257, %260 : vector<4x32xf32>
    %c9_191 = arith.constant 9 : index
    %c0_192 = arith.constant 0 : index
    %c0_193 = arith.constant 0 : index
    %262 = vector.load %arg3[%c9_191, %c0_192, %c0_193] : memref<12x4x4xf32, #tpu.memory_space<vmem>>, vector<1x4x4xf32>
    %263 = vector.shape_cast %262 : vector<1x4x4xf32> to vector<4x4xf32>
    %cst_194 = arith.constant dense<0.000000e+00> : vector<4x32xf32>
    %264 = tpu.matmul %263, %54, %cst_194 {dimension_numbers = #tpu.dot_dimension_numbers<[1], [0], [0], [1], [0, 0, 1, 1], [], []>} : vector<4x4xf32>, vector<4x32xf32>, vector<4x32xf32> -> vector<4x32xf32>
    %265 = arith.addf %261, %264 : vector<4x32xf32>
    %c10_195 = arith.constant 10 : index
    %c0_196 = arith.constant 0 : index
    %c0_197 = arith.constant 0 : index
    %266 = vector.load %arg3[%c10_195, %c0_196, %c0_197] : memref<12x4x4xf32, #tpu.memory_space<vmem>>, vector<1x4x4xf32>
    %267 = vector.shape_cast %266 : vector<1x4x4xf32> to vector<4x4xf32>
    %cst_198 = arith.constant dense<0.000000e+00> : vector<4x32xf32>
    %268 = tpu.matmul %267, %55, %cst_198 {dimension_numbers = #tpu.dot_dimension_numbers<[1], [0], [0], [1], [0, 0, 1, 1], [], []>} : vector<4x4xf32>, vector<4x32xf32>, vector<4x32xf32> -> vector<4x32xf32>
    %269 = arith.addf %265, %268 : vector<4x32xf32>
    %c11_199 = arith.constant 11 : index
    %c0_200 = arith.constant 0 : index
    %c0_201 = arith.constant 0 : index
    %270 = vector.load %arg3[%c11_199, %c0_200, %c0_201] : memref<12x4x4xf32, #tpu.memory_space<vmem>>, vector<1x4x4xf32>
    %271 = vector.shape_cast %270 : vector<1x4x4xf32> to vector<4x4xf32>
    %cst_202 = arith.constant dense<0.000000e+00> : vector<4x32xf32>
    %272 = tpu.matmul %271, %56, %cst_202 {dimension_numbers = #tpu.dot_dimension_numbers<[1], [0], [0], [1], [0, 0, 1, 1], [], []>} : vector<4x4xf32>, vector<4x32xf32>, vector<4x32xf32> -> vector<4x32xf32>
    %273 = arith.addf %269, %272 : vector<4x32xf32>
    %274 = vector.broadcast %2 : vector<4x1xf32> to vector<4x32xf32>
    %275 = arith.addf %273, %274 : vector<4x32xf32>
    %c0_203 = arith.constant 0 : index
    %c0_204 = arith.constant 0 : index
    %c5_205 = arith.constant 5 : index
    %c0_206 = arith.constant 0 : index
    %276 = vector.load %arg6[%c0_203, %c0_204, %c5_205, %c0_206] : memref<1x4x16x32xf32, #tpu.memory_space<vmem>>, vector<1x4x1x32xf32>
    %277 = vector.shape_cast %276 : vector<1x4x1x32xf32> to vector<4x32xf32>
    %278 = vector.shape_cast %275 : vector<4x32xf32> to vector<1x4x1x32xf32>
    tpu.vector_store %arg6[%c0_203, %c0_204, %c5_205, %c0_206], %278 {strides = array<i32>} : memref<1x4x16x32xf32, #tpu.memory_space<vmem>>, vector<1x4x1x32xf32>,
    %c0_207 = arith.constant 0 : index
    %c0_208 = arith.constant 0 : index
    %c0_209 = arith.constant 0 : index
    %279 = vector.load %arg3[%c0_207, %c0_208, %c0_209] : memref<12x4x4xf32, #tpu.memory_space<vmem>>, vector<1x4x4xf32>
    %280 = vector.shape_cast %279 : vector<1x4x4xf32> to vector<4x4xf32>
    %cst_210 = arith.constant dense<0.000000e+00> : vector<4x32xf32>
    %281 = tpu.matmul %280, %45, %cst_210 {dimension_numbers = #tpu.dot_dimension_numbers<[1], [0], [0], [1], [0, 0, 1, 1], [], []>} : vector<4x4xf32>, vector<4x32xf32>, vector<4x32xf32> -> vector<4x32xf32>
    %c1_211 = arith.constant 1 : index
    %c0_212 = arith.constant 0 : index
    %c0_213 = arith.constant 0 : index
    %282 = vector.load %arg3[%c1_211, %c0_212, %c0_213] : memref<12x4x4xf32, #tpu.memory_space<vmem>>, vector<1x4x4xf32>
    %283 = vector.shape_cast %282 : vector<1x4x4xf32> to vector<4x4xf32>
    %cst_214 = arith.constant dense<0.000000e+00> : vector<4x32xf32>
    %284 = tpu.matmul %283, %46, %cst_214 {dimension_numbers = #tpu.dot_dimension_numbers<[1], [0], [0], [1], [0, 0, 1, 1], [], []>} : vector<4x4xf32>, vector<4x32xf32>, vector<4x32xf32> -> vector<4x32xf32>
    %285 = arith.addf %281, %284 : vector<4x32xf32>
    %c2_215 = arith.constant 2 : index
    %c0_216 = arith.constant 0 : index
    %c0_217 = arith.constant 0 : index
    %286 = vector.load %arg3[%c2_215, %c0_216, %c0_217] : memref<12x4x4xf32, #tpu.memory_space<vmem>>, vector<1x4x4xf32>
    %287 = vector.shape_cast %286 : vector<1x4x4xf32> to vector<4x4xf32>
    %cst_218 = arith.constant dense<0.000000e+00> : vector<4x32xf32>
    %288 = tpu.matmul %287, %47, %cst_218 {dimension_numbers = #tpu.dot_dimension_numbers<[1], [0], [0], [1], [0, 0, 1, 1], [], []>} : vector<4x4xf32>, vector<4x32xf32>, vector<4x32xf32> -> vector<4x32xf32>
    %289 = arith.addf %285, %288 : vector<4x32xf32>
    %c3_219 = arith.constant 3 : index
    %c0_220 = arith.constant 0 : index
    %c0_221 = arith.constant 0 : index
    %290 = vector.load %arg3[%c3_219, %c0_220, %c0_221] : memref<12x4x4xf32, #tpu.memory_space<vmem>>, vector<1x4x4xf32>
    %291 = vector.shape_cast %290 : vector<1x4x4xf32> to vector<4x4xf32>
    %cst_222 = arith.constant dense<0.000000e+00> : vector<4x32xf32>
    %292 = tpu.matmul %291, %54, %cst_222 {dimension_numbers = #tpu.dot_dimension_numbers<[1], [0], [0], [1], [0, 0, 1, 1], [], []>} : vector<4x4xf32>, vector<4x32xf32>, vector<4x32xf32> -> vector<4x32xf32>
    %293 = arith.addf %289, %292 : vector<4x32xf32>
    %c4_223 = arith.constant 4 : index
    %c0_224 = arith.constant 0 : index
    %c0_225 = arith.constant 0 : index
    %294 = vector.load %arg3[%c4_223, %c0_224, %c0_225] : memref<12x4x4xf32, #tpu.memory_space<vmem>>, vector<1x4x4xf32>
    %295 = vector.shape_cast %294 : vector<1x4x4xf32> to vector<4x4xf32>
    %cst_226 = arith.constant dense<0.000000e+00> : vector<4x32xf32>
    %296 = tpu.matmul %295, %55, %cst_226 {dimension_numbers = #tpu.dot_dimension_numbers<[1], [0], [0], [1], [0, 0, 1, 1], [], []>} : vector<4x4xf32>, vector<4x32xf32>, vector<4x32xf32> -> vector<4x32xf32>
    %297 = arith.addf %293, %296 : vector<4x32xf32>
    %c5_227 = arith.constant 5 : index
    %c0_228 = arith.constant 0 : index
    %c0_229 = arith.constant 0 : index
    %298 = vector.load %arg3[%c5_227, %c0_228, %c0_229] : memref<12x4x4xf32, #tpu.memory_space<vmem>>, vector<1x4x4xf32>
    %299 = vector.shape_cast %298 : vector<1x4x4xf32> to vector<4x4xf32>
    %cst_230 = arith.constant dense<0.000000e+00> : vector<4x32xf32>
    %300 = tpu.matmul %299, %56, %cst_230 {dimension_numbers = #tpu.dot_dimension_numbers<[1], [0], [0], [1], [0, 0, 1, 1], [], []>} : vector<4x4xf32>, vector<4x32xf32>, vector<4x32xf32> -> vector<4x32xf32>
    %301 = arith.addf %297, %300 : vector<4x32xf32>
    %302 = vector.broadcast %2 : vector<4x1xf32> to vector<4x32xf32>
    %303 = arith.addf %301, %302 : vector<4x32xf32>
    %c0_231 = arith.constant 0 : index
    %c0_232 = arith.constant 0 : index
    %c6_233 = arith.constant 6 : index
    %c0_234 = arith.constant 0 : index
    %304 = vector.load %arg6[%c0_231, %c0_232, %c6_233, %c0_234] : memref<1x4x16x32xf32, #tpu.memory_space<vmem>>, vector<1x4x1x32xf32>
    %305 = vector.shape_cast %304 : vector<1x4x1x32xf32> to vector<4x32xf32>
    %306 = vector.shape_cast %303 : vector<4x32xf32> to vector<1x4x1x32xf32>
    tpu.vector_store %arg6[%c0_231, %c0_232, %c6_233, %c0_234], %306 {strides = array<i32>} : memref<1x4x16x32xf32, #tpu.memory_space<vmem>>, vector<1x4x1x32xf32>,
    %c6_235 = arith.constant 6 : index
    %c0_236 = arith.constant 0 : index
    %c0_237 = arith.constant 0 : index
    %307 = vector.load %arg3[%c6_235, %c0_236, %c0_237] : memref<12x4x4xf32, #tpu.memory_space<vmem>>, vector<1x4x4xf32>
    %308 = vector.shape_cast %307 : vector<1x4x4xf32> to vector<4x4xf32>
    %cst_238 = arith.constant dense<0.000000e+00> : vector<4x32xf32>
    %309 = tpu.matmul %308, %54, %cst_238 {dimension_numbers = #tpu.dot_dimension_numbers<[1], [0], [0], [1], [0, 0, 1, 1], [], []>} : vector<4x4xf32>, vector<4x32xf32>, vector<4x32xf32> -> vector<4x32xf32>
    %c7_239 = arith.constant 7 : index
    %c0_240 = arith.constant 0 : index
    %c0_241 = arith.constant 0 : index
    %310 = vector.load %arg3[%c7_239, %c0_240, %c0_241] : memref<12x4x4xf32, #tpu.memory_space<vmem>>, vector<1x4x4xf32>
    %311 = vector.shape_cast %310 : vector<1x4x4xf32> to vector<4x4xf32>
    %cst_242 = arith.constant dense<0.000000e+00> : vector<4x32xf32>
    %312 = tpu.matmul %311, %55, %cst_242 {dimension_numbers = #tpu.dot_dimension_numbers<[1], [0], [0], [1], [0, 0, 1, 1], [], []>} : vector<4x4xf32>, vector<4x32xf32>, vector<4x32xf32> -> vector<4x32xf32>
    %313 = arith.addf %309, %312 : vector<4x32xf32>
    %c8_243 = arith.constant 8 : index
    %c0_244 = arith.constant 0 : index
    %c0_245 = arith.constant 0 : index
    %314 = vector.load %arg3[%c8_243, %c0_244, %c0_245] : memref<12x4x4xf32, #tpu.memory_space<vmem>>, vector<1x4x4xf32>
    %315 = vector.shape_cast %314 : vector<1x4x4xf32> to vector<4x4xf32>
    %cst_246 = arith.constant dense<0.000000e+00> : vector<4x32xf32>
    %316 = tpu.matmul %315, %56, %cst_246 {dimension_numbers = #tpu.dot_dimension_numbers<[1], [0], [0], [1], [0, 0, 1, 1], [], []>} : vector<4x4xf32>, vector<4x32xf32>, vector<4x32xf32> -> vector<4x32xf32>
    %317 = arith.addf %313, %316 : vector<4x32xf32>
    %c9_247 = arith.constant 9 : index
    %c0_248 = arith.constant 0 : index
    %c0_249 = arith.constant 0 : index
    %318 = vector.load %arg3[%c9_247, %c0_248, %c0_249] : memref<12x4x4xf32, #tpu.memory_space<vmem>>, vector<1x4x4xf32>
    %319 = vector.shape_cast %318 : vector<1x4x4xf32> to vector<4x4xf32>
    %cst_250 = arith.constant dense<0.000000e+00> : vector<4x32xf32>
    %320 = tpu.matmul %319, %63, %cst_250 {dimension_numbers = #tpu.dot_dimension_numbers<[1], [0], [0], [1], [0, 0, 1, 1], [], []>} : vector<4x4xf32>, vector<4x32xf32>, vector<4x32xf32> -> vector<4x32xf32>
    %321 = arith.addf %317, %320 : vector<4x32xf32>
    %c10_251 = arith.constant 10 : index
    %c0_252 = arith.constant 0 : index
    %c0_253 = arith.constant 0 : index
    %322 = vector.load %arg3[%c10_251, %c0_252, %c0_253] : memref<12x4x4xf32, #tpu.memory_space<vmem>>, vector<1x4x4xf32>
    %323 = vector.shape_cast %322 : vector<1x4x4xf32> to vector<4x4xf32>
    %cst_254 = arith.constant dense<0.000000e+00> : vector<4x32xf32>
    %324 = tpu.matmul %323, %64, %cst_254 {dimension_numbers = #tpu.dot_dimension_numbers<[1], [0], [0], [1], [0, 0, 1, 1], [], []>} : vector<4x4xf32>, vector<4x32xf32>, vector<4x32xf32> -> vector<4x32xf32>
    %325 = arith.addf %321, %324 : vector<4x32xf32>
    %c11_255 = arith.constant 11 : index
    %c0_256 = arith.constant 0 : index
    %c0_257 = arith.constant 0 : index
    %326 = vector.load %arg3[%c11_255, %c0_256, %c0_257] : memref<12x4x4xf32, #tpu.memory_space<vmem>>, vector<1x4x4xf32>
    %327 = vector.shape_cast %326 : vector<1x4x4xf32> to vector<4x4xf32>
    %cst_258 = arith.constant dense<0.000000e+00> : vector<4x32xf32>
    %328 = tpu.matmul %327, %65, %cst_258 {dimension_numbers = #tpu.dot_dimension_numbers<[1], [0], [0], [1], [0, 0, 1, 1], [], []>} : vector<4x4xf32>, vector<4x32xf32>, vector<4x32xf32> -> vector<4x32xf32>
    %329 = arith.addf %325, %328 : vector<4x32xf32>
    %330 = vector.broadcast %2 : vector<4x1xf32> to vector<4x32xf32>
    %331 = arith.addf %329, %330 : vector<4x32xf32>
    %c0_259 = arith.constant 0 : index
    %c0_260 = arith.constant 0 : index
    %c7_261 = arith.constant 7 : index
    %c0_262 = arith.constant 0 : index
    %332 = vector.load %arg6[%c0_259, %c0_260, %c7_261, %c0_262] : memref<1x4x16x32xf32, #tpu.memory_space<vmem>>, vector<1x4x1x32xf32>
    %333 = vector.shape_cast %332 : vector<1x4x1x32xf32> to vector<4x32xf32>
    %334 = vector.shape_cast %331 : vector<4x32xf32> to vector<1x4x1x32xf32>
    tpu.vector_store %arg6[%c0_259, %c0_260, %c7_261, %c0_262], %334 {strides = array<i32>} : memref<1x4x16x32xf32, #tpu.memory_space<vmem>>, vector<1x4x1x32xf32>,
    %c0_263 = arith.constant 0 : index
    %c0_264 = arith.constant 0 : index
    %c0_265 = arith.constant 0 : index
    %335 = vector.load %arg3[%c0_263, %c0_264, %c0_265] : memref<12x4x4xf32, #tpu.memory_space<vmem>>, vector<1x4x4xf32>
    %336 = vector.shape_cast %335 : vector<1x4x4xf32> to vector<4x4xf32>
    %cst_266 = arith.constant dense<0.000000e+00> : vector<4x32xf32>
    %337 = tpu.matmul %336, %54, %cst_266 {dimension_numbers = #tpu.dot_dimension_numbers<[1], [0], [0], [1], [0, 0, 1, 1], [], []>} : vector<4x4xf32>, vector<4x32xf32>, vector<4x32xf32> -> vector<4x32xf32>
    %c1_267 = arith.constant 1 : index
    %c0_268 = arith.constant 0 : index
    %c0_269 = arith.constant 0 : index
    %338 = vector.load %arg3[%c1_267, %c0_268, %c0_269] : memref<12x4x4xf32, #tpu.memory_space<vmem>>, vector<1x4x4xf32>
    %339 = vector.shape_cast %338 : vector<1x4x4xf32> to vector<4x4xf32>
    %cst_270 = arith.constant dense<0.000000e+00> : vector<4x32xf32>
    %340 = tpu.matmul %339, %55, %cst_270 {dimension_numbers = #tpu.dot_dimension_numbers<[1], [0], [0], [1], [0, 0, 1, 1], [], []>} : vector<4x4xf32>, vector<4x32xf32>, vector<4x32xf32> -> vector<4x32xf32>
    %341 = arith.addf %337, %340 : vector<4x32xf32>
    %c2_271 = arith.constant 2 : index
    %c0_272 = arith.constant 0 : index
    %c0_273 = arith.constant 0 : index
    %342 = vector.load %arg3[%c2_271, %c0_272, %c0_273] : memref<12x4x4xf32, #tpu.memory_space<vmem>>, vector<1x4x4xf32>
    %343 = vector.shape_cast %342 : vector<1x4x4xf32> to vector<4x4xf32>
    %cst_274 = arith.constant dense<0.000000e+00> : vector<4x32xf32>
    %344 = tpu.matmul %343, %56, %cst_274 {dimension_numbers = #tpu.dot_dimension_numbers<[1], [0], [0], [1], [0, 0, 1, 1], [], []>} : vector<4x4xf32>, vector<4x32xf32>, vector<4x32xf32> -> vector<4x32xf32>
    %345 = arith.addf %341, %344 : vector<4x32xf32>
    %c3_275 = arith.constant 3 : index
    %c0_276 = arith.constant 0 : index
    %c0_277 = arith.constant 0 : index
    %346 = vector.load %arg3[%c3_275, %c0_276, %c0_277] : memref<12x4x4xf32, #tpu.memory_space<vmem>>, vector<1x4x4xf32>
    %347 = vector.shape_cast %346 : vector<1x4x4xf32> to vector<4x4xf32>
    %cst_278 = arith.constant dense<0.000000e+00> : vector<4x32xf32>
    %348 = tpu.matmul %347, %63, %cst_278 {dimension_numbers = #tpu.dot_dimension_numbers<[1], [0], [0], [1], [0, 0, 1, 1], [], []>} : vector<4x4xf32>, vector<4x32xf32>, vector<4x32xf32> -> vector<4x32xf32>
    %349 = arith.addf %345, %348 : vector<4x32xf32>
    %c4_279 = arith.constant 4 : index
    %c0_280 = arith.constant 0 : index
    %c0_281 = arith.constant 0 : index
    %350 = vector.load %arg3[%c4_279, %c0_280, %c0_281] : memref<12x4x4xf32, #tpu.memory_space<vmem>>, vector<1x4x4xf32>
    %351 = vector.shape_cast %350 : vector<1x4x4xf32> to vector<4x4xf32>
    %cst_282 = arith.constant dense<0.000000e+00> : vector<4x32xf32>
    %352 = tpu.matmul %351, %64, %cst_282 {dimension_numbers = #tpu.dot_dimension_numbers<[1], [0], [0], [1], [0, 0, 1, 1], [], []>} : vector<4x4xf32>, vector<4x32xf32>, vector<4x32xf32> -> vector<4x32xf32>
    %353 = arith.addf %349, %352 : vector<4x32xf32>
    %c5_283 = arith.constant 5 : index
    %c0_284 = arith.constant 0 : index
    %c0_285 = arith.constant 0 : index
    %354 = vector.load %arg3[%c5_283, %c0_284, %c0_285] : memref<12x4x4xf32, #tpu.memory_space<vmem>>, vector<1x4x4xf32>
    %355 = vector.shape_cast %354 : vector<1x4x4xf32> to vector<4x4xf32>
    %cst_286 = arith.constant dense<0.000000e+00> : vector<4x32xf32>
    %356 = tpu.matmul %355, %65, %cst_286 {dimension_numbers = #tpu.dot_dimension_numbers<[1], [0], [0], [1], [0, 0, 1, 1], [], []>} : vector<4x4xf32>, vector<4x32xf32>, vector<4x32xf32> -> vector<4x32xf32>
    %357 = arith.addf %353, %356 : vector<4x32xf32>
    %358 = vector.broadcast %2 : vector<4x1xf32> to vector<4x32xf32>
    %359 = arith.addf %357, %358 : vector<4x32xf32>
    %c0_287 = arith.constant 0 : index
    %c0_288 = arith.constant 0 : index
    %c8_289 = arith.constant 8 : index
    %c0_290 = arith.constant 0 : index
    %360 = vector.load %arg6[%c0_287, %c0_288, %c8_289, %c0_290] : memref<1x4x16x32xf32, #tpu.memory_space<vmem>>, vector<1x4x1x32xf32>
    %361 = vector.shape_cast %360 : vector<1x4x1x32xf32> to vector<4x32xf32>
    %362 = vector.shape_cast %359 : vector<4x32xf32> to vector<1x4x1x32xf32>
    tpu.vector_store %arg6[%c0_287, %c0_288, %c8_289, %c0_290], %362 {strides = array<i32>} : memref<1x4x16x32xf32, #tpu.memory_space<vmem>>, vector<1x4x1x32xf32>,
    %c6_291 = arith.constant 6 : index
    %c0_292 = arith.constant 0 : index
    %c0_293 = arith.constant 0 : index
    %363 = vector.load %arg3[%c6_291, %c0_292, %c0_293] : memref<12x4x4xf32, #tpu.memory_space<vmem>>, vector<1x4x4xf32>
    %364 = vector.shape_cast %363 : vector<1x4x4xf32> to vector<4x4xf32>
    %cst_294 = arith.constant dense<0.000000e+00> : vector<4x32xf32>
    %365 = tpu.matmul %364, %63, %cst_294 {dimension_numbers = #tpu.dot_dimension_numbers<[1], [0], [0], [1], [0, 0, 1, 1], [], []>} : vector<4x4xf32>, vector<4x32xf32>, vector<4x32xf32> -> vector<4x32xf32>
    %c7_295 = arith.constant 7 : index
    %c0_296 = arith.constant 0 : index
    %c0_297 = arith.constant 0 : index
    %366 = vector.load %arg3[%c7_295, %c0_296, %c0_297] : memref<12x4x4xf32, #tpu.memory_space<vmem>>, vector<1x4x4xf32>
    %367 = vector.shape_cast %366 : vector<1x4x4xf32> to vector<4x4xf32>
    %cst_298 = arith.constant dense<0.000000e+00> : vector<4x32xf32>
    %368 = tpu.matmul %367, %64, %cst_298 {dimension_numbers = #tpu.dot_dimension_numbers<[1], [0], [0], [1], [0, 0, 1, 1], [], []>} : vector<4x4xf32>, vector<4x32xf32>, vector<4x32xf32> -> vector<4x32xf32>
    %369 = arith.addf %365, %368 : vector<4x32xf32>
    %c8_299 = arith.constant 8 : index
    %c0_300 = arith.constant 0 : index
    %c0_301 = arith.constant 0 : index
    %370 = vector.load %arg3[%c8_299, %c0_300, %c0_301] : memref<12x4x4xf32, #tpu.memory_space<vmem>>, vector<1x4x4xf32>
    %371 = vector.shape_cast %370 : vector<1x4x4xf32> to vector<4x4xf32>
    %cst_302 = arith.constant dense<0.000000e+00> : vector<4x32xf32>
    %372 = tpu.matmul %371, %65, %cst_302 {dimension_numbers = #tpu.dot_dimension_numbers<[1], [0], [0], [1], [0, 0, 1, 1], [], []>} : vector<4x4xf32>, vector<4x32xf32>, vector<4x32xf32> -> vector<4x32xf32>
    %373 = arith.addf %369, %372 : vector<4x32xf32>
    %c9_303 = arith.constant 9 : index
    %c0_304 = arith.constant 0 : index
    %c0_305 = arith.constant 0 : index
    %374 = vector.load %arg3[%c9_303, %c0_304, %c0_305] : memref<12x4x4xf32, #tpu.memory_space<vmem>>, vector<1x4x4xf32>
    %375 = vector.shape_cast %374 : vector<1x4x4xf32> to vector<4x4xf32>
    %cst_306 = arith.constant dense<0.000000e+00> : vector<4x32xf32>
    %376 = tpu.matmul %375, %72, %cst_306 {dimension_numbers = #tpu.dot_dimension_numbers<[1], [0], [0], [1], [0, 0, 1, 1], [], []>} : vector<4x4xf32>, vector<4x32xf32>, vector<4x32xf32> -> vector<4x32xf32>
    %377 = arith.addf %373, %376 : vector<4x32xf32>
    %c10_307 = arith.constant 10 : index
    %c0_308 = arith.constant 0 : index
    %c0_309 = arith.constant 0 : index
    %378 = vector.load %arg3[%c10_307, %c0_308, %c0_309] : memref<12x4x4xf32, #tpu.memory_space<vmem>>, vector<1x4x4xf32>
    %379 = vector.shape_cast %378 : vector<1x4x4xf32> to vector<4x4xf32>
    %cst_310 = arith.constant dense<0.000000e+00> : vector<4x32xf32>
    %380 = tpu.matmul %379, %73, %cst_310 {dimension_numbers = #tpu.dot_dimension_numbers<[1], [0], [0], [1], [0, 0, 1, 1], [], []>} : vector<4x4xf32>, vector<4x32xf32>, vector<4x32xf32> -> vector<4x32xf32>
    %381 = arith.addf %377, %380 : vector<4x32xf32>
    %c11_311 = arith.constant 11 : index
    %c0_312 = arith.constant 0 : index
    %c0_313 = arith.constant 0 : index
    %382 = vector.load %arg3[%c11_311, %c0_312, %c0_313] : memref<12x4x4xf32, #tpu.memory_space<vmem>>, vector<1x4x4xf32>
    %383 = vector.shape_cast %382 : vector<1x4x4xf32> to vector<4x4xf32>
    %cst_314 = arith.constant dense<0.000000e+00> : vector<4x32xf32>
    %384 = tpu.matmul %383, %74, %cst_314 {dimension_numbers = #tpu.dot_dimension_numbers<[1], [0], [0], [1], [0, 0, 1, 1], [], []>} : vector<4x4xf32>, vector<4x32xf32>, vector<4x32xf32> -> vector<4x32xf32>
    %385 = arith.addf %381, %384 : vector<4x32xf32>
    %386 = vector.broadcast %2 : vector<4x1xf32> to vector<4x32xf32>
    %387 = arith.addf %385, %386 : vector<4x32xf32>
    %c0_315 = arith.constant 0 : index
    %c0_316 = arith.constant 0 : index
    %c9_317 = arith.constant 9 : index
    %c0_318 = arith.constant 0 : index
    %388 = vector.load %arg6[%c0_315, %c0_316, %c9_317, %c0_318] : memref<1x4x16x32xf32, #tpu.memory_space<vmem>>, vector<1x4x1x32xf32>
    %389 = vector.shape_cast %388 : vector<1x4x1x32xf32> to vector<4x32xf32>
    %390 = vector.shape_cast %387 : vector<4x32xf32> to vector<1x4x1x32xf32>
    tpu.vector_store %arg6[%c0_315, %c0_316, %c9_317, %c0_318], %390 {strides = array<i32>} : memref<1x4x16x32xf32, #tpu.memory_space<vmem>>, vector<1x4x1x32xf32>,
    %c0_319 = arith.constant 0 : index
    %c0_320 = arith.constant 0 : index
    %c0_321 = arith.constant 0 : index
    %391 = vector.load %arg3[%c0_319, %c0_320, %c0_321] : memref<12x4x4xf32, #tpu.memory_space<vmem>>, vector<1x4x4xf32>
    %392 = vector.shape_cast %391 : vector<1x4x4xf32> to vector<4x4xf32>
    %cst_322 = arith.constant dense<0.000000e+00> : vector<4x32xf32>
    %393 = tpu.matmul %392, %63, %cst_322 {dimension_numbers = #tpu.dot_dimension_numbers<[1], [0], [0], [1], [0, 0, 1, 1], [], []>} : vector<4x4xf32>, vector<4x32xf32>, vector<4x32xf32> -> vector<4x32xf32>
    %c1_323 = arith.constant 1 : index
    %c0_324 = arith.constant 0 : index
    %c0_325 = arith.constant 0 : index
    %394 = vector.load %arg3[%c1_323, %c0_324, %c0_325] : memref<12x4x4xf32, #tpu.memory_space<vmem>>, vector<1x4x4xf32>
    %395 = vector.shape_cast %394 : vector<1x4x4xf32> to vector<4x4xf32>
    %cst_326 = arith.constant dense<0.000000e+00> : vector<4x32xf32>
    %396 = tpu.matmul %395, %64, %cst_326 {dimension_numbers = #tpu.dot_dimension_numbers<[1], [0], [0], [1], [0, 0, 1, 1], [], []>} : vector<4x4xf32>, vector<4x32xf32>, vector<4x32xf32> -> vector<4x32xf32>
    %397 = arith.addf %393, %396 : vector<4x32xf32>
    %c2_327 = arith.constant 2 : index
    %c0_328 = arith.constant 0 : index
    %c0_329 = arith.constant 0 : index
    %398 = vector.load %arg3[%c2_327, %c0_328, %c0_329] : memref<12x4x4xf32, #tpu.memory_space<vmem>>, vector<1x4x4xf32>
    %399 = vector.shape_cast %398 : vector<1x4x4xf32> to vector<4x4xf32>
    %cst_330 = arith.constant dense<0.000000e+00> : vector<4x32xf32>
    %400 = tpu.matmul %399, %65, %cst_330 {dimension_numbers = #tpu.dot_dimension_numbers<[1], [0], [0], [1], [0, 0, 1, 1], [], []>} : vector<4x4xf32>, vector<4x32xf32>, vector<4x32xf32> -> vector<4x32xf32>
    %401 = arith.addf %397, %400 : vector<4x32xf32>
    %c3_331 = arith.constant 3 : index
    %c0_332 = arith.constant 0 : index
    %c0_333 = arith.constant 0 : index
    %402 = vector.load %arg3[%c3_331, %c0_332, %c0_333] : memref<12x4x4xf32, #tpu.memory_space<vmem>>, vector<1x4x4xf32>
    %403 = vector.shape_cast %402 : vector<1x4x4xf32> to vector<4x4xf32>
    %cst_334 = arith.constant dense<0.000000e+00> : vector<4x32xf32>
    %404 = tpu.matmul %403, %72, %cst_334 {dimension_numbers = #tpu.dot_dimension_numbers<[1], [0], [0], [1], [0, 0, 1, 1], [], []>} : vector<4x4xf32>, vector<4x32xf32>, vector<4x32xf32> -> vector<4x32xf32>
    %405 = arith.addf %401, %404 : vector<4x32xf32>
    %c4_335 = arith.constant 4 : index
    %c0_336 = arith.constant 0 : index
    %c0_337 = arith.constant 0 : index
    %406 = vector.load %arg3[%c4_335, %c0_336, %c0_337] : memref<12x4x4xf32, #tpu.memory_space<vmem>>, vector<1x4x4xf32>
    %407 = vector.shape_cast %406 : vector<1x4x4xf32> to vector<4x4xf32>
    %cst_338 = arith.constant dense<0.000000e+00> : vector<4x32xf32>
    %408 = tpu.matmul %407, %73, %cst_338 {dimension_numbers = #tpu.dot_dimension_numbers<[1], [0], [0], [1], [0, 0, 1, 1], [], []>} : vector<4x4xf32>, vector<4x32xf32>, vector<4x32xf32> -> vector<4x32xf32>
    %409 = arith.addf %405, %408 : vector<4x32xf32>
    %c5_339 = arith.constant 5 : index
    %c0_340 = arith.constant 0 : index
    %c0_341 = arith.constant 0 : index
    %410 = vector.load %arg3[%c5_339, %c0_340, %c0_341] : memref<12x4x4xf32, #tpu.memory_space<vmem>>, vector<1x4x4xf32>
    %411 = vector.shape_cast %410 : vector<1x4x4xf32> to vector<4x4xf32>
    %cst_342 = arith.constant dense<0.000000e+00> : vector<4x32xf32>
    %412 = tpu.matmul %411, %74, %cst_342 {dimension_numbers = #tpu.dot_dimension_numbers<[1], [0], [0], [1], [0, 0, 1, 1], [], []>} : vector<4x4xf32>, vector<4x32xf32>, vector<4x32xf32> -> vector<4x32xf32>
    %413 = arith.addf %409, %412 : vector<4x32xf32>
    %414 = vector.broadcast %2 : vector<4x1xf32> to vector<4x32xf32>
    %415 = arith.addf %413, %414 : vector<4x32xf32>
    %c0_343 = arith.constant 0 : index
    %c0_344 = arith.constant 0 : index
    %c10_345 = arith.constant 10 : index
    %c0_346 = arith.constant 0 : index
    %416 = vector.load %arg6[%c0_343, %c0_344, %c10_345, %c0_346] : memref<1x4x16x32xf32, #tpu.memory_space<vmem>>, vector<1x4x1x32xf32>
    %417 = vector.shape_cast %416 : vector<1x4x1x32xf32> to vector<4x32xf32>
    %418 = vector.shape_cast %415 : vector<4x32xf32> to vector<1x4x1x32xf32>
    tpu.vector_store %arg6[%c0_343, %c0_344, %c10_345, %c0_346], %418 {strides = array<i32>} : memref<1x4x16x32xf32, #tpu.memory_space<vmem>>, vector<1x4x1x32xf32>,
    %c6_347 = arith.constant 6 : index
    %c0_348 = arith.constant 0 : index
    %c0_349 = arith.constant 0 : index
    %419 = vector.load %arg3[%c6_347, %c0_348, %c0_349] : memref<12x4x4xf32, #tpu.memory_space<vmem>>, vector<1x4x4xf32>
    %420 = vector.shape_cast %419 : vector<1x4x4xf32> to vector<4x4xf32>
    %cst_350 = arith.constant dense<0.000000e+00> : vector<4x32xf32>
    %421 = tpu.matmul %420, %72, %cst_350 {dimension_numbers = #tpu.dot_dimension_numbers<[1], [0], [0], [1], [0, 0, 1, 1], [], []>} : vector<4x4xf32>, vector<4x32xf32>, vector<4x32xf32> -> vector<4x32xf32>
    %c7_351 = arith.constant 7 : index
    %c0_352 = arith.constant 0 : index
    %c0_353 = arith.constant 0 : index
    %422 = vector.load %arg3[%c7_351, %c0_352, %c0_353] : memref<12x4x4xf32, #tpu.memory_space<vmem>>, vector<1x4x4xf32>
    %423 = vector.shape_cast %422 : vector<1x4x4xf32> to vector<4x4xf32>
    %cst_354 = arith.constant dense<0.000000e+00> : vector<4x32xf32>
    %424 = tpu.matmul %423, %73, %cst_354 {dimension_numbers = #tpu.dot_dimension_numbers<[1], [0], [0], [1], [0, 0, 1, 1], [], []>} : vector<4x4xf32>, vector<4x32xf32>, vector<4x32xf32> -> vector<4x32xf32>
    %425 = arith.addf %421, %424 : vector<4x32xf32>
    %c8_355 = arith.constant 8 : index
    %c0_356 = arith.constant 0 : index
    %c0_357 = arith.constant 0 : index
    %426 = vector.load %arg3[%c8_355, %c0_356, %c0_357] : memref<12x4x4xf32, #tpu.memory_space<vmem>>, vector<1x4x4xf32>
    %427 = vector.shape_cast %426 : vector<1x4x4xf32> to vector<4x4xf32>
    %cst_358 = arith.constant dense<0.000000e+00> : vector<4x32xf32>
    %428 = tpu.matmul %427, %74, %cst_358 {dimension_numbers = #tpu.dot_dimension_numbers<[1], [0], [0], [1], [0, 0, 1, 1], [], []>} : vector<4x4xf32>, vector<4x32xf32>, vector<4x32xf32> -> vector<4x32xf32>
    %429 = arith.addf %425, %428 : vector<4x32xf32>
    %c9_359 = arith.constant 9 : index
    %c0_360 = arith.constant 0 : index
    %c0_361 = arith.constant 0 : index
    %430 = vector.load %arg3[%c9_359, %c0_360, %c0_361] : memref<12x4x4xf32, #tpu.memory_space<vmem>>, vector<1x4x4xf32>
    %431 = vector.shape_cast %430 : vector<1x4x4xf32> to vector<4x4xf32>
    %cst_362 = arith.constant dense<0.000000e+00> : vector<4x32xf32>
    %432 = tpu.matmul %431, %81, %cst_362 {dimension_numbers = #tpu.dot_dimension_numbers<[1], [0], [0], [1], [0, 0, 1, 1], [], []>} : vector<4x4xf32>, vector<4x32xf32>, vector<4x32xf32> -> vector<4x32xf32>
    %433 = arith.addf %429, %432 : vector<4x32xf32>
    %c10_363 = arith.constant 10 : index
    %c0_364 = arith.constant 0 : index
    %c0_365 = arith.constant 0 : index
    %434 = vector.load %arg3[%c10_363, %c0_364, %c0_365] : memref<12x4x4xf32, #tpu.memory_space<vmem>>, vector<1x4x4xf32>
    %435 = vector.shape_cast %434 : vector<1x4x4xf32> to vector<4x4xf32>
    %cst_366 = arith.constant dense<0.000000e+00> : vector<4x32xf32>
    %436 = tpu.matmul %435, %82, %cst_366 {dimension_numbers = #tpu.dot_dimension_numbers<[1], [0], [0], [1], [0, 0, 1, 1], [], []>} : vector<4x4xf32>, vector<4x32xf32>, vector<4x32xf32> -> vector<4x32xf32>
    %437 = arith.addf %433, %436 : vector<4x32xf32>
    %c11_367 = arith.constant 11 : index
    %c0_368 = arith.constant 0 : index
    %c0_369 = arith.constant 0 : index
    %438 = vector.load %arg3[%c11_367, %c0_368, %c0_369] : memref<12x4x4xf32, #tpu.memory_space<vmem>>, vector<1x4x4xf32>
    %439 = vector.shape_cast %438 : vector<1x4x4xf32> to vector<4x4xf32>
    %cst_370 = arith.constant dense<0.000000e+00> : vector<4x32xf32>
    %440 = tpu.matmul %439, %83, %cst_370 {dimension_numbers = #tpu.dot_dimension_numbers<[1], [0], [0], [1], [0, 0, 1, 1], [], []>} : vector<4x4xf32>, vector<4x32xf32>, vector<4x32xf32> -> vector<4x32xf32>
    %441 = arith.addf %437, %440 : vector<4x32xf32>
    %442 = vector.broadcast %2 : vector<4x1xf32> to vector<4x32xf32>
    %443 = arith.addf %441, %442 : vector<4x32xf32>
    %c0_371 = arith.constant 0 : index
    %c0_372 = arith.constant 0 : index
    %c11_373 = arith.constant 11 : index
    %c0_374 = arith.constant 0 : index
    %444 = vector.load %arg6[%c0_371, %c0_372, %c11_373, %c0_374] : memref<1x4x16x32xf32, #tpu.memory_space<vmem>>, vector<1x4x1x32xf32>
    %445 = vector.shape_cast %444 : vector<1x4x1x32xf32> to vector<4x32xf32>
    %446 = vector.shape_cast %443 : vector<4x32xf32> to vector<1x4x1x32xf32>
    tpu.vector_store %arg6[%c0_371, %c0_372, %c11_373, %c0_374], %446 {strides = array<i32>} : memref<1x4x16x32xf32, #tpu.memory_space<vmem>>, vector<1x4x1x32xf32>,
    %c0_375 = arith.constant 0 : index
    %c0_376 = arith.constant 0 : index
    %c0_377 = arith.constant 0 : index
    %447 = vector.load %arg3[%c0_375, %c0_376, %c0_377] : memref<12x4x4xf32, #tpu.memory_space<vmem>>, vector<1x4x4xf32>
    %448 = vector.shape_cast %447 : vector<1x4x4xf32> to vector<4x4xf32>
    %cst_378 = arith.constant dense<0.000000e+00> : vector<4x32xf32>
    %449 = tpu.matmul %448, %72, %cst_378 {dimension_numbers = #tpu.dot_dimension_numbers<[1], [0], [0], [1], [0, 0, 1, 1], [], []>} : vector<4x4xf32>, vector<4x32xf32>, vector<4x32xf32> -> vector<4x32xf32>
    %c1_379 = arith.constant 1 : index
    %c0_380 = arith.constant 0 : index
    %c0_381 = arith.constant 0 : index
    %450 = vector.load %arg3[%c1_379, %c0_380, %c0_381] : memref<12x4x4xf32, #tpu.memory_space<vmem>>, vector<1x4x4xf32>
    %451 = vector.shape_cast %450 : vector<1x4x4xf32> to vector<4x4xf32>
    %cst_382 = arith.constant dense<0.000000e+00> : vector<4x32xf32>
    %452 = tpu.matmul %451, %73, %cst_382 {dimension_numbers = #tpu.dot_dimension_numbers<[1], [0], [0], [1], [0, 0, 1, 1], [], []>} : vector<4x4xf32>, vector<4x32xf32>, vector<4x32xf32> -> vector<4x32xf32>
    %453 = arith.addf %449, %452 : vector<4x32xf32>
    %c2_383 = arith.constant 2 : index
    %c0_384 = arith.constant 0 : index
    %c0_385 = arith.constant 0 : index
    %454 = vector.load %arg3[%c2_383, %c0_384, %c0_385] : memref<12x4x4xf32, #tpu.memory_space<vmem>>, vector<1x4x4xf32>
    %455 = vector.shape_cast %454 : vector<1x4x4xf32> to vector<4x4xf32>
    %cst_386 = arith.constant dense<0.000000e+00> : vector<4x32xf32>
    %456 = tpu.matmul %455, %74, %cst_386 {dimension_numbers = #tpu.dot_dimension_numbers<[1], [0], [0], [1], [0, 0, 1, 1], [], []>} : vector<4x4xf32>, vector<4x32xf32>, vector<4x32xf32> -> vector<4x32xf32>
    %457 = arith.addf %453, %456 : vector<4x32xf32>
    %c3_387 = arith.constant 3 : index
    %c0_388 = arith.constant 0 : index
    %c0_389 = arith.constant 0 : index
    %458 = vector.load %arg3[%c3_387, %c0_388, %c0_389] : memref<12x4x4xf32, #tpu.memory_space<vmem>>, vector<1x4x4xf32>
    %459 = vector.shape_cast %458 : vector<1x4x4xf32> to vector<4x4xf32>
    %cst_390 = arith.constant dense<0.000000e+00> : vector<4x32xf32>
    %460 = tpu.matmul %459, %81, %cst_390 {dimension_numbers = #tpu.dot_dimension_numbers<[1], [0], [0], [1], [0, 0, 1, 1], [], []>} : vector<4x4xf32>, vector<4x32xf32>, vector<4x32xf32> -> vector<4x32xf32>
    %461 = arith.addf %457, %460 : vector<4x32xf32>
    %c4_391 = arith.constant 4 : index
    %c0_392 = arith.constant 0 : index
    %c0_393 = arith.constant 0 : index
    %462 = vector.load %arg3[%c4_391, %c0_392, %c0_393] : memref<12x4x4xf32, #tpu.memory_space<vmem>>, vector<1x4x4xf32>
    %463 = vector.shape_cast %462 : vector<1x4x4xf32> to vector<4x4xf32>
    %cst_394 = arith.constant dense<0.000000e+00> : vector<4x32xf32>
    %464 = tpu.matmul %463, %82, %cst_394 {dimension_numbers = #tpu.dot_dimension_numbers<[1], [0], [0], [1], [0, 0, 1, 1], [], []>} : vector<4x4xf32>, vector<4x32xf32>, vector<4x32xf32> -> vector<4x32xf32>
    %465 = arith.addf %461, %464 : vector<4x32xf32>
    %c5_395 = arith.constant 5 : index
    %c0_396 = arith.constant 0 : index
    %c0_397 = arith.constant 0 : index
    %466 = vector.load %arg3[%c5_395, %c0_396, %c0_397] : memref<12x4x4xf32, #tpu.memory_space<vmem>>, vector<1x4x4xf32>
    %467 = vector.shape_cast %466 : vector<1x4x4xf32> to vector<4x4xf32>
    %cst_398 = arith.constant dense<0.000000e+00> : vector<4x32xf32>
    %468 = tpu.matmul %467, %83, %cst_398 {dimension_numbers = #tpu.dot_dimension_numbers<[1], [0], [0], [1], [0, 0, 1, 1], [], []>} : vector<4x4xf32>, vector<4x32xf32>, vector<4x32xf32> -> vector<4x32xf32>
    %469 = arith.addf %465, %468 : vector<4x32xf32>
    %470 = vector.broadcast %2 : vector<4x1xf32> to vector<4x32xf32>
    %471 = arith.addf %469, %470 : vector<4x32xf32>
    %c0_399 = arith.constant 0 : index
    %c0_400 = arith.constant 0 : index
    %c12 = arith.constant 12 : index
    %c0_401 = arith.constant 0 : index
    %472 = vector.load %arg6[%c0_399, %c0_400, %c12, %c0_401] : memref<1x4x16x32xf32, #tpu.memory_space<vmem>>, vector<1x4x1x32xf32>
    %473 = vector.shape_cast %472 : vector<1x4x1x32xf32> to vector<4x32xf32>
    %474 = vector.shape_cast %471 : vector<4x32xf32> to vector<1x4x1x32xf32>
    tpu.vector_store %arg6[%c0_399, %c0_400, %c12, %c0_401], %474 {strides = array<i32>} : memref<1x4x16x32xf32, #tpu.memory_space<vmem>>, vector<1x4x1x32xf32>,
    %c6_402 = arith.constant 6 : index
    %c0_403 = arith.constant 0 : index
    %c0_404 = arith.constant 0 : index
    %475 = vector.load %arg3[%c6_402, %c0_403, %c0_404] : memref<12x4x4xf32, #tpu.memory_space<vmem>>, vector<1x4x4xf32>
    %476 = vector.shape_cast %475 : vector<1x4x4xf32> to vector<4x4xf32>
    %cst_405 = arith.constant dense<0.000000e+00> : vector<4x32xf32>
    %477 = tpu.matmul %476, %81, %cst_405 {dimension_numbers = #tpu.dot_dimension_numbers<[1], [0], [0], [1], [0, 0, 1, 1], [], []>} : vector<4x4xf32>, vector<4x32xf32>, vector<4x32xf32> -> vector<4x32xf32>
    %c7_406 = arith.constant 7 : index
    %c0_407 = arith.constant 0 : index
    %c0_408 = arith.constant 0 : index
    %478 = vector.load %arg3[%c7_406, %c0_407, %c0_408] : memref<12x4x4xf32, #tpu.memory_space<vmem>>, vector<1x4x4xf32>
    %479 = vector.shape_cast %478 : vector<1x4x4xf32> to vector<4x4xf32>
    %cst_409 = arith.constant dense<0.000000e+00> : vector<4x32xf32>
    %480 = tpu.matmul %479, %82, %cst_409 {dimension_numbers = #tpu.dot_dimension_numbers<[1], [0], [0], [1], [0, 0, 1, 1], [], []>} : vector<4x4xf32>, vector<4x32xf32>, vector<4x32xf32> -> vector<4x32xf32>
    %481 = arith.addf %477, %480 : vector<4x32xf32>
    %c8_410 = arith.constant 8 : index
    %c0_411 = arith.constant 0 : index
    %c0_412 = arith.constant 0 : index
    %482 = vector.load %arg3[%c8_410, %c0_411, %c0_412] : memref<12x4x4xf32, #tpu.memory_space<vmem>>, vector<1x4x4xf32>
    %483 = vector.shape_cast %482 : vector<1x4x4xf32> to vector<4x4xf32>
    %cst_413 = arith.constant dense<0.000000e+00> : vector<4x32xf32>
    %484 = tpu.matmul %483, %83, %cst_413 {dimension_numbers = #tpu.dot_dimension_numbers<[1], [0], [0], [1], [0, 0, 1, 1], [], []>} : vector<4x4xf32>, vector<4x32xf32>, vector<4x32xf32> -> vector<4x32xf32>
    %485 = arith.addf %481, %484 : vector<4x32xf32>
    %c9_414 = arith.constant 9 : index
    %c0_415 = arith.constant 0 : index
    %c0_416 = arith.constant 0 : index
    %486 = vector.load %arg3[%c9_414, %c0_415, %c0_416] : memref<12x4x4xf32, #tpu.memory_space<vmem>>, vector<1x4x4xf32>
    %487 = vector.shape_cast %486 : vector<1x4x4xf32> to vector<4x4xf32>
    %cst_417 = arith.constant dense<0.000000e+00> : vector<4x32xf32>
    %488 = tpu.matmul %487, %90, %cst_417 {dimension_numbers = #tpu.dot_dimension_numbers<[1], [0], [0], [1], [0, 0, 1, 1], [], []>} : vector<4x4xf32>, vector<4x32xf32>, vector<4x32xf32> -> vector<4x32xf32>
    %489 = arith.addf %485, %488 : vector<4x32xf32>
    %c10_418 = arith.constant 10 : index
    %c0_419 = arith.constant 0 : index
    %c0_420 = arith.constant 0 : index
    %490 = vector.load %arg3[%c10_418, %c0_419, %c0_420] : memref<12x4x4xf32, #tpu.memory_space<vmem>>, vector<1x4x4xf32>
    %491 = vector.shape_cast %490 : vector<1x4x4xf32> to vector<4x4xf32>
    %cst_421 = arith.constant dense<0.000000e+00> : vector<4x32xf32>
    %492 = tpu.matmul %491, %91, %cst_421 {dimension_numbers = #tpu.dot_dimension_numbers<[1], [0], [0], [1], [0, 0, 1, 1], [], []>} : vector<4x4xf32>, vector<4x32xf32>, vector<4x32xf32> -> vector<4x32xf32>
    %493 = arith.addf %489, %492 : vector<4x32xf32>
    %c11_422 = arith.constant 11 : index
    %c0_423 = arith.constant 0 : index
    %c0_424 = arith.constant 0 : index
    %494 = vector.load %arg3[%c11_422, %c0_423, %c0_424] : memref<12x4x4xf32, #tpu.memory_space<vmem>>, vector<1x4x4xf32>
    %495 = vector.shape_cast %494 : vector<1x4x4xf32> to vector<4x4xf32>
    %cst_425 = arith.constant dense<0.000000e+00> : vector<4x32xf32>
    %496 = tpu.matmul %495, %92, %cst_425 {dimension_numbers = #tpu.dot_dimension_numbers<[1], [0], [0], [1], [0, 0, 1, 1], [], []>} : vector<4x4xf32>, vector<4x32xf32>, vector<4x32xf32> -> vector<4x32xf32>
    %497 = arith.addf %493, %496 : vector<4x32xf32>
    %498 = vector.broadcast %2 : vector<4x1xf32> to vector<4x32xf32>
    %499 = arith.addf %497, %498 : vector<4x32xf32>
    %c0_426 = arith.constant 0 : index
    %c0_427 = arith.constant 0 : index
    %c13 = arith.constant 13 : index
    %c0_428 = arith.constant 0 : index
    %500 = vector.load %arg6[%c0_426, %c0_427, %c13, %c0_428] : memref<1x4x16x32xf32, #tpu.memory_space<vmem>>, vector<1x4x1x32xf32>
    %501 = vector.shape_cast %500 : vector<1x4x1x32xf32> to vector<4x32xf32>
    %502 = vector.shape_cast %499 : vector<4x32xf32> to vector<1x4x1x32xf32>
    tpu.vector_store %arg6[%c0_426, %c0_427, %c13, %c0_428], %502 {strides = array<i32>} : memref<1x4x16x32xf32, #tpu.memory_space<vmem>>, vector<1x4x1x32xf32>,
    %c0_429 = arith.constant 0 : index
    %c0_430 = arith.constant 0 : index
    %c0_431 = arith.constant 0 : index
    %503 = vector.load %arg3[%c0_429, %c0_430, %c0_431] : memref<12x4x4xf32, #tpu.memory_space<vmem>>, vector<1x4x4xf32>
    %504 = vector.shape_cast %503 : vector<1x4x4xf32> to vector<4x4xf32>
    %cst_432 = arith.constant dense<0.000000e+00> : vector<4x32xf32>
    %505 = tpu.matmul %504, %81, %cst_432 {dimension_numbers = #tpu.dot_dimension_numbers<[1], [0], [0], [1], [0, 0, 1, 1], [], []>} : vector<4x4xf32>, vector<4x32xf32>, vector<4x32xf32> -> vector<4x32xf32>
    %c1_433 = arith.constant 1 : index
    %c0_434 = arith.constant 0 : index
    %c0_435 = arith.constant 0 : index
    %506 = vector.load %arg3[%c1_433, %c0_434, %c0_435] : memref<12x4x4xf32, #tpu.memory_space<vmem>>, vector<1x4x4xf32>
    %507 = vector.shape_cast %506 : vector<1x4x4xf32> to vector<4x4xf32>
    %cst_436 = arith.constant dense<0.000000e+00> : vector<4x32xf32>
    %508 = tpu.matmul %507, %82, %cst_436 {dimension_numbers = #tpu.dot_dimension_numbers<[1], [0], [0], [1], [0, 0, 1, 1], [], []>} : vector<4x4xf32>, vector<4x32xf32>, vector<4x32xf32> -> vector<4x32xf32>
    %509 = arith.addf %505, %508 : vector<4x32xf32>
    %c2_437 = arith.constant 2 : index
    %c0_438 = arith.constant 0 : index
    %c0_439 = arith.constant 0 : index
    %510 = vector.load %arg3[%c2_437, %c0_438, %c0_439] : memref<12x4x4xf32, #tpu.memory_space<vmem>>, vector<1x4x4xf32>
    %511 = vector.shape_cast %510 : vector<1x4x4xf32> to vector<4x4xf32>
    %cst_440 = arith.constant dense<0.000000e+00> : vector<4x32xf32>
    %512 = tpu.matmul %511, %83, %cst_440 {dimension_numbers = #tpu.dot_dimension_numbers<[1], [0], [0], [1], [0, 0, 1, 1], [], []>} : vector<4x4xf32>, vector<4x32xf32>, vector<4x32xf32> -> vector<4x32xf32>
    %513 = arith.addf %509, %512 : vector<4x32xf32>
    %c3_441 = arith.constant 3 : index
    %c0_442 = arith.constant 0 : index
    %c0_443 = arith.constant 0 : index
    %514 = vector.load %arg3[%c3_441, %c0_442, %c0_443] : memref<12x4x4xf32, #tpu.memory_space<vmem>>, vector<1x4x4xf32>
    %515 = vector.shape_cast %514 : vector<1x4x4xf32> to vector<4x4xf32>
    %cst_444 = arith.constant dense<0.000000e+00> : vector<4x32xf32>
    %516 = tpu.matmul %515, %90, %cst_444 {dimension_numbers = #tpu.dot_dimension_numbers<[1], [0], [0], [1], [0, 0, 1, 1], [], []>} : vector<4x4xf32>, vector<4x32xf32>, vector<4x32xf32> -> vector<4x32xf32>
    %517 = arith.addf %513, %516 : vector<4x32xf32>
    %c4_445 = arith.constant 4 : index
    %c0_446 = arith.constant 0 : index
    %c0_447 = arith.constant 0 : index
    %518 = vector.load %arg3[%c4_445, %c0_446, %c0_447] : memref<12x4x4xf32, #tpu.memory_space<vmem>>, vector<1x4x4xf32>
    %519 = vector.shape_cast %518 : vector<1x4x4xf32> to vector<4x4xf32>
    %cst_448 = arith.constant dense<0.000000e+00> : vector<4x32xf32>
    %520 = tpu.matmul %519, %91, %cst_448 {dimension_numbers = #tpu.dot_dimension_numbers<[1], [0], [0], [1], [0, 0, 1, 1], [], []>} : vector<4x4xf32>, vector<4x32xf32>, vector<4x32xf32> -> vector<4x32xf32>
    %521 = arith.addf %517, %520 : vector<4x32xf32>
    %c5_449 = arith.constant 5 : index
    %c0_450 = arith.constant 0 : index
    %c0_451 = arith.constant 0 : index
    %522 = vector.load %arg3[%c5_449, %c0_450, %c0_451] : memref<12x4x4xf32, #tpu.memory_space<vmem>>, vector<1x4x4xf32>
    %523 = vector.shape_cast %522 : vector<1x4x4xf32> to vector<4x4xf32>
    %cst_452 = arith.constant dense<0.000000e+00> : vector<4x32xf32>
    %524 = tpu.matmul %523, %92, %cst_452 {dimension_numbers = #tpu.dot_dimension_numbers<[1], [0], [0], [1], [0, 0, 1, 1], [], []>} : vector<4x4xf32>, vector<4x32xf32>, vector<4x32xf32> -> vector<4x32xf32>
    %525 = arith.addf %521, %524 : vector<4x32xf32>
    %526 = vector.broadcast %2 : vector<4x1xf32> to vector<4x32xf32>
    %527 = arith.addf %525, %526 : vector<4x32xf32>
    %c0_453 = arith.constant 0 : index
    %c0_454 = arith.constant 0 : index
    %c14 = arith.constant 14 : index
    %c0_455 = arith.constant 0 : index
    %528 = vector.load %arg6[%c0_453, %c0_454, %c14, %c0_455] : memref<1x4x16x32xf32, #tpu.memory_space<vmem>>, vector<1x4x1x32xf32>
    %529 = vector.shape_cast %528 : vector<1x4x1x32xf32> to vector<4x32xf32>
    %530 = vector.shape_cast %527 : vector<4x32xf32> to vector<1x4x1x32xf32>
    tpu.vector_store %arg6[%c0_453, %c0_454, %c14, %c0_455], %530 {strides = array<i32>} : memref<1x4x16x32xf32, #tpu.memory_space<vmem>>, vector<1x4x1x32xf32>,
    %c6_456 = arith.constant 6 : index
    %c0_457 = arith.constant 0 : index
    %c0_458 = arith.constant 0 : index
    %531 = vector.load %arg3[%c6_456, %c0_457, %c0_458] : memref<12x4x4xf32, #tpu.memory_space<vmem>>, vector<1x4x4xf32>
    %532 = vector.shape_cast %531 : vector<1x4x4xf32> to vector<4x4xf32>
    %cst_459 = arith.constant dense<0.000000e+00> : vector<4x32xf32>
    %533 = tpu.matmul %532, %90, %cst_459 {dimension_numbers = #tpu.dot_dimension_numbers<[1], [0], [0], [1], [0, 0, 1, 1], [], []>} : vector<4x4xf32>, vector<4x32xf32>, vector<4x32xf32> -> vector<4x32xf32>
    %c7_460 = arith.constant 7 : index
    %c0_461 = arith.constant 0 : index
    %c0_462 = arith.constant 0 : index
    %534 = vector.load %arg3[%c7_460, %c0_461, %c0_462] : memref<12x4x4xf32, #tpu.memory_space<vmem>>, vector<1x4x4xf32>
    %535 = vector.shape_cast %534 : vector<1x4x4xf32> to vector<4x4xf32>
    %cst_463 = arith.constant dense<0.000000e+00> : vector<4x32xf32>
    %536 = tpu.matmul %535, %91, %cst_463 {dimension_numbers = #tpu.dot_dimension_numbers<[1], [0], [0], [1], [0, 0, 1, 1], [], []>} : vector<4x4xf32>, vector<4x32xf32>, vector<4x32xf32> -> vector<4x32xf32>
    %537 = arith.addf %533, %536 : vector<4x32xf32>
    %c8_464 = arith.constant 8 : index
    %c0_465 = arith.constant 0 : index
    %c0_466 = arith.constant 0 : index
    %538 = vector.load %arg3[%c8_464, %c0_465, %c0_466] : memref<12x4x4xf32, #tpu.memory_space<vmem>>, vector<1x4x4xf32>
    %539 = vector.shape_cast %538 : vector<1x4x4xf32> to vector<4x4xf32>
    %cst_467 = arith.constant dense<0.000000e+00> : vector<4x32xf32>
    %540 = tpu.matmul %539, %92, %cst_467 {dimension_numbers = #tpu.dot_dimension_numbers<[1], [0], [0], [1], [0, 0, 1, 1], [], []>} : vector<4x4xf32>, vector<4x32xf32>, vector<4x32xf32> -> vector<4x32xf32>
    %541 = arith.addf %537, %540 : vector<4x32xf32>
    %c9_468 = arith.constant 9 : index
    %c0_469 = arith.constant 0 : index
    %c0_470 = arith.constant 0 : index
    %542 = vector.load %arg3[%c9_468, %c0_469, %c0_470] : memref<12x4x4xf32, #tpu.memory_space<vmem>>, vector<1x4x4xf32>
    %543 = vector.shape_cast %542 : vector<1x4x4xf32> to vector<4x4xf32>
    %cst_471 = arith.constant dense<0.000000e+00> : vector<4x32xf32>
    %544 = tpu.matmul %543, %108, %cst_471 {dimension_numbers = #tpu.dot_dimension_numbers<[1], [0], [0], [1], [0, 0, 1, 1], [], []>} : vector<4x4xf32>, vector<4x32xf32>, vector<4x32xf32> -> vector<4x32xf32>
    %545 = arith.addf %541, %544 : vector<4x32xf32>
    %c10_472 = arith.constant 10 : index
    %c0_473 = arith.constant 0 : index
    %c0_474 = arith.constant 0 : index
    %546 = vector.load %arg3[%c10_472, %c0_473, %c0_474] : memref<12x4x4xf32, #tpu.memory_space<vmem>>, vector<1x4x4xf32>
    %547 = vector.shape_cast %546 : vector<1x4x4xf32> to vector<4x4xf32>
    %cst_475 = arith.constant dense<0.000000e+00> : vector<4x32xf32>
    %548 = tpu.matmul %547, %109, %cst_475 {dimension_numbers = #tpu.dot_dimension_numbers<[1], [0], [0], [1], [0, 0, 1, 1], [], []>} : vector<4x4xf32>, vector<4x32xf32>, vector<4x32xf32> -> vector<4x32xf32>
    %549 = arith.addf %545, %548 : vector<4x32xf32>
    %c11_476 = arith.constant 11 : index
    %c0_477 = arith.constant 0 : index
    %c0_478 = arith.constant 0 : index
    %550 = vector.load %arg3[%c11_476, %c0_477, %c0_478] : memref<12x4x4xf32, #tpu.memory_space<vmem>>, vector<1x4x4xf32>
    %551 = vector.shape_cast %550 : vector<1x4x4xf32> to vector<4x4xf32>
    %cst_479 = arith.constant dense<0.000000e+00> : vector<4x32xf32>
    %552 = tpu.matmul %551, %110, %cst_479 {dimension_numbers = #tpu.dot_dimension_numbers<[1], [0], [0], [1], [0, 0, 1, 1], [], []>} : vector<4x4xf32>, vector<4x32xf32>, vector<4x32xf32> -> vector<4x32xf32>
    %553 = arith.addf %549, %552 : vector<4x32xf32>
    %554 = vector.broadcast %2 : vector<4x1xf32> to vector<4x32xf32>
    %555 = arith.addf %553, %554 : vector<4x32xf32>
    %c0_480 = arith.constant 0 : index
    %c0_481 = arith.constant 0 : index
    %c15 = arith.constant 15 : index
    %c0_482 = arith.constant 0 : index
    %556 = vector.load %arg6[%c0_480, %c0_481, %c15, %c0_482] : memref<1x4x16x32xf32, #tpu.memory_space<vmem>>, vector<1x4x1x32xf32>
    %557 = vector.shape_cast %556 : vector<1x4x1x32xf32> to vector<4x32xf32>
    %558 = vector.shape_cast %555 : vector<4x32xf32> to vector<1x4x1x32xf32>
    tpu.vector_store %arg6[%c0_480, %c0_481, %c15, %c0_482], %558 {strides = array<i32>} : memref<1x4x16x32xf32, #tpu.memory_space<vmem>>, vector<1x4x1x32xf32>,
    return
  }
  func.func @transform_0(%arg0: i32, %arg1: i32) -> (i32, i32, i32, i32) {
    %c0_i32 = arith.constant 0 : i32
    %c0_i32_0 = arith.constant 0 : i32
    %c0_i32_1 = arith.constant 0 : i32
    %c0_i32_2 = arith.constant 0 : i32
    return %arg0, %c0_i32, %c0_i32_0, %c0_i32_1 : i32, i32, i32, i32
  }
  func.func @transform_1(%arg0: i32, %arg1: i32) -> (i32, i32, i32) {
    %c0_i32 = arith.constant 0 : i32
    %c0_i32_0 = arith.constant 0 : i32
    %c0_i32_1 = arith.constant 0 : i32
    %c0_i32_2 = arith.constant 0 : i32
    return %c0_i32, %c0_i32_0, %c0_i32_1 : i32, i32, i32
  }
  func.func @transform_2(%arg0: i32, %arg1: i32) -> (i32, i32) {
    %c0_i32 = arith.constant 0 : i32
    %c0_i32_0 = arith.constant 0 : i32
    %c0_i32_1 = arith.constant 0 : i32
    return %c0_i32, %c0_i32_0 : i32, i32
  }
  func.func @transform_3(%arg0: i32, %arg1: i32) -> (i32, i32) {
    %c0_i32 = arith.constant 0 : i32
    %c0_i32_0 = arith.constant 0 : i32
    %c0_i32_1 = arith.constant 0 : i32
    return %c0_i32, %c0_i32_0 : i32, i32
  }
  func.func @transform_4(%arg0: i32, %arg1: i32) -> (i32, i32, i32, i32) {
    %c0_i32 = arith.constant 0 : i32
    %c0_i32_0 = arith.constant 0 : i32
    %c0_i32_1 = arith.constant 0 : i32
    return %arg0, %c0_i32, %arg1, %c0_i32_0 : i32, i32, i32, i32
  }
}

</mosaic_0001>

<bundles_post_ra>
// kernel: tpu_custom_call.1
= control target key start
LH: loop header
LB: loop body
LE: loop exit
PB: predicated region body
PF: predicated region fallthrough
CT: control target
= control target key end

     0   :  { %s12120_s0 = inlined_call_operand.hbm [shape: f32[2,4,16,16], index: 0, kind: input, shape index: {}]   ;;  %s12121_s1 = inlined_call_operand.vmem [shape: f32[12,4,4], index: 1, kind: input, shape index: {}]   ;;  %s12122_s2 = inlined_call_operand.vmem [shape: f32[4,1], index: 2, kind: input, shape index: {}]   ;;  %s12123_s3 = inlined_call_operand.vmem [shape: f32[16,34], index: 3, kind: input, shape index: {}]   ;;  %s12124_s4 = inlined_call_operand.hbm [shape: f32[2,4,32,32], index: 4, kind: output, shape index: {}]  }
   0x1   :  { %12128 = sst [smem:[#allocation12_spill]] %s12120_s0 }
   0x2   :  { %9 = vsyncpa [#allocation3], 0 }
   0x3   :  { %11 = vsyncpa [#allocation3 + $0x1], 0 }
   0x4   :  { %12 = vsyncpa [#allocation4], 0 }
   0x5   :  { %14 = vsyncpa [#allocation4 + $0x1], 0  ;;  %s10600_s15 = smov 0   ;;  %s10602_s16 = smov 0  }
   0x6   :  { %s10604_s17 = smov 0   ;;  %s10606_s18 = smov 0  }
   0x7   :  { %s10608_s19 = smov 0   ;;  %s10610_s20 = smov 0  }
   0x8   :  { %s10612_s21 = smov 0   ;;  %s10614_s22 = smov 0  }
   0x9   :  { %s10616_s23 = smov 0   ;;  %s10618_s24 = smov 0  }
   0xa   :  { %s10620_s25 = smov 0  }
   0xb LB: > { %s9146_s26 = sadd.s32 4294967295, %s10556_s25   ;;  %s9147_s27 = sadd.s32 4294967294, %s10556_s25   ;;  %s10556_s25 = sphi %s10620_s25, %s20_s25   ;;  %s10552_s24 = sphi %s10618_s24, %s12153_s24   ;;  %s10548_s23 = sphi %s10616_s23, %s12152_s23   ;;  %s10544_s22 = sphi %s10614_s22, %s12151_s22   ;;  %s10540_s21 = sphi %s10612_s21, %s12150_s21   ;;  %s10536_s20 = sphi %s10610_s20, %s12149_s20   ;;  %s10532_s19 = sphi %s10608_s19, %s12148_s19   ;;  %s10528_s18 = sphi %s10606_s18, %s12147_s18   ;;  %s10524_s17 = sphi %s10604_s17, %s12146_s17   ;;  %s10520_s16 = sphi %s10602_s16, %s12145_s16   ;;  %s10516_s15 = sphi %s10600_s15, %s12144_s15  }
   0xc   : > { %s29_s28 = sadd.s32 1, %s10548_s23  ;;  %s32_s29 = sadd.s32 1, %s10552_s24 }
   0xd   : > { %p30_p0 = scmp.ge.s32.totalorder %s29_s28, 2  ;;  %s39_s30 = sadd.s32 1, %s10536_s20 }
   0xe   : > { %p46_p1 = scmp.ne.s32.totalorder %s10536_s20, %s10532_s19  ;;  %p47_p2 = scmp.eq.s32.totalorder %s10556_s25, 0 }
   0xf   : > { %s12155_s28 = smov (%p30_p0, %s29_s28), 0  ;;  %s12157_s29 = smov (!%p30_p0, %s32_s29), %s10552_s24 }
  0x10   : > { %12129 = sst [smem:[#allocation10_spill]] %s12155_s28  ;;  %p10664_p3 = por %p47_p2, %p46_p1 }
  0x11   : > { %p52_p4 = scmp.ne.s32.totalorder %s10532_s19, %s10528_s18  ;;  %p34_p5 = scmp.ge.s32.totalorder %s12157_s29, 2 }
  0x12   : > { %p53_p6 = scmp.eq.s32.totalorder %s9146_s26, 0  ;;  %s126_s6 = ssub.s32 %s10548_s23, %s12155_s28 }
  0x13   : > { %s130_s7 = sadd.s32 1, %s10524_s17  ;;  %s12159_s29 = smov (%p34_p5, %s12157_s29), 0 }
  0x14   : > { %12131 = sst [smem:[#allocation11_spill]] %s12159_s29  ;;  %p10674_p7 = por %p53_p6, %p52_p4 }
  0x15   : > { %p140_p8 = scmp.ne.s32.totalorder %s10524_s17, %s10520_s16  ;;  %s36_s9 = ssub.s32 %s10552_s24, %s12159_s29 }
  0x16   : > { %p141_p9 = scmp.eq.s32.totalorder %s9146_s26, 3  ;;  %p37_p10 = scmp.eq.s32.totalorder %s36_s9, 0 }
  0x17   : > { %s127_s10 = sor.u32 %s126_s6, %s36_s9  ;;  %p146_p13 = scmp.ne.s32.totalorder %s10520_s16, %s10516_s15 }
  0x18   : > { %p128_p11 = scmp.eq.s32.totalorder %s127_s10, 0  ;;  %p10682_p12 = por %p141_p9, %p140_p8 }
  0x19   : > { %s10687_s12 = scalar_select %p37_p10, %s10536_s20, %s39_s30  }
  0x1a   : > { %s12133_s11 = scalar_select %p10682_p12, 1, 0 }
  0x1b   : > { %s10690_s13 = scalar_select %p128_p11, %s10524_s17, %s130_s7  }
  0x1c   : > { %p147_p0 = scmp.eq.s32.totalorder %s9147_s27, 3  ;;  %p10325_p1 = scmp.lt.s32.totalorder %s10556_s25, 4 }
  0x1d   : > { %s176_s18 = sand.u32 1, %s10536_s20   ;;  %s9500_s6 = sshll.u32 %s10552_s24, 10 }
  0x1e   : > { %p10695_p2 = por %p147_p0, %p146_p13  ;;  %s9150_s26 = sshll.u32 %s176_s18, 6 }
  0x1f   : > { %s12135_s0 = sld [smem:[#allocation12_spill]]  ;;  %s180_s30 = scalar_lea.vmem [#allocation2], %s9150_s26 }
  0x20   : > { %s12134_s14 = scalar_select %p10695_p2, 1, 0 }
  0x21   : > { %s187_s7 = sshll.u32 %s180_s30, 4  ;;  %p10710_p4 = pnand %p10325_p1, %p10664_p3  ;;  %s10706_s7 = int_to_ptr.vmem [resolvable:$true] %s187_s7 }
  0x22   : > { %s10715_s28 = scalar_lea.sflag [#allocation3], %s176_s18 }
  0x23   : > { %p10434_p8 = pneg %p10710_p4 }
  0x25   : > { %s10704_s29 = scalar_lea.hbm %s12135_s0, %s9500_s6  ;;  %s10437_s5 = scalar_lea.hbm %s12135_s0, 2048 }
  0x26   : > { %s10432_s6 = scalar_lea.hbm %s10704_s29, 1024  ;;  %p10438_p3 = scmp.lt.u32.totalorder %s10704_s29, %s12135_s0 }
  0x27   : > { %p10433_p6 = scmp.ne.s32.totalorder %s10704_s29, %s10432_s6  ;;  %p10439_p11 = scmp.lt.u32.totalorder %s10437_s5, %s10432_s6 }
  0x28   : > { %p10441_p0 = scmp.lt.u32.totalorder %s10432_s6, %s10704_s29 }
  0x29   : > { %p10435_p9 = pnand %p10434_p8, %p10433_p6  ;;  %p10440_p13 = por %p10439_p11, %p10438_p3 }
  0x2b   : > { %p10436_p10 = pneg %p10435_p9  ;;  %p10442_p1 = por %p10441_p0, %p10440_p13 }
  0x2d   : > { %p10443_p5 = pnand %p10442_p1, %p10436_p10 }
  0x2f   : > { %10446 = shalt.err (!%p10443_p5)
}
  0x30   : > { %s10447_s18 = scalar_lea.vmem %s10706_s7, 1024  ;;  %s10558_s26 = smov [#allocation2]  }
  0x31   : > { %p10448_p6 = scmp.ne.s32.totalorder %s10706_s7, %s10447_s18  ;;  %s10452_s9 = sshll.u32 %s10558_s26, 4  ;;  %s10453_s9 = int_to_ptr.vmem [resolvable:$false] %s10452_s9 }
  0x32   : > { %s10454_s10 = scalar_lea.vmem %s10453_s9, 2048  ;;  %p10455_p12 = scmp.lt.s32.totalorder %s10706_s7, %s10453_s9 }
  0x33   : > { %p10450_p9 = pnand %p10448_p6, %p10434_p8  ;;  %p10456_p3 = scmp.lt.s32.totalorder %s10454_s10, %s10447_s18 }
  0x35   : > { %p10451_p2 = pneg %p10450_p9  ;;  %p10457_p11 = por %p10456_p3, %p10455_p12 }
  0x37   : > { %p10458_p13 = pnand %p10457_p11, %p10451_p2 }
  0x39   : > { %10461 = shalt.err (!%p10458_p13)
}
  0x3a   : > { %s10559_s6 = smov 128   ;;  %s10560_s5 = smov 8  }
  0x3b   : > { %10320 = dma.hbm_to_vmem [thread:$0]  (!%p10710_p4), %s10704_s29, 1024, %s10706_s7, %s10715_s28, %s10559_s6, %s10559_s6, %s10560_s5  }
  0x3c   : > { %p195_p5 = scmp.lt.s32.totalorder %s10556_s25, 5  ;;  %p12137_p8 = scmp.ge.s32.totalorder %s10556_s25, 1 }
  0x3e   : > { %p196_p10 = pnand %p12137_p8, %p195_p5 }
  0x3f   : > { %s201_s30 = sand.u32 (!%p196_p10), 1, %s10532_s19  }
  0x40   : > { %199 = sbr.rel (%p196_p10) target bundleno = 846 (0x34e), region = 36  ;;  %s9154_s18 = sshll.u32 (!%p196_p10), %s201_s30, 6 }
  0x41   : > { %s202_s26 = scalar_lea.sflag (!%p196_p10), [#allocation3], %s201_s30  ;;  %s10747_s9 = scalar_lea.vmem (!%p196_p10), [#allocation2], %s9154_s18 }
  0x47   : > { %10507 = dma.done.wait (%p10674_p7), %s202_s26, 1024  }
  0x48   : > { %10509 = vsyncadd (%p10674_p7), %s202_s26, 4294966272  ;;  %s9156_s27 = sshll.u32 %s10540_s21, 3  ;;  %v10561_v0 = vmov 0.0|0.0   ;;  %vm10562_vm0 = vmmov 0   ;;  %v10563_v1 = vmov 0.0   ;;  %vm261_vm1 = vcmask 1041409  }
  0x49   : > { %10280 = vmatprep.subr.bf16.mxu1 %v10561_v0  ;;  %9738 = vmatprep.mubr.msk.f32.mxu1 %vm10562_vm0, %v10563_v1  ;;  %s10758_s28 = scalar_lea.vmem %s10747_s9, %s9156_s27 [#allocation2]  ;;  %s235_s29 = sadd.s32 4294967295, %s9156_s27  ;;  %vm264_vm2 = vcmask 1042434   ;;  %vm267_vm3 = vcmask 1043459   ;;  %vm269_vm4 = vcmask 130048   ;;  %v232_v2 = vld [vmem:[%s12123_s3] sm:$0xff]  ;;  %v233_v3 = vld [vmem:[%s12123_s3 + $0x8] sm:$0xff] }
  0x4a   : > { %10277 = vmatprep.subr.bf16.mxu0 %v10561_v0  ;;  %9731 = vmatprep.mubr.msk.f32.mxu0 %vm10562_vm0, %v10563_v1  ;;  %p236_p7 = scmp.gt.s32.totalorder %s235_s29, 0  ;;  %p9157_p12 = scmp.lt.s32.totalorder %s235_s29, 15  ;;  %v343_v4 = vld [vmem:[%s10758_s28] sm:$0x1]  ;;  %v10778_v5 = vpack.c.bf16 %v233_v3, %v232_v2  ;;  %v344_v6 = vld [vmem:[%s10758_s28 + $0x10] sm:$0x1] }
  0x4b   : > { %p245_p2 = scmp.ge.s32.totalorder %s235_s29, 0  ;;  %p246_p4 = scmp.le.s32.totalorder %s235_s29, 15  ;;  %v345_v7 = vld [vmem:[%s10758_s28 + $0x20] sm:$0x1]  ;;  %v346_v8 = vld [vmem:[%s10758_s28 + $0x30] sm:$0x1] }
  0x4c   : > { %s12161_s29 = smov (!%p236_p7, %s235_s29), 0  ;;  %s10767_s7 = sadd.s32 8, %s9156_s27  ;;  %v351_v9 = vrot.slane %v344_v6, 7  ;;  %v353_v10 = vrot.slane %v345_v7, 6  ;;  %v355_v11 = vrot.slane %v346_v8, 5  ;;  %10282 = vmatpush3.bf16.msra.mxu1 %v10778_v5  ;;  %10279 = vmatpush3.bf16.msra.mxu0 %v10778_v5  ;;  %vm1158_vm5 = vcmask 1043456  }
  0x4d   : > { %p10763_p0 = pnand %p246_p4, %p245_p2  ;;  %s12163_s29 = smov (!%p9157_p12, %s12161_s29), 15  ;;  %10283 = vmatprep.subr.bf16.mxu0 %v10561_v0  ;;  %v9166_v18 = vld [vmem:[%s10758_s28 + $0x1] sm:$0x1]  ;;  %v9167_v19 = vld [vmem:[%s10758_s28 + $0x11] sm:$0x1]  ;;  %10286 = vmatprep.subr.bf16.mxu1 %v10561_v0  ;;  %vm1154_vm6 = vcmask 31744  }
  0x4e   : > { %s240_s26 = scalar_lea.vmem %s10747_s9, %s12163_s29 [#allocation2]  ;;  %p1046_p1 = scmp.gt.s32.totalorder %s10767_s7, 0  ;;  %v352_v16 = vsel %vm261_vm1, %v351_v9, %v343_v4  ;;  %v9168_v20 = vld [vmem:[%s10758_s28 + $0x21] sm:$0x1]  ;;  %v9169_v25 = vld [vmem:[%s10758_s28 + $0x31] sm:$0x1]  ;;  %v439_v30 = vrot.slane %v9167_v19, 7 }
  0x4f   : > { %s9162_s18 = scalar_select %p10763_p0, 0, 1  ;;  %v241_v12 = vld [vmem:[%s240_s26] sm:$0x1]  ;;  %v242_v13 = vld [vmem:[%s240_s26 + $0x10] sm:$0x1]  ;;  %v354_v21 = vsel %vm264_vm2, %v353_v10, %v352_v16 }
  0x50   : > { %v243_v14 = vld [vmem:[%s240_s26 + $0x20] sm:$0x1]  ;;  %v244_v15 = vld [vmem:[%s240_s26 + $0x30] sm:$0x1]  ;;  %v9172_v26 = vld [vmem:[%s10758_s28 + $0x2] sm:$0x1]  ;;  %v356_v28 = vsel %vm267_vm3, %v355_v11, %v354_v21  ;;  %v440_v40 = vsel %vm261_vm1, %v439_v30, %v9166_v18 }
  0x51   : > { %s250_s27 = scvt.s32.f32 %s9162_s18  ;;  %v9173_v27 = vld [vmem:[%s10758_s28 + $0x12] sm:$0x1]  ;;  %v441_v31 = vrot.slane %v9168_v20, 6  ;;  %v9174_v32 = vld [vmem:[%s10758_s28 + $0x22] sm:$0x1]  ;;  %9739 = vmatmul.mubr.msk.f32.vlgmr.msra.gmra.mrb[0].mxu1 %vm269_vm4, %v356_v28  ;;  %v443_v36 = vrot.slane %v9169_v25, 5 }
  0x52   : > { %v9175_v33 = vld [vmem:[%s10758_s28 + $0x32] sm:$0x1]  ;;  %v527_v37 = vrot.slane %v9173_v27, 7  ;;  %v9178_v38 = vld [vmem:[%s10758_s28 + $0x3] sm:$0x1]  ;;  %10288 = vmatpush3.bf16.msra.mxu1 %v10778_v5  ;;  %9752 = vmatprep.mubr.msk.f32.mxu1 %vm10562_vm0, %v10563_v1  ;;  %v529_v41 = vrot.slane %v9174_v32, 6 }
  0x53   : > { %v251_v17 = vstv %s250_s27  ;;  %v531_v42 = vrot.slane %v9175_v33, 5  ;;  %v9179_v43 = vld [vmem:[%s10758_s28 + $0x13] sm:$0x1]  ;;  %v9180_v46 = vld [vmem:[%s10758_s28 + $0x23] sm:$0x1]  ;;  %10292 = vmatprep.subr.bf16.mxu1 %v10561_v0  ;;  %s10815_s29 = scalar_select %p1046_p1, %s10767_s7, 0  ;;  %v442_v50 = vsel %vm264_vm2, %v441_v31, %v440_v40 }
  0x54   : > { %v252_v22 = vmul.f32 %v251_v17, %v241_v12  ;;  %v253_v23 = vmul.f32 %v251_v17, %v242_v13  ;;  %v254_v24 = vmul.f32 %v251_v17, %v243_v14  ;;  %v255_v29 = vmul.f32 %v251_v17, %v244_v15  ;;  %v9181_v47 = vld [vmem:[%s10758_s28 + $0x33] sm:$0x1]  ;;  %v9184_v53 = vld [vmem:[%s10758_s28 + $0x4] sm:$0x1]  ;;  %v9185_v54 = vld [vmem:[%s10758_s28 + $0x14] sm:$0x1] }
  0x55   : > { %v528_v45 = vsel %vm261_vm1, %v527_v37, %v9172_v26  ;;  %v615_v48 = vrot.slane %v9179_v43, 7  ;;  %v617_v52 = vrot.slane %v9180_v46, 6  ;;  %p9207_p6 = scmp.lt.s32.totalorder %s10767_s7, 15  ;;  %v619_v58 = vrot.slane %v9181_v47, 5  ;;  %v9186_v59 = vld [vmem:[%s10758_s28 + $0x24] sm:$0x1] }
  0x56   : > { %v260_v34 = vrot.slane %v253_v23, 7  ;;  %v263_v35 = vrot.slane %v254_v24, 6  ;;  %v266_v39 = vrot.slane %v255_v29, 5  ;;  %v530_v51 = vsel %vm264_vm2, %v529_v41, %v528_v45  ;;  %v9187_v60 = vld [vmem:[%s10758_s28 + $0x34] sm:$0x1]  ;;  %p1055_p9 = scmp.ge.s32.totalorder %s10767_s7, 0 }
  0x57   : > { %v532_v56 = vsel %vm267_vm3, %v531_v42, %v530_v51  ;;  %v616_v57 = vsel %vm261_vm1, %v615_v48, %v9178_v38  ;;  %v703_v61 = vrot.slane %v9185_v54, 7  ;;  %v705_v62 = vrot.slane %v9186_v59, 6  ;;  %v9190_v2 = vld [vmem:[%s10758_s28 + $0x5] sm:$0x1]  ;;  %p1056_p3 = scmp.le.s32.totalorder %s10767_s7, 15  ;;  %s12165_s29 = smov (!%p9207_p6, %s10815_s29), 15 }
  0x58   : > { %v262_v44 = vsel %vm261_vm1, %v260_v34, %v252_v22  ;;  %9753 = vmatmul.mubr.msk.f32.vlgmr.msra.gmra.mrb[2].mxu1 %vm269_vm4, %v532_v56  ;;  %v707_v63 = vrot.slane %v9187_v60, 5  ;;  %v444_v3 = vsel %vm267_vm3, %v443_v36, %v442_v50  ;;  %v618_v4 = vsel %vm264_vm2, %v617_v52, %v616_v57  ;;  %v9191_v6 = vld [vmem:[%s10758_s28 + $0x15] sm:$0x1]  ;;  %v9192_v7 = vld [vmem:[%s10758_s28 + $0x25] sm:$0x1]  ;;  %s1050_s7 = scalar_lea.vmem %s10747_s9, %s12165_s29 [#allocation2]  ;;  %s10564_s10 = smov 127  }
  0x59   : > { %v265_v49 = vsel %vm264_vm2, %v263_v35, %v262_v44  ;;  %v9193_v8 = vld [vmem:[%s10758_s28 + $0x35] sm:$0x1]  ;;  %10294 = vmatpush3.bf16.msra.mxu1 %v10778_v5  ;;  %v704_v9 = vsel %vm261_vm1, %v703_v61, %v9184_v53  ;;  %v791_v10 = vrot.slane %v9191_v6, 7  ;;  %v793_v11 = vrot.slane %v9192_v7, 6  ;;  %v9196_v13 = vld [vmem:[%s10758_s28 + $0x6] sm:$0x1]  ;;  %9766 = vmatprep.mubr.msk.f32.mxu1 %vm10562_vm0, %v10563_v1  ;;  %p10859_p11 = pnand %p1056_p3, %p1055_p9 }
  0x5a   : > { %v268_v55 = vsel %vm267_vm3, %v266_v39, %v265_v49  ;;  %v795_v12 = vrot.slane %v9193_v8, 5  ;;  %v706_v14 = vsel %vm264_vm2, %v705_v62, %v704_v9  ;;  %10298 = vmatprep.subr.bf16.mxu1 %v10561_v0  ;;  %v9197_v15 = vld [vmem:[%s10758_s28 + $0x16] sm:$0x1]  ;;  %v9198_v16 = vld [vmem:[%s10758_s28 + $0x26] sm:$0x1]  ;;  %v620_v24 = vsel %vm267_vm3, %v619_v58, %v618_v4  ;;  %s10565_s30 = smov 126  }
  0x5b   : > { %9732 = vmatmul.mubr.msk.f32.vlgmr.msra.gmra.mrb[0].mxu0 %vm269_vm4, %v268_v55  ;;  %v9199_v17 = vld [vmem:[%s10758_s28 + $0x36] sm:$0x1]  ;;  %v708_v18 = vsel %vm267_vm3, %v707_v63, %v706_v14  ;;  %v792_v19 = vsel %vm261_vm1, %v791_v10, %v9190_v2  ;;  %v879_v20 = vrot.slane %v9197_v15, 7  ;;  %v881_v21 = vrot.slane %v9198_v16, 6  ;;  %v9202_v22 = vld [vmem:[%s10758_s28 + $0x7] sm:$0x1] }
  0x5c   : > { %10285 = vmatpush3.bf16.msra.mxu0 %v10778_v5  ;;  %9745 = vmatprep.mubr.msk.f32.mxu0 %vm10562_vm0, %v10563_v1  ;;  %v9203_v23 = vld [vmem:[%s10758_s28 + $0x17] sm:$0x1]  ;;  %v883_v25 = vrot.slane %v9199_v17, 5  ;;  %v9204_v26 = vld [vmem:[%s10758_s28 + $0x27] sm:$0x1]  ;;  %v794_v29 = vsel %vm264_vm2, %v793_v11, %v792_v19  ;;  %vm1660_vm7 = vcmask 253952  }
  0x5d   : > { %10289 = vmatprep.subr.bf16.mxu0 %v10561_v0  ;;  %v9205_v27 = vld [vmem:[%s10758_s28 + $0x37] sm:$0x1]  ;;  %v967_v28 = vrot.slane %v9203_v23, 7  ;;  %9767 = vmatmul.mubr.msk.f32.vlgmr.msra.gmra.mrb[4].mxu1 %vm269_vm4, %v708_v18  ;;  %v880_v30 = vsel %vm261_vm1, %v879_v20, %v9196_v13  ;;  %v969_v31 = vrot.slane %v9204_v26, 6  ;;  %s9212_s28 = scalar_select %p10859_p11, 0, 1  ;;  %v796_v37 = vsel %vm267_vm3, %v795_v12, %v794_v29 }
  0x5e   : > { %10300 = vmatpush3.bf16.msra.mxu1 %v10778_v5  ;;  %9780 = vmatprep.mubr.msk.f32.mxu1 %vm10562_vm0, %v10563_v1  ;;  %v882_v32 = vsel %vm264_vm2, %v881_v21, %v880_v30  ;;  %v971_v35 = vrot.slane %v9205_v27, 5  ;;  %v1051_v36 = vld [vmem:[%s1050_s7] sm:$0x1]  ;;  %v1052_v38 = vld [vmem:[%s1050_s7 + $0x10] sm:$0x1]  ;;  %v10566_v13 = vmov 0  }
  0x5f   : > { %9746 = vmatmul.mubr.msk.f32.vlgmr.msra.gmra.mrb[2].mxu0 %vm269_vm4, %v444_v3  ;;  %v968_v33 = vsel %vm261_vm1, %v967_v28, %v9202_v22  ;;  %v884_v34 = vsel %vm267_vm3, %v883_v25, %v882_v32  ;;  %10304 = vmatprep.subr.bf16.mxu1 %v10561_v0  ;;  %v1053_v39 = vld [vmem:[%s1050_s7 + $0x20] sm:$0x1]  ;;  %v1054_v40 = vld [vmem:[%s1050_s7 + $0x30] sm:$0x1]  ;;  %s1060_s9 = scvt.s32.f32 %s9212_s28  ;;  %v9222_v59 = vld [vmem:[%s12121_s1 + $0xc] sm:$0xf] }
  0x60   : > { %10291 = vmatpush3.bf16.msra.mxu0 %v10778_v5  ;;  %9759 = vmatprep.mubr.msk.f32.mxu0 %vm10562_vm0, %v10563_v1  ;;  %v970_v41 = vsel %vm264_vm2, %v969_v31, %v968_v33  ;;  %v1148_v54 = vld [vmem:[%s12121_s1] sm:$0xf]  ;;  %v9228_v16 = vld [vmem:[%s12121_s1 + $0x14] sm:$0xf]  ;;  %v9214_v18 = vld [vmem:[%s12121_s1 + $0x4] sm:$0xf] }
  0x61   : > { %10295 = vmatprep.subr.bf16.mxu0 %v10561_v0  ;;  %9781 = vmatmul.mubr.msk.f32.vlgmr.msra.gmra.mrb[6].mxu1 %vm269_vm4, %v884_v34  ;;  %v1061_v42 = vstv %s1060_s9  ;;  %v234_v14 = vld [vmem:[%s12122_s2] sm:$0xf]  ;;  %v9231_v20 = vld [vmem:[%s12121_s1 + $0x18] sm:$0xf]  ;;  %v9219_v21 = vld [vmem:[%s12121_s1 + $0x8] sm:$0xf] }
  0x62   : > { %10306 = vmatpush3.bf16.msra.mxu1 %v10778_v5  ;;  %9794 = vmatprep.mubr.msk.f32.mxu1 %vm10562_vm0, %v10563_v1  ;;  %v1062_v43 = vmul.f32 %v1061_v42, %v1051_v36  ;;  %v1063_v44 = vmul.f32 %v1061_v42, %v1052_v38  ;;  %v1064_v45 = vmul.f32 %v1061_v42, %v1053_v39  ;;  %v9240_v23 = vld [vmem:[%s12121_s1 + $0x24] sm:$0xf]  ;;  %v9246_v26 = vld [vmem:[%s12121_s1 + $0x2c] sm:$0xf]  ;;  %v9232_v27 = vld [vmem:[%s12121_s1 + $0x1c] sm:$0xf] }
  0x63   : > { %9760 = vmatmul.mubr.msk.f32.vlgmr.msra.gmra.mrb[4].mxu0 %vm269_vm4, %v620_v24  ;;  %v1065_v46 = vmul.f32 %v1061_v42, %v1054_v40  ;;  %9802 = vmatprep.subr.mxu1 %v10563_v1  ;;  %v9225_v24 = vld [vmem:[%s12121_s1 + $0x10] sm:$0xf]  ;;  %v2164_v28 = vld [vmem:[%s12121_s1] sm:$0xf]  ;;  %v9257_v31 = vld [vmem:[%s12121_s1 + $0xc] sm:$0xf] }
  0x64   : > { %10297 = vmatpush3.bf16.msra.mxu0 %v10778_v5  ;;  %9773 = vmatprep.mubr.msk.f32.mxu0 %vm10562_vm0, %v10563_v1  ;;  %v1070_v47 = vrot.slane %v1063_v44, 7  ;;  %v1072_v48 = vrot.slane %v1064_v45, 6  ;;  %v9237_v29 = vld [vmem:[%s12121_s1 + $0x20] sm:$0xf]  ;;  %v9243_v32 = vld [vmem:[%s12121_s1 + $0x28] sm:$0xf] }
  0x65   : > { %10301 = vmatprep.subr.bf16.mxu0 %v10561_v0  ;;  %v972_v0 = vsel %vm267_vm3, %v971_v35, %v970_v41  ;;  %v1074_v49 = vrot.slane %v1065_v46, 5  ;;  %10431 = vset.pattern.permute.xlu0 %v10566_v13  ;;  %v9263_v33 = vld [vmem:[%s12121_s1 + $0x14] sm:$0xf]  ;;  %v9249_v34 = vld [vmem:[%s12121_s1 + $0x4] sm:$0xf] }
  0x66   : > { %v1071_v50 = vsel %vm261_vm1, %v1070_v47, %v1062_v43  ;;  %v9266_v35 = vld [vmem:[%s12121_s1 + $0x18] sm:$0xf]  ;;  %v9254_v36 = vld [vmem:[%s12121_s1 + $0x8] sm:$0xf]  ;;  %v9260_v39 = vld [vmem:[%s12121_s1 + $0x10] sm:$0xf] }
  0x67   : > { %9774 = vmatmul.mubr.msk.f32.vlgmr.msra.gmra.mrb[6].mxu0 %vm269_vm4, %v796_v37  ;;  %v1073_v51 = vsel %vm264_vm2, %v1072_v48, %v1071_v50  ;;  %v9275_v37 = vld [vmem:[%s12121_s1 + $0x24] sm:$0xf]  ;;  %v9281_v40 = vld [vmem:[%s12121_s1 + $0x2c] sm:$0xf]  ;;  %v9267_v41 = vld [vmem:[%s12121_s1 + $0x1c] sm:$0xf] }
  0x68   : > { %10303 = vmatpush3.bf16.msra.mxu0 %v10778_v5  ;;  %9787 = vmatprep.mubr.msk.f32.mxu0 %vm10562_vm0, %v10563_v1  ;;  %v1075_v5 = vsel %vm267_vm3, %v1074_v49, %v1073_v51  ;;  %v3139_v42 = vld [vmem:[%s12121_s1] sm:$0xf]  ;;  %v9292_v45 = vld [vmem:[%s12121_s1 + $0xc] sm:$0xf]  ;;  %v9278_v46 = vld [vmem:[%s12121_s1 + $0x28] sm:$0xf] }
  0x69   : > { %9797 = vmatprep.subr.mxu0 %v10563_v1  ;;  %9795 = vmatmul.mubr.msk.f32.vlgmr.msra.gmra.mrb[8].mxu1 %vm269_vm4, %v1075_v5  ;;  %v9272_v43 = vld [vmem:[%s12121_s1 + $0x20] sm:$0xf]  ;;  %v9284_v47 = vld [vmem:[%s12121_s1 + $0x4] sm:$0xf]  ;;  %v9301_v48 = vld [vmem:[%s12121_s1 + $0x18] sm:$0xf] }
  0x6a   : > { %9804 = vmatprep.mubr.msk.f32.mxu1 %vm10562_vm0, %v10563_v1  ;;  %v9289_v49 = vld [vmem:[%s12121_s1 + $0x8] sm:$0xf]  ;;  %v9310_v50 = vld [vmem:[%s12121_s1 + $0x24] sm:$0xf]  ;;  %v9295_v51 = vld [vmem:[%s12121_s1 + $0x10] sm:$0xf] }
  0x6b   : > { %9788 = vmatmul.mubr.msk.f32.vlgmr.msra.gmra.mrb[8].mxu0 %vm269_vm4, %v972_v0  ;;  %v9298_v0 = vld [vmem:[%s12121_s1 + $0x14] sm:$0xf]  ;;  %v5089_v13 = vld [vmem:[%s12121_s1] sm:$0xf] }
  0x6c   : > { %9799 = vmatprep.mubr.msk.f32.mxu0 %vm10562_vm0, %v10563_v1 }
 0x124   : > { %v10915_v52 = vpop.f32.mrb[0].mxu1 }
 0x125   : > { %1467 = vrot.lane.b32.xlu1 %v10915_v52, %s10564_s10  ;;  %v9740_v53 = vpop.f32.mrb[1].mxu1 }
 0x126   : > { %v9302_v53 = vld [vmem:[%s12121_s1 + $0x1c] sm:$0xf] }
 0x129   : > { %1547 = vrot.lane.b32.xlu1 %v10915_v52, %s10565_s30 }
 0x12b   : > { %v10924_v56 = vpop.f32.mrb[2].mxu1 }
 0x12c   : > { %v9754_v58 = vpop.f32.mrb[3].mxu1 }
 0x12d   : > { %v9313_v58 = vld [vmem:[%s12121_s1 + $0x28] sm:$0xf] }
 0x12e   : > { %v338_v55 = vpop.f32.mrb[0].mxu0 }
 0x12f   : > { %1152 = vrot.lane.b32.xlu0 %v338_v55, %s10564_s10  ;;  %v9733_v57 = vpop.f32.mrb[1].mxu0  ;;  %9803 = vmatpush3.msk.msra.mxu1 %vm1158_vm5, %v338_v55 }
 0x130   : > { %9812 = vmatprep.subr.mxu1 %v10563_v1  ;;  %9805 = vmatmul.mubr.msk.f32.vlgmr.msra.gmra.mrb[10].mxu1 %vm1154_vm6, %v1148_v54  ;;  %v10943_v62 = vpop.f32.mrb[4].mxu1  ;;  %v4114_v54 = vld [vmem:[%s12121_s1] sm:$0xf]  ;;  %v9327_v57 = vld [vmem:[%s12121_s1 + $0xc] sm:$0xf] }
 0x131   : > { %9813 = vmatpush3.msk.msra.mxu1 %vm1158_vm5, %v10915_v52  ;;  %9814 = vmatprep.mubr.msk.f32.mxu1 %vm10562_vm0, %v10563_v1  ;;  %v9768_v63 = vpop.f32.mrb[5].mxu1 }
 0x132   : > { %v10937_v60 = vpop.f32.mrb[2].mxu0  ;;  %9822 = vmatprep.subr.mxu1 %v10563_v1  ;;  %v9324_v63 = vld [vmem:[%s12121_s1 + $0x8] sm:$0xf] }
 0x133   : > { %1308 = vrot.lane.b32.xlu0 %v338_v55, %s10565_s30  ;;  %2052 = vrot.lane.b32.xlu1 %v10937_v60, %s10565_s30  ;;  %v9747_v61 = vpop.f32.mrb[3].mxu0  ;;  %v9307_v55 = vld [vmem:[%s12121_s1 + $0x20] sm:$0xf] }
 0x134   : > { %9815 = vmatmul.mubr.msk.f32.vlgmr.msra.gmra.mrb[12].mxu1 %vm1154_vm6, %v9222_v59  ;;  %v10954_v4 = vpop.f32.mrb[6].mxu1  ;;  %v9333_v59 = vld [vmem:[%s12121_s1 + $0x14] sm:$0xf]  ;;  %v9336_v61 = vld [vmem:[%s12121_s1 + $0x18] sm:$0xf] }
 0x135   : > { %9824 = vmatprep.mubr.msk.f32.mxu1 %vm10562_vm0, %v10563_v1  ;;  %v9782_v6 = vpop.f32.mrb[7].mxu1 }
 0x136   : > { %v10948_v2 = vpop.f32.mrb[4].mxu0 }
 0x137   : > { %1972 = vrot.lane.b32.xlu0 %v10937_v60, %s10564_s10  ;;  %3027 = vrot.lane.b32.xlu1 %v10924_v56, %s10565_s30  ;;  %v9761_v3 = vpop.f32.mrb[5].mxu0 }
 0x138   : > { %v9345_v3 = vld [vmem:[%s12121_s1 + $0x24] sm:$0xf] }
 0x13a   : > { %v10956_v7 = vpop.f32.mrb[6].mxu0 }
 0x13b   : > { %2948 = vrot.lane.b32.xlu0 %v10924_v56, %s10564_s10  ;;  %4002 = vrot.lane.b32.xlu1 %v10948_v2, %s10565_s30  ;;  %v9775_v8 = vpop.f32.mrb[7].mxu0 }
 0x13c   : > { %v10982_v11 = vpop.f32.mrb[8].mxu1  ;;  %v9330_v8 = vld [vmem:[%s12121_s1 + $0x10] sm:$0xf] }
 0x13d   : > { %v9796_v12 = vpop.f32.mrb[9].mxu1 }
 0x13e   : > { %v10974_v9 = vpop.f32.mrb[8].mxu0  ;;  %v9337_v12 = vld [vmem:[%s12121_s1 + $0x1c] sm:$0xf] }
 0x13f   : > { %3923 = vrot.lane.b32.xlu0 %v10948_v2, %s10564_s10  ;;  %4977 = vrot.lane.b32.xlu1 %v10943_v62, %s10565_s30  ;;  %v9789_v10 = vpop.f32.mrb[9].mxu0 }
 0x140   : > { %v9351_v10 = vld [vmem:[%s12121_s1 + $0x2c] sm:$0xf] }
 0x143   : > { %4898 = vrot.lane.b32.xlu0 %v10943_v62, %s10564_s10  ;;  %5952 = vrot.lane.b32.xlu1 %v10956_v7, %s10565_s30 }
 0x147   : > { %5873 = vrot.lane.b32.xlu0 %v10956_v7, %s10564_s10  ;;  %6927 = vrot.lane.b32.xlu1 %v10954_v4, %s10565_s30 }
 0x14b   : > { %6848 = vrot.lane.b32.xlu0 %v10954_v4, %s10564_s10  ;;  %7902 = vrot.lane.b32.xlu1 %v10974_v9, %s10565_s30 }
 0x14f   : > { %7823 = vrot.lane.b32.xlu0 %v10974_v9, %s10564_s10  ;;  %8877 = vrot.lane.b32.xlu1 %v10982_v11, %s10565_s30 }
 0x153   : > { %8798 = vrot.lane.b32.xlu0 %v10982_v11, %s10564_s10  ;;  %s227_s10 = sand.u32 1, %s10520_s16  }
 0x154   : > { %s9155_s28 = sshll.u32 %s227_s10, 6  ;;  %s8990_s6 = scalar_lea.sflag [#allocation4], %s227_s10 }
 0x155   : > { %s11871_s9 = scalar_lea.vmem [#allocation5], %s9155_s28 }
 0x157   : > { %1627 = vperm.xlu0 %10431, %v234_v14   ;;  %v9342_v14 = vld [vmem:[%s12121_s1 + $0x20] sm:$0xf] }
 0x197   : > { %v10991_v15 = vpop.permute.xlu1 %1467 }
 0x19b   : > { %v10996_v17 = vpop.permute.xlu1 %1547 }
 0x19c   : > { %9823 = vmatpush3.msk.msra.mxu1 %vm1158_vm5, %v10996_v17 }
 0x19d   : > { %9825 = vmatmul.mubr.msk.f32.vlgmr.msra.gmra.mrb[14].mxu1 %vm1154_vm6, %v9228_v16  ;;  %9832 = vmatprep.subr.mxu1 %v10563_v1  ;;  %v9348_v16 = vld [vmem:[%s12121_s1 + $0x28] sm:$0xf] }
 0x19e   : > { %9833 = vmatpush3.msk.msra.mxu1 %vm1158_vm5, %v10915_v52  ;;  %9834 = vmatprep.mubr.msk.f32.mxu1 %vm10562_vm0, %v10563_v1 }
 0x19f   : > { %9842 = vmatprep.subr.mxu1 %v10563_v1 }
 0x1a1   : > { %v1153_v19 = vpop.permute.xlu0 %1152  ;;  %9835 = vmatmul.mubr.msk.f32.vlgmr.msra.gmra.mrb[16].mxu1 %vm1154_vm6, %v9231_v20  ;;  %v9371_v20 = vld [vmem:[%s12121_s1 + $0x18] sm:$0xf] }
 0x1a2   : > { %9798 = vmatpush3.msk.msra.mxu0 %vm1158_vm5, %v1153_v19  ;;  %9843 = vmatpush3.msk.msra.mxu1 %vm1158_vm5, %v10937_v60 }
 0x1a3   : > { %9800 = vmatmul.mubr.msk.f32.vlgmr.msra.gmra.mrb[10].mxu0 %vm1154_vm6, %v9214_v18  ;;  %9807 = vmatprep.subr.mxu0 %v10563_v1  ;;  %v9354_v18 = vld [vmem:[%s12121_s1 + $0x4] sm:$0xf] }
 0x1a4   : > { %9809 = vmatprep.mubr.msk.f32.mxu0 %vm10562_vm0, %v10563_v1  ;;  %9844 = vmatprep.mubr.msk.f32.mxu1 %vm10562_vm0, %v10563_v1 }
 0x1a5   : > { %v1309_v22 = vpop.permute.xlu0 %1308  ;;  %v11040_v25 = vpop.permute.xlu1 %2052  ;;  %9845 = vmatmul.mubr.msk.f32.vlgmr.msra.gmra.mrb[18].mxu1 %vm1154_vm6, %v9240_v23  ;;  %9852 = vmatprep.subr.mxu1 %v10563_v1 }
 0x1a6   : > { %9808 = vmatpush3.msk.msra.mxu0 %vm1158_vm5, %v1309_v22  ;;  %9853 = vmatpush3.msk.msra.mxu1 %vm1158_vm5, %v11040_v25  ;;  %v9359_v22 = vld [vmem:[%s12121_s1 + $0x8] sm:$0xf] }
 0x1a7   : > { %9810 = vmatmul.mubr.msk.f32.vlgmr.msra.gmra.mrb[12].mxu0 %vm1154_vm6, %v9219_v21  ;;  %9817 = vmatprep.subr.mxu0 %v10563_v1 }
 0x1a8   : > { %9818 = vmatpush3.msk.msra.mxu0 %vm1158_vm5, %v10991_v15  ;;  %9819 = vmatprep.mubr.msk.f32.mxu0 %vm10562_vm0, %v10563_v1 }
 0x1a9   : > { %9827 = vmatprep.subr.mxu0 %v10563_v1  ;;  %9854 = vmatprep.mubr.msk.f32.mxu1 %vm10562_vm0, %v10563_v1  ;;  %v11078_v30 = vpop.permute.xlu0 %1972  ;;  %v11146_v38 = vpop.permute.xlu1 %3027 }
 0x1aa   : > { %9862 = vmatprep.subr.mxu1 %v10563_v1  ;;  %9855 = vmatmul.mubr.msk.f32.vlgmr.msra.gmra.mrb[20].mxu1 %vm1154_vm6, %v9246_v26  ;;  %v9365_v26 = vld [vmem:[%s12121_s1 + $0x10] sm:$0xf] }
 0x1ab   : > { %9820 = vmatmul.mubr.msk.f32.vlgmr.msra.gmra.mrb[14].mxu0 %vm1154_vm6, %v9225_v24  ;;  %9863 = vmatpush3.msk.msra.mxu1 %vm1158_vm5, %v10915_v52  ;;  %v9316_v52 = vld [vmem:[%s12121_s1 + $0x2c] sm:$0xf]  ;;  %v9380_v24 = vld [vmem:[%s12121_s1 + $0x24] sm:$0xf] }
 0x1ac   : > { %9828 = vmatpush3.msk.msra.mxu0 %vm1158_vm5, %v10991_v15  ;;  %9829 = vmatprep.mubr.msk.f32.mxu0 %vm10562_vm0, %v10563_v1 }
 0x1ad   : > { %9837 = vmatprep.subr.mxu0 %v10563_v1  ;;  %9864 = vmatprep.mubr.msk.f32.mxu1 %vm10562_vm0, %v10563_v1  ;;  %v11190_v44 = vpop.permute.xlu0 %2948  ;;  %v11261_v5 = vpop.permute.xlu1 %4002 }
 0x1ae   : > { %9872 = vmatprep.subr.mxu1 %v10563_v1  ;;  %9865 = vmatmul.mubr.msk.f32.vlgmr.msra.gmra.mrb[22].mxu1 %vm1154_vm6, %v2164_v28  ;;  %v9386_v28 = vld [vmem:[%s12121_s1 + $0x2c] sm:$0xf] }
 0x1af   : > { %9830 = vmatmul.mubr.msk.f32.vlgmr.msra.gmra.mrb[16].mxu0 %vm1154_vm6, %v9232_v27  ;;  %9873 = vmatpush3.msk.msra.mxu1 %vm1158_vm5, %v10937_v60 }
 0x1b0   : > { %9838 = vmatpush3.msk.msra.mxu0 %vm1158_vm5, %v10996_v17  ;;  %9839 = vmatprep.mubr.msk.f32.mxu0 %vm10562_vm0, %v10563_v1 }
 0x1b1   : > { %9847 = vmatprep.subr.mxu0 %v10563_v1  ;;  %9874 = vmatprep.mubr.msk.f32.mxu1 %vm10562_vm0, %v10563_v1  ;;  %v11370_v6 = vpop.permute.xlu1 %4977 }
 0x1b2   : > { %9882 = vmatprep.subr.mxu1 %v10563_v1  ;;  %9875 = vmatmul.mubr.msk.f32.vlgmr.msra.gmra.mrb[24].mxu1 %vm1154_vm6, %v9257_v31  ;;  %v9377_v31 = vld [vmem:[%s12121_s1 + $0x20] sm:$0xf] }
 0x1b3   : > { %9840 = vmatmul.mubr.msk.f32.vlgmr.msra.gmra.mrb[18].mxu0 %vm1154_vm6, %v9237_v29  ;;  %9883 = vmatpush3.msk.msra.mxu1 %vm1158_vm5, %v11040_v25  ;;  %v9372_v29 = vld [vmem:[%s12121_s1 + $0x1c] sm:$0xf] }
 0x1b4   : > { %9848 = vmatpush3.msk.msra.mxu0 %vm1158_vm5, %v11078_v30  ;;  %9849 = vmatprep.mubr.msk.f32.mxu0 %vm10562_vm0, %v10563_v1 }
 0x1b5   : > { %9857 = vmatprep.subr.mxu0 %v10563_v1  ;;  %9884 = vmatprep.mubr.msk.f32.mxu1 %vm10562_vm0, %v10563_v1  ;;  %v11489_v27 = vpop.permute.xlu1 %5952 }
 0x1b6   : > { %9892 = vmatprep.subr.mxu1 %v10563_v1  ;;  %9885 = vmatmul.mubr.msk.f32.vlgmr.msra.gmra.mrb[26].mxu1 %vm1154_vm6, %v9263_v33  ;;  %v9383_v33 = vld [vmem:[%s12121_s1 + $0x28] sm:$0xf] }
 0x1b7   : > { %9850 = vmatmul.mubr.msk.f32.vlgmr.msra.gmra.mrb[20].mxu0 %vm1154_vm6, %v9243_v32  ;;  %9893 = vmatpush3.msk.msra.mxu1 %vm1158_vm5, %v10937_v60  ;;  %v9397_v32 = vld [vmem:[%s12121_s1 + $0xc] sm:$0xf] }
 0x1b8   : > { %9858 = vmatpush3.msk.msra.mxu0 %vm1158_vm5, %v10991_v15  ;;  %9859 = vmatprep.mubr.msk.f32.mxu0 %vm10562_vm0, %v10563_v1  ;;  %v9362_v15 = vld [vmem:[%s12121_s1 + $0xc] sm:$0xf] }
 0x1b9   : > { %9867 = vmatprep.subr.mxu0 %v10563_v1  ;;  %9894 = vmatprep.mubr.msk.f32.mxu1 %vm10562_vm0, %v10563_v1 }
 0x1ba   : > { %9902 = vmatprep.subr.mxu1 %v10563_v1  ;;  %9895 = vmatmul.mubr.msk.f32.vlgmr.msra.gmra.mrb[28].mxu1 %vm1154_vm6, %v9266_v35  ;;  %v9389_v35 = vld [vmem:[%s12121_s1 + $0x4] sm:$0xf] }
 0x1bb   : > { %9860 = vmatmul.mubr.msk.f32.vlgmr.msra.gmra.mrb[22].mxu0 %vm1154_vm6, %v9249_v34  ;;  %9903 = vmatpush3.msk.msra.mxu1 %vm1158_vm5, %v10924_v56  ;;  %v9403_v34 = vld [vmem:[%s12121_s1 + $0x14] sm:$0xf] }
 0x1bc   : > { %9868 = vmatpush3.msk.msra.mxu0 %vm1158_vm5, %v10996_v17  ;;  %9869 = vmatprep.mubr.msk.f32.mxu0 %vm10562_vm0, %v10563_v1  ;;  %v9368_v17 = vld [vmem:[%s12121_s1 + $0x14] sm:$0xf] }
 0x1bd   : > { %9877 = vmatprep.subr.mxu0 %v10563_v1  ;;  %9904 = vmatprep.mubr.msk.f32.mxu1 %vm10562_vm0, %v10563_v1 }
 0x1be   : > { %9905 = vmatmul.mubr.msk.f32.vlgmr.msra.gmra.mrb[30].mxu1 %vm1154_vm6, %v9275_v37  ;;  %9912 = vmatprep.subr.mxu1 %v10563_v1  ;;  %v9394_v37 = vld [vmem:[%s12121_s1 + $0x8] sm:$0xf] }
 0x1bf   : > { %9870 = vmatmul.mubr.msk.f32.vlgmr.msra.gmra.mrb[24].mxu0 %vm1154_vm6, %v9254_v36  ;;  %9913 = vmatpush3.msk.msra.mxu1 %vm1158_vm5, %v11146_v38  ;;  %v9406_v36 = vld [vmem:[%s12121_s1 + $0x18] sm:$0xf] }
 0x1c0   : > { %9878 = vmatpush3.msk.msra.mxu0 %vm1158_vm5, %v11078_v30  ;;  %9879 = vmatprep.mubr.msk.f32.mxu0 %vm10562_vm0, %v10563_v1 }
 0x1c1   : > { %9887 = vmatprep.subr.mxu0 %v10563_v1  ;;  %9914 = vmatprep.mubr.msk.f32.mxu1 %vm10562_vm0, %v10563_v1 }
 0x1c2   : > { %9922 = vmatprep.subr.mxu1 %v10563_v1  ;;  %9915 = vmatmul.mubr.msk.f32.vlgmr.msra.gmra.mrb[32].mxu1 %vm1154_vm6, %v9281_v40  ;;  %v9400_v40 = vld [vmem:[%s12121_s1 + $0x10] sm:$0xf] }
 0x1c3   : > { %9880 = vmatmul.mubr.msk.f32.vlgmr.msra.gmra.mrb[26].mxu0 %vm1154_vm6, %v9260_v39  ;;  %9923 = vmatpush3.msk.msra.mxu1 %vm1158_vm5, %v10937_v60  ;;  %v9319_v60 = vld [vmem:[%s12121_s1 + $0x4] sm:$0xf]  ;;  %v11599_v39 = vpop.permute.xlu1 %6927 }
 0x1c4   : > { %9888 = vmatpush3.msk.msra.mxu0 %vm1158_vm5, %v11078_v30  ;;  %9889 = vmatprep.mubr.msk.f32.mxu0 %vm10562_vm0, %v10563_v1 }
 0x1c5   : > { %9897 = vmatprep.subr.mxu0 %v10563_v1  ;;  %9924 = vmatprep.mubr.msk.f32.mxu1 %vm10562_vm0, %v10563_v1 }
 0x1c6   : > { %9932 = vmatprep.subr.mxu1 %v10563_v1  ;;  %9925 = vmatmul.mubr.msk.f32.vlgmr.msra.gmra.mrb[34].mxu1 %vm1154_vm6, %v3139_v42  ;;  %v9407_v42 = vld [vmem:[%s12121_s1 + $0x1c] sm:$0xf] }
 0x1c7   : > { %9890 = vmatmul.mubr.msk.f32.vlgmr.msra.gmra.mrb[28].mxu0 %vm1154_vm6, %v9267_v41  ;;  %9933 = vmatpush3.msk.msra.mxu1 %vm1158_vm5, %v10924_v56  ;;  %v9421_v41 = vld [vmem:[%s12121_s1 + $0x2c] sm:$0xf] }
 0x1c8   : > { %9898 = vmatpush3.msk.msra.mxu0 %vm1158_vm5, %v11040_v25  ;;  %9899 = vmatprep.mubr.msk.f32.mxu0 %vm10562_vm0, %v10563_v1 }
 0x1c9   : > { %9907 = vmatprep.subr.mxu0 %v10563_v1  ;;  %9934 = vmatprep.mubr.msk.f32.mxu1 %vm10562_vm0, %v10563_v1 }
 0x1ca   : > { %9942 = vmatprep.subr.mxu1 %v10563_v1  ;;  %9935 = vmatmul.mubr.msk.f32.vlgmr.msra.gmra.mrb[36].mxu1 %vm1154_vm6, %v9292_v45  ;;  %v9432_v45 = vld [vmem:[%s12121_s1 + $0xc] sm:$0xf] }
 0x1cb   : > { %9900 = vmatmul.mubr.msk.f32.vlgmr.msra.gmra.mrb[30].mxu0 %vm1154_vm6, %v9272_v43  ;;  %9943 = vmatpush3.msk.msra.mxu1 %vm1158_vm5, %v11146_v38  ;;  %v7039_v43 = vld [vmem:[%s12121_s1] sm:$0xf] }
 0x1cc   : > { %9908 = vmatpush3.msk.msra.mxu0 %vm1158_vm5, %v11190_v44  ;;  %9909 = vmatprep.mubr.msk.f32.mxu0 %vm10562_vm0, %v10563_v1 }
 0x1cd   : > { %9917 = vmatprep.subr.mxu0 %v10563_v1  ;;  %9944 = vmatprep.mubr.msk.f32.mxu1 %vm10562_vm0, %v10563_v1 }
 0x1ce   : > { %9952 = vmatprep.subr.mxu1 %v10563_v1  ;;  %9945 = vmatmul.mubr.msk.f32.vlgmr.msra.gmra.mrb[38].mxu1 %vm1154_vm6, %v9298_v0  ;;  %v9438_v0 = vld [vmem:[%s12121_s1 + $0x14] sm:$0xf] }
 0x1cf   : > { %9910 = vmatmul.mubr.msk.f32.vlgmr.msra.gmra.mrb[32].mxu0 %vm1154_vm6, %v9278_v46  ;;  %9953 = vmatpush3.msk.msra.mxu1 %vm1158_vm5, %v10924_v56  ;;  %v9418_v46 = vld [vmem:[%s12121_s1 + $0x28] sm:$0xf] }
 0x1d0   : > { %9918 = vmatpush3.msk.msra.mxu0 %vm1158_vm5, %v11078_v30  ;;  %9919 = vmatprep.mubr.msk.f32.mxu0 %vm10562_vm0, %v10563_v1  ;;  %v6064_v30 = vld [vmem:[%s12121_s1] sm:$0xf] }
 0x1d1   : > { %9927 = vmatprep.subr.mxu0 %v10563_v1  ;;  %9954 = vmatprep.mubr.msk.f32.mxu1 %vm10562_vm0, %v10563_v1 }
 0x1d2   : > { %9962 = vmatprep.subr.mxu1 %v10563_v1  ;;  %9955 = vmatmul.mubr.msk.f32.vlgmr.msra.gmra.mrb[40].mxu1 %vm1154_vm6, %v9301_v48  ;;  %v9441_v48 = vld [vmem:[%s12121_s1 + $0x18] sm:$0xf] }
 0x1d3   : > { %9920 = vmatmul.mubr.msk.f32.vlgmr.msra.gmra.mrb[34].mxu0 %vm1154_vm6, %v9284_v47  ;;  %9963 = vmatpush3.msk.msra.mxu1 %vm1158_vm5, %v10948_v2  ;;  %v9424_v47 = vld [vmem:[%s12121_s1 + $0x4] sm:$0xf] }
 0x1d4   : > { %9928 = vmatpush3.msk.msra.mxu0 %vm1158_vm5, %v11040_v25  ;;  %9929 = vmatprep.mubr.msk.f32.mxu0 %vm10562_vm0, %v10563_v1 }
 0x1d5   : > { %9937 = vmatprep.subr.mxu0 %v10563_v1  ;;  %9964 = vmatprep.mubr.msk.f32.mxu1 %vm10562_vm0, %v10563_v1 }
 0x1d6   : > { %9965 = vmatmul.mubr.msk.f32.vlgmr.msra.gmra.mrb[42].mxu1 %vm1154_vm6, %v9310_v50  ;;  %9972 = vmatprep.subr.mxu1 %v10563_v1  ;;  %v9450_v50 = vld [vmem:[%s12121_s1 + $0x24] sm:$0xf] }
 0x1d7   : > { %9930 = vmatmul.mubr.msk.f32.vlgmr.msra.gmra.mrb[36].mxu0 %vm1154_vm6, %v9289_v49  ;;  %9973 = vmatpush3.msk.msra.mxu1 %vm1158_vm5, %v11261_v5  ;;  %v9429_v49 = vld [vmem:[%s12121_s1 + $0x8] sm:$0xf] }
 0x1d8   : > { %9938 = vmatpush3.msk.msra.mxu0 %vm1158_vm5, %v11190_v44  ;;  %9939 = vmatprep.mubr.msk.f32.mxu0 %vm10562_vm0, %v10563_v1 }
 0x1d9   : > { %9947 = vmatprep.subr.mxu0 %v10563_v1  ;;  %9974 = vmatprep.mubr.msk.f32.mxu1 %vm10562_vm0, %v10563_v1 }
 0x1da   : > { %9982 = vmatprep.subr.mxu1 %v10563_v1  ;;  %9975 = vmatmul.mubr.msk.f32.vlgmr.msra.gmra.mrb[44].mxu1 %vm1154_vm6, %v9316_v52  ;;  %v9456_v52 = vld [vmem:[%s12121_s1 + $0x2c] sm:$0xf] }
 0x1db   : > { %9940 = vmatmul.mubr.msk.f32.vlgmr.msra.gmra.mrb[38].mxu0 %vm1154_vm6, %v9295_v51  ;;  %9983 = vmatpush3.msk.msra.mxu1 %vm1158_vm5, %v10924_v56  ;;  %v11302_v56 = vpop.permute.xlu0 %3923  ;;  %v9435_v51 = vld [vmem:[%s12121_s1 + $0x10] sm:$0xf] }
 0x1dc   : > { %9948 = vmatpush3.msk.msra.mxu0 %vm1158_vm5, %v11190_v44  ;;  %9949 = vmatprep.mubr.msk.f32.mxu0 %vm10562_vm0, %v10563_v1 }
 0x1dd   : > { %9957 = vmatprep.subr.mxu0 %v10563_v1  ;;  %9984 = vmatprep.mubr.msk.f32.mxu1 %vm10562_vm0, %v10563_v1 }
 0x1de   : > { %9992 = vmatprep.subr.mxu1 %v10563_v1  ;;  %9985 = vmatmul.mubr.msk.f32.vlgmr.msra.gmra.mrb[46].mxu1 %vm1154_vm6, %v4114_v54  ;;  %v8014_v54 = vld [vmem:[%s12121_s1] sm:$0xf] }
 0x1df   : > { %9950 = vmatmul.mubr.msk.f32.vlgmr.msra.gmra.mrb[40].mxu0 %vm1154_vm6, %v9302_v53  ;;  %9993 = vmatpush3.msk.msra.mxu1 %vm1158_vm5, %v10948_v2  ;;  %v9442_v53 = vld [vmem:[%s12121_s1 + $0x1c] sm:$0xf] }
 0x1e0   : > { %9958 = vmatpush3.msk.msra.mxu0 %vm1158_vm5, %v11146_v38  ;;  %9959 = vmatprep.mubr.msk.f32.mxu0 %vm10562_vm0, %v10563_v1 }
 0x1e1   : > { %9967 = vmatprep.subr.mxu0 %v10563_v1  ;;  %9994 = vmatprep.mubr.msk.f32.mxu1 %vm10562_vm0, %v10563_v1 }
 0x1e2   : > { %10002 = vmatprep.subr.mxu1 %v10563_v1  ;;  %9995 = vmatmul.mubr.msk.f32.vlgmr.msra.gmra.mrb[48].mxu1 %vm1154_vm6, %v9327_v57  ;;  %v9453_v57 = vld [vmem:[%s12121_s1 + $0x28] sm:$0xf] }
 0x1e3   : > { %9960 = vmatmul.mubr.msk.f32.vlgmr.msra.gmra.mrb[42].mxu0 %vm1154_vm6, %v9307_v55  ;;  %10003 = vmatpush3.msk.msra.mxu1 %vm1158_vm5, %v11261_v5  ;;  %v9447_v55 = vld [vmem:[%s12121_s1 + $0x20] sm:$0xf] }
 0x1e4   : > { %9968 = vmatpush3.msk.msra.mxu0 %vm1158_vm5, %v11302_v56  ;;  %9969 = vmatprep.mubr.msk.f32.mxu0 %vm10562_vm0, %v10563_v1 }
 0x1e5   : > { %9977 = vmatprep.subr.mxu0 %v10563_v1  ;;  %10004 = vmatprep.mubr.msk.f32.mxu1 %vm10562_vm0, %v10563_v1 }
 0x1e6   : > { %10012 = vmatprep.subr.mxu1 %v10563_v1  ;;  %10005 = vmatmul.mubr.msk.f32.vlgmr.msra.gmra.mrb[50].mxu1 %vm1154_vm6, %v9333_v59  ;;  %v9459_v59 = vld [vmem:[%s12121_s1 + $0x4] sm:$0xf] }
 0x1e7   : > { %9970 = vmatmul.mubr.msk.f32.vlgmr.msra.gmra.mrb[44].mxu0 %vm1154_vm6, %v9313_v58  ;;  %10013 = vmatpush3.msk.msra.mxu1 %vm1158_vm5, %v10948_v2  ;;  %v9473_v58 = vld [vmem:[%s12121_s1 + $0x14] sm:$0xf] }
 0x1e8   : > { %9978 = vmatpush3.msk.msra.mxu0 %vm1158_vm5, %v11190_v44  ;;  %9979 = vmatprep.mubr.msk.f32.mxu0 %vm10562_vm0, %v10563_v1  ;;  %v9412_v44 = vld [vmem:[%s12121_s1 + $0x20] sm:$0xf] }
 0x1e9   : > { %9987 = vmatprep.subr.mxu0 %v10563_v1  ;;  %10014 = vmatprep.mubr.msk.f32.mxu1 %vm10562_vm0, %v10563_v1 }
 0x1ea   : > { %10022 = vmatprep.subr.mxu1 %v10563_v1  ;;  %10015 = vmatmul.mubr.msk.f32.vlgmr.msra.gmra.mrb[52].mxu1 %vm1154_vm6, %v9336_v61  ;;  %v9464_v61 = vld [vmem:[%s12121_s1 + $0x8] sm:$0xf] }
 0x1eb   : > { %9980 = vmatmul.mubr.msk.f32.vlgmr.msra.gmra.mrb[46].mxu0 %vm1154_vm6, %v9319_v60  ;;  %10023 = vmatpush3.msk.msra.mxu1 %vm1158_vm5, %v10943_v62  ;;  %v9476_v60 = vld [vmem:[%s12121_s1 + $0x18] sm:$0xf] }
 0x1ec   : > { %9988 = vmatpush3.msk.msra.mxu0 %vm1158_vm5, %v11146_v38  ;;  %9989 = vmatprep.mubr.msk.f32.mxu0 %vm10562_vm0, %v10563_v1  ;;  %v9415_v38 = vld [vmem:[%s12121_s1 + $0x24] sm:$0xf] }
 0x1ed   : > { %9997 = vmatprep.subr.mxu0 %v10563_v1  ;;  %10024 = vmatprep.mubr.msk.f32.mxu1 %vm10562_vm0, %v10563_v1 }
 0x1ee   : > { %10025 = vmatmul.mubr.msk.f32.vlgmr.msra.gmra.mrb[54].mxu1 %vm1154_vm6, %v9345_v3  ;;  %10032 = vmatprep.subr.mxu1 %v10563_v1 }
 0x1ef   : > { %9990 = vmatmul.mubr.msk.f32.vlgmr.msra.gmra.mrb[48].mxu0 %vm1154_vm6, %v9324_v63  ;;  %10033 = vmatpush3.msk.msra.mxu1 %vm1158_vm5, %v11370_v6  ;;  %v9470_v63 = vld [vmem:[%s12121_s1 + $0x10] sm:$0xf] }
 0x1f0   : > { %9998 = vmatpush3.msk.msra.mxu0 %vm1158_vm5, %v11302_v56  ;;  %9999 = vmatprep.mubr.msk.f32.mxu0 %vm10562_vm0, %v10563_v1 }
 0x1f1   : > { %10007 = vmatprep.subr.mxu0 %v10563_v1  ;;  %10034 = vmatprep.mubr.msk.f32.mxu1 %vm10562_vm0, %v10563_v1 }
 0x1f2   : > { %10042 = vmatprep.subr.mxu1 %v10563_v1  ;;  %10035 = vmatmul.mubr.msk.f32.vlgmr.msra.gmra.mrb[56].mxu1 %vm1154_vm6, %v9351_v10 }
 0x1f3   : > { %10000 = vmatmul.mubr.msk.f32.vlgmr.msra.gmra.mrb[50].mxu0 %vm1154_vm6, %v9330_v8  ;;  %10043 = vmatpush3.msk.msra.mxu1 %vm1158_vm5, %v10948_v2  ;;  %v11414_v2 = vpop.permute.xlu0 %4898  ;;  %v9482_v8 = vld [vmem:[%s12121_s1 + $0x20] sm:$0xf] }
 0x1f4   : > { %10008 = vmatpush3.msk.msra.mxu0 %vm1158_vm5, %v11302_v56  ;;  %10009 = vmatprep.mubr.msk.f32.mxu0 %vm10562_vm0, %v10563_v1 }
 0x1f5   : > { %10017 = vmatprep.subr.mxu0 %v10563_v1  ;;  %10044 = vmatprep.mubr.msk.f32.mxu1 %vm10562_vm0, %v10563_v1 }
 0x1f6   : > { %10052 = vmatprep.subr.mxu1 %v10563_v1  ;;  %10045 = vmatmul.mubr.msk.f32.vlgmr.msra.gmra.mrb[58].mxu1 %vm1154_vm6, %v5089_v13 }
 0x1f7   : > { %10010 = vmatmul.mubr.msk.f32.vlgmr.msra.gmra.mrb[52].mxu0 %vm1154_vm6, %v9337_v12  ;;  %10053 = vmatpush3.msk.msra.mxu1 %vm1158_vm5, %v10943_v62  ;;  %v9488_v12 = vld [vmem:[%s12121_s1 + $0x28] sm:$0xf] }
 0x1f8   : > { %10018 = vmatpush3.msk.msra.mxu0 %vm1158_vm5, %v11261_v5  ;;  %10019 = vmatprep.mubr.msk.f32.mxu0 %vm10562_vm0, %v10563_v1 }
 0x1f9   : > { %10027 = vmatprep.subr.mxu0 %v10563_v1  ;;  %10054 = vmatprep.mubr.msk.f32.mxu1 %vm10562_vm0, %v10563_v1 }
 0x1fa   : > { %10062 = vmatprep.subr.mxu1 %v10563_v1  ;;  %10055 = vmatmul.mubr.msk.f32.vlgmr.msra.gmra.mrb[60].mxu1 %vm1154_vm6, %v9362_v15 }
 0x1fb   : > { %10020 = vmatmul.mubr.msk.f32.vlgmr.msra.gmra.mrb[54].mxu0 %vm1154_vm6, %v9342_v14  ;;  %10063 = vmatpush3.msk.msra.mxu1 %vm1158_vm5, %v11370_v6 }
 0x1fc   : > { %10028 = vmatpush3.msk.msra.mxu0 %vm1158_vm5, %v11414_v2  ;;  %10029 = vmatprep.mubr.msk.f32.mxu0 %vm10562_vm0, %v10563_v1 }
 0x1fd   : > { %10037 = vmatprep.subr.mxu0 %v10563_v1  ;;  %10064 = vmatprep.mubr.msk.f32.mxu1 %vm10562_vm0, %v10563_v1 }
 0x1fe   : > { %10072 = vmatprep.subr.mxu1 %v10563_v1  ;;  %10065 = vmatmul.mubr.msk.f32.vlgmr.msra.gmra.mrb[62].mxu1 %vm1154_vm6, %v9368_v17  ;;  %v10567_v17 = vmov 1966171168  }
 0x1ff   : > { %10030 = vmatmul.mubr.msk.f32.vlgmr.msra.gmra.mrb[56].mxu0 %vm1154_vm6, %v9348_v16  ;;  %10073 = vmatpush3.msk.msra.mxu1 %vm1158_vm5, %v10943_v62 }
 0x200   : > { %10038 = vmatpush3.msk.msra.mxu0 %vm1158_vm5, %v11302_v56  ;;  %10039 = vmatprep.mubr.msk.f32.mxu0 %vm10562_vm0, %v10563_v1  ;;  %v9467_v56 = vld [vmem:[%s12121_s1 + $0xc] sm:$0xf] }
 0x201   : > { %10047 = vmatprep.subr.mxu0 %v10563_v1  ;;  %10074 = vmatprep.mubr.msk.f32.mxu1 %vm10562_vm0, %v10563_v1 }
 0x202   : > { %10082 = vmatprep.subr.mxu1 %v10563_v1  ;;  %10075 = vmatmul.mubr.msk.f32.vlgmr.msra.gmra.mrb[64].mxu1 %vm1154_vm6, %v9371_v20  ;;  %v1635_v20 = vlaneseq }
 0x203   : > { %v11454_v19 = vpop.f32.mrb[10].mxu1  ;;  %10040 = vmatmul.mubr.msk.f32.vlgmr.msra.gmra.mrb[58].mxu0 %vm1154_vm6, %v9354_v18  ;;  %10083 = vmatpush3.msk.msra.mxu1 %vm1158_vm5, %v10956_v7  ;;  %v1633_v18 = vunpack.c.l.s4 %v10567_v17 }
 0x204   : > { %v9806_v21 = vpop.f32.mrb[11].mxu1  ;;  %10048 = vmatpush3.msk.msra.mxu0 %vm1158_vm5, %v11261_v5  ;;  %10049 = vmatprep.mubr.msk.f32.mxu0 %vm10562_vm0, %v10563_v1  ;;  %v11714_v5 = vpop.permute.xlu1 %7902 }
 0x205   : > { %10057 = vmatprep.subr.mxu0 %v10563_v1  ;;  %10084 = vmatprep.mubr.msk.f32.mxu1 %vm10562_vm0, %v10563_v1 }
 0x206   : > { %10085 = vmatmul.mubr.msk.f32.vlgmr.msra.gmra.mrb[66].mxu1 %vm1154_vm6, %v9380_v24  ;;  %10092 = vmatprep.subr.mxu1 %v10563_v1 }
 0x207   : > { %v11474_v23 = vpop.f32.mrb[12].mxu1  ;;  %10050 = vmatmul.mubr.msk.f32.vlgmr.msra.gmra.mrb[60].mxu0 %vm1154_vm6, %v9359_v22  ;;  %10093 = vmatpush3.msk.msra.mxu1 %vm1158_vm5, %v11489_v27 }
 0x208   : > { %v9816_v25 = vpop.f32.mrb[13].mxu1  ;;  %10058 = vmatpush3.msk.msra.mxu0 %vm1158_vm5, %v11414_v2  ;;  %10059 = vmatprep.mubr.msk.f32.mxu0 %vm10562_vm0, %v10563_v1  ;;  %v8878_v3 = vpop.permute.xlu1 %8877 }
 0x209   : > { %10067 = vmatprep.subr.mxu0 %v10563_v1  ;;  %10094 = vmatprep.mubr.msk.f32.mxu1 %vm10562_vm0, %v10563_v1 }
 0x20a   : > { %10102 = vmatprep.subr.mxu1 %v10563_v1  ;;  %10095 = vmatmul.mubr.msk.f32.vlgmr.msra.gmra.mrb[68].mxu1 %vm1154_vm6, %v9386_v28  ;;  %v1636_v28 = vshrl.u32 %v1635_v20, 7 }
 0x20b   : > { %10060 = vmatmul.mubr.msk.f32.vlgmr.msra.gmra.mrb[62].mxu0 %vm1154_vm6, %v9365_v26  ;;  %10103 = vmatpush3.msk.msra.mxu1 %vm1158_vm5, %v10943_v62  ;;  %v11530_v62 = vpop.permute.xlu0 %5873 }
 0x20c   : > { %10068 = vmatpush3.msk.msra.mxu0 %vm1158_vm5, %v11414_v2  ;;  %10069 = vmatprep.mubr.msk.f32.mxu0 %vm10562_vm0, %v10563_v1 }
 0x20d   : > { %10077 = vmatprep.subr.mxu0 %v10563_v1  ;;  %10104 = vmatprep.mubr.msk.f32.mxu1 %vm10562_vm0, %v10563_v1 }
 0x20e   : > { %10112 = vmatprep.subr.mxu1 %v10563_v1  ;;  %10105 = vmatmul.mubr.msk.f32.vlgmr.msra.gmra.mrb[70].mxu1 %vm1154_vm6, %v6064_v30 }
 0x20f   : > { %10070 = vmatmul.mubr.msk.f32.vlgmr.msra.gmra.mrb[64].mxu0 %vm1154_vm6, %v9372_v29  ;;  %10113 = vmatpush3.msk.msra.mxu1 %vm1158_vm5, %v10956_v7 }
 0x210   : > { %10078 = vmatpush3.msk.msra.mxu0 %vm1158_vm5, %v11370_v6  ;;  %10079 = vmatprep.mubr.msk.f32.mxu0 %vm10562_vm0, %v10563_v1 }
 0x211   : > { %10087 = vmatprep.subr.mxu0 %v10563_v1  ;;  %10114 = vmatprep.mubr.msk.f32.mxu1 %vm10562_vm0, %v10563_v1 }
 0x212   : > { %10122 = vmatprep.subr.mxu1 %v10563_v1  ;;  %10115 = vmatmul.mubr.msk.f32.vlgmr.msra.gmra.mrb[72].mxu1 %vm1154_vm6, %v9397_v32 }
 0x213   : > { %10080 = vmatmul.mubr.msk.f32.vlgmr.msra.gmra.mrb[66].mxu0 %vm1154_vm6, %v9377_v31  ;;  %10123 = vmatpush3.msk.msra.mxu1 %vm1158_vm5, %v11489_v27 }
 0x214   : > { %10088 = vmatpush3.msk.msra.mxu0 %vm1158_vm5, %v11530_v62  ;;  %10089 = vmatprep.mubr.msk.f32.mxu0 %vm10562_vm0, %v10563_v1 }
 0x215   : > { %10097 = vmatprep.subr.mxu0 %v10563_v1  ;;  %10124 = vmatprep.mubr.msk.f32.mxu1 %vm10562_vm0, %v10563_v1 }
 0x216   : > { %10132 = vmatprep.subr.mxu1 %v10563_v1  ;;  %10125 = vmatmul.mubr.msk.f32.vlgmr.msra.gmra.mrb[74].mxu1 %vm1154_vm6, %v9403_v34 }
 0x217   : > { %10090 = vmatmul.mubr.msk.f32.vlgmr.msra.gmra.mrb[68].mxu0 %vm1154_vm6, %v9383_v33  ;;  %10133 = vmatpush3.msk.msra.mxu1 %vm1158_vm5, %v10956_v7 }
 0x218   : > { %10098 = vmatpush3.msk.msra.mxu0 %vm1158_vm5, %v11414_v2  ;;  %10099 = vmatprep.mubr.msk.f32.mxu0 %vm10562_vm0, %v10563_v1 }
 0x219   : > { %10107 = vmatprep.subr.mxu0 %v10563_v1  ;;  %10134 = vmatprep.mubr.msk.f32.mxu1 %vm10562_vm0, %v10563_v1 }
 0x21a   : > { %10142 = vmatprep.subr.mxu1 %v10563_v1  ;;  %10135 = vmatmul.mubr.msk.f32.vlgmr.msra.gmra.mrb[76].mxu1 %vm1154_vm6, %v9406_v36 }
 0x21b   : > { %10100 = vmatmul.mubr.msk.f32.vlgmr.msra.gmra.mrb[70].mxu0 %vm1154_vm6, %v9389_v35  ;;  %10143 = vmatpush3.msk.msra.mxu1 %vm1158_vm5, %v10954_v4 }
 0x21c   : > { %10108 = vmatpush3.msk.msra.mxu0 %vm1158_vm5, %v11370_v6  ;;  %10109 = vmatprep.mubr.msk.f32.mxu0 %vm10562_vm0, %v10563_v1  ;;  %v9477_v6 = vld [vmem:[%s12121_s1 + $0x1c] sm:$0xf] }
 0x21d   : > { %10117 = vmatprep.subr.mxu0 %v10563_v1  ;;  %10144 = vmatprep.mubr.msk.f32.mxu1 %vm10562_vm0, %v10563_v1 }
 0x21e   : > { %10145 = vmatmul.mubr.msk.f32.vlgmr.msra.gmra.mrb[78].mxu1 %vm1154_vm6, %v9415_v38  ;;  %10152 = vmatprep.subr.mxu1 %v10563_v1 }
 0x21f   : > { %10110 = vmatmul.mubr.msk.f32.vlgmr.msra.gmra.mrb[72].mxu0 %vm1154_vm6, %v9394_v37  ;;  %10153 = vmatpush3.msk.msra.mxu1 %vm1158_vm5, %v11599_v39 }
 0x220   : > { %10118 = vmatpush3.msk.msra.mxu0 %vm1158_vm5, %v11530_v62  ;;  %10119 = vmatprep.mubr.msk.f32.mxu0 %vm10562_vm0, %v10563_v1 }
 0x221   : > { %10127 = vmatprep.subr.mxu0 %v10563_v1  ;;  %10154 = vmatprep.mubr.msk.f32.mxu1 %vm10562_vm0, %v10563_v1 }
 0x222   : > { %10162 = vmatprep.subr.mxu1 %v10563_v1  ;;  %10155 = vmatmul.mubr.msk.f32.vlgmr.msra.gmra.mrb[80].mxu1 %vm1154_vm6, %v9421_v41 }
 0x223   : > { %10120 = vmatmul.mubr.msk.f32.vlgmr.msra.gmra.mrb[74].mxu0 %vm1154_vm6, %v9400_v40  ;;  %10163 = vmatpush3.msk.msra.mxu1 %vm1158_vm5, %v10956_v7  ;;  %v11643_v7 = vpop.permute.xlu0 %6848 }
 0x224   : > { %10128 = vmatpush3.msk.msra.mxu0 %vm1158_vm5, %v11530_v62  ;;  %10129 = vmatprep.mubr.msk.f32.mxu0 %vm10562_vm0, %v10563_v1 }
 0x225   : > { %10137 = vmatprep.subr.mxu0 %v10563_v1  ;;  %10164 = vmatprep.mubr.msk.f32.mxu1 %vm10562_vm0, %v10563_v1 }
 0x226   : > { %10172 = vmatprep.subr.mxu1 %v10563_v1  ;;  %10165 = vmatmul.mubr.msk.f32.vlgmr.msra.gmra.mrb[82].mxu1 %vm1154_vm6, %v7039_v43 }
 0x227   : > { %10130 = vmatmul.mubr.msk.f32.vlgmr.msra.gmra.mrb[76].mxu0 %vm1154_vm6, %v9407_v42  ;;  %10173 = vmatpush3.msk.msra.mxu1 %vm1158_vm5, %v10954_v4 }
 0x228   : > { %10138 = vmatpush3.msk.msra.mxu0 %vm1158_vm5, %v11489_v27  ;;  %10139 = vmatprep.mubr.msk.f32.mxu0 %vm10562_vm0, %v10563_v1 }
 0x229   : > { %10147 = vmatprep.subr.mxu0 %v10563_v1  ;;  %10174 = vmatprep.mubr.msk.f32.mxu1 %vm10562_vm0, %v10563_v1 }
 0x22a   : > { %10182 = vmatprep.subr.mxu1 %v10563_v1  ;;  %10175 = vmatmul.mubr.msk.f32.vlgmr.msra.gmra.mrb[84].mxu1 %vm1154_vm6, %v9432_v45 }
 0x22b   : > { %10140 = vmatmul.mubr.msk.f32.vlgmr.msra.gmra.mrb[78].mxu0 %vm1154_vm6, %v9412_v44  ;;  %10183 = vmatpush3.msk.msra.mxu1 %vm1158_vm5, %v11599_v39 }
 0x22c   : > { %10148 = vmatpush3.msk.msra.mxu0 %vm1158_vm5, %v11643_v7  ;;  %10149 = vmatprep.mubr.msk.f32.mxu0 %vm10562_vm0, %v10563_v1 }
 0x22d   : > { %10157 = vmatprep.subr.mxu0 %v10563_v1  ;;  %10184 = vmatprep.mubr.msk.f32.mxu1 %vm10562_vm0, %v10563_v1 }
 0x22e   : > { %10192 = vmatprep.subr.mxu1 %v10563_v1  ;;  %10185 = vmatmul.mubr.msk.f32.vlgmr.msra.gmra.mrb[86].mxu1 %vm1154_vm6, %v9438_v0 }
 0x22f   : > { %10150 = vmatmul.mubr.msk.f32.vlgmr.msra.gmra.mrb[80].mxu0 %vm1154_vm6, %v9418_v46  ;;  %10193 = vmatpush3.msk.msra.mxu1 %vm1158_vm5, %v10954_v4 }
 0x230   : > { %10158 = vmatpush3.msk.msra.mxu0 %vm1158_vm5, %v11530_v62  ;;  %10159 = vmatprep.mubr.msk.f32.mxu0 %vm10562_vm0, %v10563_v1 }
 0x231   : > { %10167 = vmatprep.subr.mxu0 %v10563_v1  ;;  %10194 = vmatprep.mubr.msk.f32.mxu1 %vm10562_vm0, %v10563_v1 }
 0x232   : > { %10202 = vmatprep.subr.mxu1 %v10563_v1  ;;  %10195 = vmatmul.mubr.msk.f32.vlgmr.msra.gmra.mrb[88].mxu1 %vm1154_vm6, %v9441_v48 }
 0x233   : > { %10160 = vmatmul.mubr.msk.f32.vlgmr.msra.gmra.mrb[82].mxu0 %vm1154_vm6, %v9424_v47  ;;  %10203 = vmatpush3.msk.msra.mxu1 %vm1158_vm5, %v10974_v9 }
 0x234   : > { %10168 = vmatpush3.msk.msra.mxu0 %vm1158_vm5, %v11489_v27  ;;  %10169 = vmatprep.mubr.msk.f32.mxu0 %vm10562_vm0, %v10563_v1  ;;  %v1634_v27 = vunpack.c.0.s8 %v1633_v18 }
 0x235   : > { %10177 = vmatprep.subr.mxu0 %v10563_v1  ;;  %10204 = vmatprep.mubr.msk.f32.mxu1 %vm10562_vm0, %v10563_v1 }
 0x236   : > { %10205 = vmatmul.mubr.msk.f32.vlgmr.msra.gmra.mrb[90].mxu1 %vm1154_vm6, %v9450_v50  ;;  %10212 = vmatprep.subr.mxu1 %v10563_v1  ;;  %v11863_v34 = vsub.s32 %v1634_v27, %v1636_v28 }
 0x237   : > { %10170 = vmatmul.mubr.msk.f32.vlgmr.msra.gmra.mrb[84].mxu0 %vm1154_vm6, %v9429_v49  ;;  %10213 = vmatpush3.msk.msra.mxu1 %vm1158_vm5, %v11714_v5 }
 0x238   : > { %10178 = vmatpush3.msk.msra.mxu0 %vm1158_vm5, %v11643_v7  ;;  %10179 = vmatprep.mubr.msk.f32.mxu0 %vm10562_vm0, %v10563_v1 }
 0x239   : > { %10187 = vmatprep.subr.mxu0 %v10563_v1  ;;  %10214 = vmatprep.mubr.msk.f32.mxu1 %vm10562_vm0, %v10563_v1 }
 0x23a   : > { %10222 = vmatprep.subr.mxu1 %v10563_v1  ;;  %10215 = vmatmul.mubr.msk.f32.vlgmr.msra.gmra.mrb[92].mxu1 %vm1154_vm6, %v9456_v52 }
 0x23b   : > { %10180 = vmatmul.mubr.msk.f32.vlgmr.msra.gmra.mrb[86].mxu0 %vm1154_vm6, %v9435_v51  ;;  %10223 = vmatpush3.msk.msra.mxu1 %vm1158_vm5, %v10954_v4  ;;  %v7824_v4 = vpop.permute.xlu0 %7823 }
 0x23c   : > { %10188 = vmatpush3.msk.msra.mxu0 %vm1158_vm5, %v11643_v7  ;;  %10189 = vmatprep.mubr.msk.f32.mxu0 %vm10562_vm0, %v10563_v1 }
 0x23d   : > { %10197 = vmatprep.subr.mxu0 %v10563_v1  ;;  %10224 = vmatprep.mubr.msk.f32.mxu1 %vm10562_vm0, %v10563_v1 }
 0x23e   : > { %10232 = vmatprep.subr.mxu1 %v10563_v1  ;;  %10225 = vmatmul.mubr.msk.f32.vlgmr.msra.gmra.mrb[94].mxu1 %vm1154_vm6, %v8014_v54 }
 0x23f   : > { %10190 = vmatmul.mubr.msk.f32.vlgmr.msra.gmra.mrb[88].mxu0 %vm1154_vm6, %v9442_v53  ;;  %10233 = vmatpush3.msk.msra.mxu1 %vm1158_vm5, %v10974_v9  ;;  %v8799_v10 = vpop.permute.xlu0 %8798 }
 0x240   : > { %10198 = vmatpush3.msk.msra.mxu0 %vm1158_vm5, %v11599_v39  ;;  %10199 = vmatprep.mubr.msk.f32.mxu0 %vm10562_vm0, %v10563_v1 }
 0x241   : > { %10207 = vmatprep.subr.mxu0 %v10563_v1  ;;  %10234 = vmatprep.mubr.msk.f32.mxu1 %vm10562_vm0, %v10563_v1 }
 0x242   : > { %10242 = vmatprep.subr.mxu1 %v10563_v1  ;;  %10235 = vmatmul.mubr.msk.f32.vlgmr.msra.gmra.mrb[96].mxu1 %vm1154_vm6, %v9467_v56 }
 0x243   : > { %10200 = vmatmul.mubr.msk.f32.vlgmr.msra.gmra.mrb[90].mxu0 %vm1154_vm6, %v9447_v55  ;;  %10243 = vmatpush3.msk.msra.mxu1 %vm1158_vm5, %v11714_v5  ;;  %v11861_v33 = vpop.permute.xlu0 %1627 }
 0x244   : > { %10208 = vmatpush3.msk.msra.mxu0 %vm1158_vm5, %v7824_v4  ;;  %10209 = vmatprep.mubr.msk.f32.mxu0 %vm10562_vm0, %v10563_v1 }
 0x245   : > { %10217 = vmatprep.subr.mxu0 %v10563_v1  ;;  %10244 = vmatprep.mubr.msk.f32.mxu1 %vm10562_vm0, %v10563_v1 }
 0x246   : > { %10252 = vmatprep.subr.mxu1 %v10563_v1  ;;  %10245 = vmatmul.mubr.msk.f32.vlgmr.msra.gmra.mrb[98].mxu1 %vm1154_vm6, %v9473_v58 }
 0x247   : > { %10210 = vmatmul.mubr.msk.f32.vlgmr.msra.gmra.mrb[92].mxu0 %vm1154_vm6, %v9453_v57  ;;  %10253 = vmatpush3.msk.msra.mxu1 %vm1158_vm5, %v10974_v9  ;;  %v9485_v9 = vld [vmem:[%s12121_s1 + $0x24] sm:$0xf] }
 0x248   : > { %10218 = vmatpush3.msk.msra.mxu0 %vm1158_vm5, %v11643_v7  ;;  %10219 = vmatprep.mubr.msk.f32.mxu0 %vm10562_vm0, %v10563_v1 }
 0x249   : > { %10227 = vmatprep.subr.mxu0 %v10563_v1  ;;  %10254 = vmatprep.mubr.msk.f32.mxu1 %vm10562_vm0, %v10563_v1 }
 0x24a   : > { %10262 = vmatprep.subr.mxu1 %v10563_v1  ;;  %10255 = vmatmul.mubr.msk.f32.vlgmr.msra.gmra.mrb[100].mxu1 %vm1154_vm6, %v9476_v60 }
 0x24b   : > { %10220 = vmatmul.mubr.msk.f32.vlgmr.msra.gmra.mrb[94].mxu0 %vm1154_vm6, %v9459_v59  ;;  %10263 = vmatpush3.msk.msra.mxu1 %vm1158_vm5, %v10982_v11  ;;  %v9491_v11 = vld [vmem:[%s12121_s1 + $0x2c] sm:$0xf] }
 0x24c   : > { %10228 = vmatpush3.msk.msra.mxu0 %vm1158_vm5, %v11599_v39  ;;  %10229 = vmatprep.mubr.msk.f32.mxu0 %vm10562_vm0, %v10563_v1 }
 0x24d   : > { %10237 = vmatprep.subr.mxu0 %v10563_v1  ;;  %10264 = vmatprep.mubr.msk.f32.mxu1 %vm10562_vm0, %v10563_v1 }
 0x24e   : > { %10272 = vmatprep.subr.mxu1 %v10563_v1  ;;  %10265 = vmatmul.mubr.msk.f32.vlgmr.msra.gmra.mrb[102].mxu1 %vm1154_vm6, %v9485_v9 }
 0x24f   : > { %10230 = vmatmul.mubr.msk.f32.vlgmr.msra.gmra.mrb[96].mxu0 %vm1154_vm6, %v9464_v61  ;;  %10273 = vmatpush3.msk.msra.mxu1 %vm1158_vm5, %v8878_v3 }
 0x250   : > { %10238 = vmatpush3.msk.msra.mxu0 %vm1158_vm5, %v7824_v4  ;;  %10239 = vmatprep.mubr.msk.f32.mxu0 %vm10562_vm0, %v10563_v1 }
 0x251   : > { %10247 = vmatprep.subr.mxu0 %v10563_v1  ;;  %10274 = vmatprep.mubr.msk.f32.mxu1 %vm10562_vm0, %v10563_v1 }
 0x252   : > { %10275 = vmatmul.mubr.msk.f32.vlgmr.msra.gmra.mrb[104].mxu1 %vm1154_vm6, %v9491_v11 }
 0x253   : > { %10240 = vmatmul.mubr.msk.f32.vlgmr.msra.gmra.mrb[98].mxu0 %vm1154_vm6, %v9470_v63 }
 0x254   : > { %10248 = vmatpush3.msk.msra.mxu0 %vm1158_vm5, %v7824_v4  ;;  %10249 = vmatprep.mubr.msk.f32.mxu0 %vm10562_vm0, %v10563_v1 }
 0x255   : > { %10257 = vmatprep.subr.mxu0 %v10563_v1 }
 0x257   : > { %10250 = vmatmul.mubr.msk.f32.vlgmr.msra.gmra.mrb[100].mxu0 %vm1154_vm6, %v9477_v6 }
 0x258   : > { %10258 = vmatpush3.msk.msra.mxu0 %vm1158_vm5, %v11714_v5  ;;  %10259 = vmatprep.mubr.msk.f32.mxu0 %vm10562_vm0, %v10563_v1 }
 0x259   : > { %10267 = vmatprep.subr.mxu0 %v10563_v1 }
 0x25b   : > { %10260 = vmatmul.mubr.msk.f32.vlgmr.msra.gmra.mrb[102].mxu0 %vm1154_vm6, %v9482_v8 }
 0x25c   : > { %10268 = vmatpush3.msk.msra.mxu0 %vm1158_vm5, %v8799_v10  ;;  %10269 = vmatprep.mubr.msk.f32.mxu0 %vm10562_vm0, %v10563_v1 }
 0x25f   : > { %10270 = vmatmul.mubr.msk.f32.vlgmr.msra.gmra.mrb[104].mxu0 %vm1154_vm6, %v9488_v12 }
 0x270   : > { %v1620_v13 = vpop.f32.mrb[14].mxu1 }
 0x271   : > { %v9826_v2 = vpop.f32.mrb[15].mxu1 }
 0x274   : > { %v1811_v22 = vpop.f32.mrb[16].mxu1 }
 0x275   : > { %v9836_v25 = vpop.f32.mrb[17].mxu1 }
 0x276   : > { %v1227_v14 = vpop.f32.mrb[10].mxu0 }
 0x277   : > { %v9801_v15 = vpop.f32.mrb[11].mxu0  ;;  %v1303_v16 = vadd.f32 %v11454_v19, %v1227_v14 }
 0x278   : > { %v1965_v30 = vpop.f32.mrb[18].mxu1 }
 0x279   : > { %v9846_v32 = vpop.f32.mrb[19].mxu1 }
 0x27a   : > { %v1381_v21 = vpop.f32.mrb[12].mxu0 }
 0x27b   : > { %v1385_v24 = vadd.f32 %v1381_v21, %v1303_v16  ;;  %v9811_v1 = vpop.f32.mrb[13].mxu0 }
 0x27d   : > { %v1464_v26 = vadd.f32 %v11474_v23, %v1385_v24  ;;  %v2125_v35 = vpop.f32.mrb[20].mxu1 }
 0x27e   : > { %v1540_v29 = vpop.f32.mrb[14].mxu0  ;;  %v9856_v38 = vpop.f32.mrb[21].mxu1 }
 0x27f   : > { %v1544_v31 = vadd.f32 %v1540_v29, %v1464_v26  ;;  %v9821_v62 = vpop.f32.mrb[15].mxu0 }
 0x281   : > { %v1624_v19 = vadd.f32 %v1620_v13, %v1544_v31  ;;  %v2308_v41 = vpop.f32.mrb[22].mxu1 }
 0x282   : > { %v1738_v37 = vpop.f32.mrb[16].mxu0  ;;  %v9866_v7 = vpop.f32.mrb[23].mxu1 }
 0x283   : > { %v1630_v36 = vadd.f32 %v11861_v33, %v1624_v19  ;;  %v9831_v23 = vpop.f32.mrb[17].mxu0  ;;  %v1812_v39 = vadd.f32 %v1811_v22, %v1738_v37 }
 0x285   : > { %v1638_v40 = vrot.slane %v1630_v36, %v11863_v34  ;;  %v2457_v49 = vpop.f32.mrb[24].mxu1 }
 0x286   : > { %v1886_v44 = vpop.f32.mrb[18].mxu0  ;;  %v9876_v5 = vpop.f32.mrb[25].mxu1 }
 0x287   : > { %v1639_v42 = vcombine.high %v1638_v40, %v1638_v40  ;;  %v1646_v43 = vrot.slane %v1638_v40, %v11863_v34  ;;  %v1890_v45 = vadd.f32 %v1886_v44, %v1812_v39  ;;  %v9841_v46 = vpop.f32.mrb[19].mxu0 }
 0x289   : > { %v1653_v0 = vrot.slane %v1639_v42, %v11863_v34  ;;  %v1654_v47 = vcombine.high %v1646_v43, %v1646_v43  ;;  %1661 = vst.msk [vmem:[%s11871_s9] sm:$0x1] %vm1660_vm7, %v1646_v43  ;;  %v1969_v48 = vadd.f32 %v1965_v30, %v1890_v45  ;;  %v2607_v55 = vpop.f32.mrb[26].mxu1 }
 0x28a   : > { %v2045_v51 = vpop.f32.mrb[20].mxu0  ;;  %v9886_v56 = vpop.f32.mrb[27].mxu1 }
 0x28b   : > { %v1655_v50 = vcombine.high %v1653_v0, %v1653_v0  ;;  %1662 = vst.msk [vmem:[%s11871_s9 + $0x10] sm:$0x1] %vm1660_vm7, %v1653_v0  ;;  %1663 = vst.msk [vmem:[%s11871_s9 + $0x20] sm:$0x1] %vm1660_vm7, %v1654_v47  ;;  %v2049_v52 = vadd.f32 %v2045_v51, %v1969_v48  ;;  %v9851_v53 = vpop.f32.mrb[21].mxu0 }
 0x28d   : > { %1664 = vst.msk [vmem:[%s11871_s9 + $0x30] sm:$0x1] %vm1660_vm7, %v1655_v50  ;;  %v2129_v54 = vadd.f32 %v2125_v35, %v2049_v52  ;;  %v2790_v61 = vpop.f32.mrb[28].mxu1 }
 0x28e   : > { %v2235_v4 = vpop.f32.mrb[22].mxu0  ;;  %v9896_v63 = vpop.f32.mrb[29].mxu1 }
 0x28f   : > { %v2130_v57 = vadd.f32 %v2129_v54, %v11861_v33  ;;  %v9861_v58 = vpop.f32.mrb[23].mxu0  ;;  %v2309_v59 = vadd.f32 %v2308_v41, %v2235_v4 }
 0x291   : > { %v2138_v60 = vrot.slane %v2130_v57, %v11863_v34  ;;  %v2942_v14 = vpop.f32.mrb[30].mxu1 }
 0x292   : > { %v2382_v9 = vpop.f32.mrb[24].mxu0  ;;  %v9906_v15 = vpop.f32.mrb[31].mxu1 }
 0x293   : > { %v2139_v3 = vcombine.high %v2138_v60, %v2138_v60  ;;  %v2146_v11 = vrot.slane %v2138_v60, %v11863_v34  ;;  %v2386_v6 = vadd.f32 %v2382_v9, %v2309_v59  ;;  %v9871_v8 = vpop.f32.mrb[25].mxu0 }
 0x295   : > { %v2153_v10 = vrot.slane %v2139_v3, %v11863_v34  ;;  %v2154_v12 = vcombine.high %v2146_v11, %v2146_v11  ;;  %2160 = vst.msk [vmem:[%s11871_s9 + $0x1] sm:$0x1] %vm1660_vm7, %v2146_v11  ;;  %v2461_v13 = vadd.f32 %v2457_v49, %v2386_v6  ;;  %v3100_v21 = vpop.f32.mrb[32].mxu1 }
 0x296   : > { %v2532_v2 = vpop.f32.mrb[26].mxu0  ;;  %v9916_v24 = vpop.f32.mrb[33].mxu1 }
 0x297   : > { %v2155_v16 = vcombine.high %v2153_v10, %v2153_v10  ;;  %2161 = vst.msk [vmem:[%s11871_s9 + $0x11] sm:$0x1] %vm1660_vm7, %v2153_v10  ;;  %2162 = vst.msk [vmem:[%s11871_s9 + $0x21] sm:$0x1] %vm1660_vm7, %v2154_v12  ;;  %v2536_v17 = vadd.f32 %v2532_v2, %v2461_v13  ;;  %v9881_v18 = vpop.f32.mrb[27].mxu0 }
 0x299   : > { %2163 = vst.msk [vmem:[%s11871_s9 + $0x31] sm:$0x1] %vm1660_vm7, %v2155_v16  ;;  %v2611_v20 = vadd.f32 %v2607_v55, %v2536_v17  ;;  %v3283_v28 = vpop.f32.mrb[34].mxu1 }
 0x29a   : > { %v2717_v22 = vpop.f32.mrb[28].mxu0  ;;  %v9926_v30 = vpop.f32.mrb[35].mxu1 }
 0x29b   : > { %v2612_v1 = vadd.f32 %v2611_v20, %v11861_v33  ;;  %v9891_v25 = vpop.f32.mrb[29].mxu0  ;;  %v2791_v26 = vadd.f32 %v2790_v61, %v2717_v22 }
 0x29d   : > { %v2620_v27 = vrot.slane %v2612_v1, %v11863_v34  ;;  %v3432_v38 = vpop.f32.mrb[36].mxu1 }
 0x29e   : > { %v2864_v29 = vpop.f32.mrb[30].mxu0  ;;  %v9936_v39 = vpop.f32.mrb[37].mxu1 }
 0x29f   : > { %v2621_v31 = vcombine.high %v2620_v27, %v2620_v27  ;;  %v2628_v62 = vrot.slane %v2620_v27, %v11863_v34  ;;  %v2868_v32 = vadd.f32 %v2864_v29, %v2791_v26  ;;  %v9901_v19 = vpop.f32.mrb[31].mxu0 }
 0x2a1   : > { %v2635_v35 = vrot.slane %v2621_v31, %v11863_v34  ;;  %v2636_v36 = vcombine.high %v2628_v62, %v2628_v62  ;;  %2642 = vst.msk [vmem:[%s11871_s9 + $0x2] sm:$0x1] %vm1660_vm7, %v2628_v62  ;;  %v2946_v37 = vadd.f32 %v2942_v14, %v2868_v32  ;;  %v3582_v44 = vpop.f32.mrb[38].mxu1 }
 0x2a2   : > { %v3021_v23 = vpop.f32.mrb[32].mxu0  ;;  %v9946_v45 = vpop.f32.mrb[39].mxu1 }
 0x2a3   : > { %v2637_v40 = vcombine.high %v2635_v35, %v2635_v35  ;;  %2643 = vst.msk [vmem:[%s11871_s9 + $0x12] sm:$0x1] %vm1660_vm7, %v2635_v35  ;;  %2644 = vst.msk [vmem:[%s11871_s9 + $0x22] sm:$0x1] %vm1660_vm7, %v2636_v36  ;;  %v3025_v41 = vadd.f32 %v3021_v23, %v2946_v37  ;;  %v9911_v42 = vpop.f32.mrb[33].mxu0 }
 0x2a5   : > { %2645 = vst.msk [vmem:[%s11871_s9 + $0x32] sm:$0x1] %vm1660_vm7, %v2637_v40  ;;  %v3104_v43 = vadd.f32 %v3100_v21, %v3025_v41  ;;  %v3765_v49 = vpop.f32.mrb[40].mxu1 }
 0x2a6   : > { %v3210_v7 = vpop.f32.mrb[34].mxu0  ;;  %v9956_v51 = vpop.f32.mrb[41].mxu1 }
 0x2a7   : > { %v3105_v46 = vadd.f32 %v3104_v43, %v11861_v33  ;;  %v9921_v0 = vpop.f32.mrb[35].mxu0  ;;  %v3284_v47 = vadd.f32 %v3283_v28, %v3210_v7 }
 0x2a9   : > { %v3113_v48 = vrot.slane %v3105_v46, %v11863_v34  ;;  %v3917_v57 = vpop.f32.mrb[42].mxu1 }
 0x2aa   : > { %v3357_v50 = vpop.f32.mrb[36].mxu0  ;;  %v9966_v59 = vpop.f32.mrb[43].mxu1 }
 0x2ab   : > { %v3114_v5 = vcombine.high %v3113_v48, %v3113_v48  ;;  %v3121_v52 = vrot.slane %v3113_v48, %v11863_v34  ;;  %v3361_v53 = vadd.f32 %v3357_v50, %v3284_v47  ;;  %v9931_v54 = vpop.f32.mrb[37].mxu0 }
 0x2ad   : > { %v3128_v55 = vrot.slane %v3114_v5, %v11863_v34  ;;  %v3129_v4 = vcombine.high %v3121_v52, %v3121_v52  ;;  %3135 = vst.msk [vmem:[%s11871_s9 + $0x3] sm:$0x1] %vm1660_vm7, %v3121_v52  ;;  %v3436_v56 = vadd.f32 %v3432_v38, %v3361_v53  ;;  %v4075_v3 = vpop.f32.mrb[44].mxu1 }
 0x2ae   : > { %v3507_v58 = vpop.f32.mrb[38].mxu0  ;;  %v9976_v6 = vpop.f32.mrb[45].mxu1 }
 0x2af   : > { %v3130_v60 = vcombine.high %v3128_v55, %v3128_v55  ;;  %3136 = vst.msk [vmem:[%s11871_s9 + $0x13] sm:$0x1] %vm1660_vm7, %v3128_v55  ;;  %3137 = vst.msk [vmem:[%s11871_s9 + $0x23] sm:$0x1] %vm1660_vm7, %v3129_v4  ;;  %v3511_v61 = vadd.f32 %v3507_v58, %v3436_v56  ;;  %v9941_v9 = vpop.f32.mrb[39].mxu0 }
 0x2b1   : > { %3138 = vst.msk [vmem:[%s11871_s9 + $0x33] sm:$0x1] %vm1660_vm7, %v3130_v60  ;;  %v3586_v63 = vadd.f32 %v3582_v44, %v3511_v61  ;;  %v4258_v14 = vpop.f32.mrb[46].mxu1 }
 0x2b2   : > { %v3692_v11 = vpop.f32.mrb[40].mxu0  ;;  %v9986_v15 = vpop.f32.mrb[47].mxu1 }
 0x2b3   : > { %v3587_v8 = vadd.f32 %v3586_v63, %v11861_v33  ;;  %v9951_v10 = vpop.f32.mrb[41].mxu0  ;;  %v3766_v12 = vadd.f32 %v3765_v49, %v3692_v11 }
 0x2b5   : > { %v3595_v13 = vrot.slane %v3587_v8, %v11863_v34  ;;  %v4407_v1 = vpop.f32.mrb[48].mxu1 }
 0x2b6   : > { %v3839_v2 = vpop.f32.mrb[42].mxu0  ;;  %v9996_v26 = vpop.f32.mrb[49].mxu1 }
 0x2b7   : > { %v3596_v16 = vcombine.high %v3595_v13, %v3595_v13  ;;  %v3603_v17 = vrot.slane %v3595_v13, %v11863_v34  ;;  %v3843_v18 = vadd.f32 %v3839_v2, %v3766_v12  ;;  %v9961_v20 = vpop.f32.mrb[43].mxu0 }
 0x2b9   : > { %v3610_v21 = vrot.slane %v3596_v16, %v11863_v34  ;;  %v3611_v22 = vcombine.high %v3603_v17, %v3603_v17  ;;  %3617 = vst.msk [vmem:[%s11871_s9 + $0x4] sm:$0x1] %vm1660_vm7, %v3603_v17  ;;  %v3921_v24 = vadd.f32 %v3917_v57, %v3843_v18  ;;  %v4557_v31 = vpop.f32.mrb[50].mxu1 }
 0x2ba   : > { %v3996_v25 = vpop.f32.mrb[44].mxu0  ;;  %v10006_v32 = vpop.f32.mrb[51].mxu1 }
 0x2bb   : > { %v3612_v27 = vcombine.high %v3610_v21, %v3610_v21  ;;  %3618 = vst.msk [vmem:[%s11871_s9 + $0x14] sm:$0x1] %vm1660_vm7, %v3610_v21  ;;  %3619 = vst.msk [vmem:[%s11871_s9 + $0x24] sm:$0x1] %vm1660_vm7, %v3611_v22  ;;  %v4000_v28 = vadd.f32 %v3996_v25, %v3921_v24  ;;  %v9971_v29 = vpop.f32.mrb[45].mxu0 }
 0x2bd   : > { %3620 = vst.msk [vmem:[%s11871_s9 + $0x34] sm:$0x1] %vm1660_vm7, %v3612_v27  ;;  %v4079_v30 = vadd.f32 %v4075_v3, %v4000_v28  ;;  %v4740_v38 = vpop.f32.mrb[52].mxu1 }
 0x2be   : > { %v4185_v62 = vpop.f32.mrb[46].mxu0  ;;  %v10016_v39 = vpop.f32.mrb[53].mxu1 }
 0x2bf   : > { %v4080_v19 = vadd.f32 %v4079_v30, %v11861_v33  ;;  %v9981_v35 = vpop.f32.mrb[47].mxu0  ;;  %v4259_v36 = vadd.f32 %v4258_v14, %v4185_v62 }
 0x2c1   : > { %v4088_v37 = vrot.slane %v4080_v19, %v11863_v34  ;;  %v4892_v46 = vpop.f32.mrb[54].mxu1 }
 0x2c2   : > { %v4332_v23 = vpop.f32.mrb[48].mxu0  ;;  %v10026_v47 = vpop.f32.mrb[55].mxu1 }
 0x2c3   : > { %v4089_v40 = vcombine.high %v4088_v37, %v4088_v37  ;;  %v4096_v41 = vrot.slane %v4088_v37, %v11863_v34  ;;  %v4336_v42 = vadd.f32 %v4332_v23, %v4259_v36  ;;  %v9991_v43 = vpop.f32.mrb[49].mxu0 }
 0x2c5   : > { %v4103_v44 = vrot.slane %v4089_v40, %v11863_v34  ;;  %v4104_v7 = vcombine.high %v4096_v41, %v4096_v41  ;;  %4110 = vst.msk [vmem:[%s11871_s9 + $0x5] sm:$0x1] %vm1660_vm7, %v4096_v41  ;;  %v4411_v45 = vadd.f32 %v4407_v1, %v4336_v42  ;;  %v5050_v5 = vpop.f32.mrb[56].mxu1 }
 0x2c6   : > { %v4482_v0 = vpop.f32.mrb[50].mxu0  ;;  %v10036_v53 = vpop.f32.mrb[57].mxu1 }
 0x2c7   : > { %v4105_v48 = vcombine.high %v4103_v44, %v4103_v44  ;;  %4111 = vst.msk [vmem:[%s11871_s9 + $0x15] sm:$0x1] %vm1660_vm7, %v4103_v44  ;;  %4112 = vst.msk [vmem:[%s11871_s9 + $0x25] sm:$0x1] %vm1660_vm7, %v4104_v7  ;;  %v4486_v49 = vadd.f32 %v4482_v0, %v4411_v45  ;;  %v10001_v50 = vpop.f32.mrb[51].mxu0 }
 0x2c9   : > { %4113 = vst.msk [vmem:[%s11871_s9 + $0x35] sm:$0x1] %vm1660_vm7, %v4105_v48  ;;  %v4561_v51 = vadd.f32 %v4557_v31, %v4486_v49  ;;  %v5233_v57 = vpop.f32.mrb[58].mxu1 }
 0x2ca   : > { %v4667_v52 = vpop.f32.mrb[52].mxu0  ;;  %v10046_v59 = vpop.f32.mrb[59].mxu1 }
 0x2cb   : > { %v4562_v54 = vadd.f32 %v4561_v51, %v11861_v33  ;;  %v10011_v55 = vpop.f32.mrb[53].mxu0  ;;  %v4741_v4 = vadd.f32 %v4740_v38, %v4667_v52 }
 0x2cd   : > { %v4570_v56 = vrot.slane %v4562_v54, %v11863_v34  ;;  %v5382_v8 = vpop.f32.mrb[60].mxu1 }
 0x2ce   : > { %v4814_v58 = vpop.f32.mrb[54].mxu0  ;;  %v10056_v12 = vpop.f32.mrb[61].mxu1 }
 0x2cf   : > { %v4571_v60 = vcombine.high %v4570_v56, %v4570_v56  ;;  %v4578_v61 = vrot.slane %v4570_v56, %v11863_v34  ;;  %v4818_v9 = vadd.f32 %v4814_v58, %v4741_v4  ;;  %v10021_v63 = vpop.f32.mrb[55].mxu0 }
 0x2d1   : > { %v4585_v3 = vrot.slane %v4571_v60, %v11863_v34  ;;  %v4586_v11 = vcombine.high %v4578_v61, %v4578_v61  ;;  %4592 = vst.msk [vmem:[%s11871_s9 + $0x6] sm:$0x1] %vm1660_vm7, %v4578_v61  ;;  %v4896_v6 = vadd.f32 %v4892_v46, %v4818_v9  ;;  %v5532_v16 = vpop.f32.mrb[62].mxu1 }
 0x2d2   : > { %v4971_v10 = vpop.f32.mrb[56].mxu0  ;;  %v10066_v18 = vpop.f32.mrb[63].mxu1 }
 0x2d3   : > { %v4587_v13 = vcombine.high %v4585_v3, %v4585_v3  ;;  %4593 = vst.msk [vmem:[%s11871_s9 + $0x16] sm:$0x1] %vm1660_vm7, %v4585_v3  ;;  %4594 = vst.msk [vmem:[%s11871_s9 + $0x26] sm:$0x1] %vm1660_vm7, %v4586_v11  ;;  %v4975_v14 = vadd.f32 %v4971_v10, %v4896_v6  ;;  %v10031_v2 = vpop.f32.mrb[57].mxu0 }
 0x2d5   : > { %4595 = vst.msk [vmem:[%s11871_s9 + $0x36] sm:$0x1] %vm1660_vm7, %v4587_v13  ;;  %v5054_v15 = vadd.f32 %v5050_v5, %v4975_v14  ;;  %v5715_v1 = vpop.f32.mrb[64].mxu1 }
 0x2d6   : > { %v5160_v17 = vpop.f32.mrb[58].mxu0  ;;  %v10076_v26 = vpop.f32.mrb[65].mxu1 }
 0x2d7   : > { %v5055_v20 = vadd.f32 %v5054_v15, %v11861_v33  ;;  %v10041_v21 = vpop.f32.mrb[59].mxu0  ;;  %v5234_v22 = vadd.f32 %v5233_v57, %v5160_v17 }
 0x2d9   : > { %v5063_v24 = vrot.slane %v5055_v20, %v11863_v34  ;;  %v5867_v19 = vpop.f32.mrb[66].mxu1 }
 0x2da   : > { %v5307_v25 = vpop.f32.mrb[60].mxu0  ;;  %v10086_v36 = vpop.f32.mrb[67].mxu1 }
 0x2db   : > { %v5064_v27 = vcombine.high %v5063_v24, %v5063_v24  ;;  %v5071_v28 = vrot.slane %v5063_v24, %v11863_v34  ;;  %v5311_v29 = vadd.f32 %v5307_v25, %v5234_v22  ;;  %v10051_v30 = vpop.f32.mrb[61].mxu0 }
 0x2dd   : > { %v5078_v31 = vrot.slane %v5064_v27, %v11863_v34  ;;  %v5079_v62 = vcombine.high %v5071_v28, %v5071_v28  ;;  %5085 = vst.msk [vmem:[%s11871_s9 + $0x7] sm:$0x1] %vm1660_vm7, %v5071_v28  ;;  %v5386_v32 = vadd.f32 %v5382_v8, %v5311_v29  ;;  %v6025_v40 = vpop.f32.mrb[68].mxu1 }
 0x2de   : > { %v5457_v35 = vpop.f32.mrb[62].mxu0  ;;  %v10096_v42 = vpop.f32.mrb[69].mxu1 }
 0x2df   : > { %v5080_v37 = vcombine.high %v5078_v31, %v5078_v31  ;;  %5086 = vst.msk [vmem:[%s11871_s9 + $0x17] sm:$0x1] %vm1660_vm7, %v5078_v31  ;;  %5087 = vst.msk [vmem:[%s11871_s9 + $0x27] sm:$0x1] %vm1660_vm7, %v5079_v62  ;;  %v5461_v38 = vadd.f32 %v5457_v35, %v5386_v32  ;;  %v10061_v23 = vpop.f32.mrb[63].mxu0 }
 0x2e1   : > { %5088 = vst.msk [vmem:[%s11871_s9 + $0x37] sm:$0x1] %vm1660_vm7, %v5080_v37  ;;  %v5536_v39 = vadd.f32 %v5532_v16, %v5461_v38  ;;  %v6208_v46 = vpop.f32.mrb[70].mxu1 }
 0x2e2   : > { %v5642_v41 = vpop.f32.mrb[64].mxu0  ;;  %v10106_v47 = vpop.f32.mrb[71].mxu1 }
 0x2e3   : > { %v5537_v43 = vadd.f32 %v5536_v39, %v11861_v33  ;;  %v10071_v44 = vpop.f32.mrb[65].mxu0  ;;  %v5716_v7 = vadd.f32 %v5715_v1, %v5642_v41 }
 0x2e5   : > { %v5545_v45 = vrot.slane %v5537_v43, %v11863_v34  ;;  %v6357_v54 = vpop.f32.mrb[72].mxu1 }
 0x2e6   : > { %v5789_v0 = vpop.f32.mrb[66].mxu0  ;;  %v10116_v4 = vpop.f32.mrb[73].mxu1 }
 0x2e7   : > { %v5546_v48 = vcombine.high %v5545_v45, %v5545_v45  ;;  %v5553_v49 = vrot.slane %v5545_v45, %v11863_v34  ;;  %v5793_v50 = vadd.f32 %v5789_v0, %v5716_v7  ;;  %v10081_v51 = vpop.f32.mrb[67].mxu0 }
 0x2e9   : > { %v5560_v5 = vrot.slane %v5546_v48, %v11863_v34  ;;  %v5561_v52 = vcombine.high %v5553_v49, %v5553_v49  ;;  %5567 = vst.msk [vmem:[%s11871_s9 + $0x8] sm:$0x1] %vm1660_vm7, %v5553_v49  ;;  %v5871_v53 = vadd.f32 %v5867_v19, %v5793_v50  ;;  %v6507_v60 = vpop.f32.mrb[74].mxu1 }
 0x2ea   : > { %v5946_v55 = vpop.f32.mrb[68].mxu0  ;;  %v10126_v9 = vpop.f32.mrb[75].mxu1 }
 0x2eb   : > { %v5562_v56 = vcombine.high %v5560_v5, %v5560_v5  ;;  %5568 = vst.msk [vmem:[%s11871_s9 + $0x18] sm:$0x1] %vm1660_vm7, %v5560_v5  ;;  %5569 = vst.msk [vmem:[%s11871_s9 + $0x28] sm:$0x1] %vm1660_vm7, %v5561_v52  ;;  %v5950_v57 = vadd.f32 %v5946_v55, %v5871_v53  ;;  %v10091_v58 = vpop.f32.mrb[69].mxu0 }
 0x2ed   : > { %5570 = vst.msk [vmem:[%s11871_s9 + $0x38] sm:$0x1] %vm1660_vm7, %v5562_v56  ;;  %v6029_v59 = vadd.f32 %v6025_v40, %v5950_v57  ;;  %v6690_v8 = vpop.f32.mrb[76].mxu1 }
 0x2ee   : > { %v6135_v61 = vpop.f32.mrb[70].mxu0  ;;  %v10136_v12 = vpop.f32.mrb[77].mxu1 }
 0x2ef   : > { %v6030_v63 = vadd.f32 %v6029_v59, %v11861_v33  ;;  %v10101_v3 = vpop.f32.mrb[71].mxu0  ;;  %v6209_v11 = vadd.f32 %v6208_v46, %v6135_v61 }
 0x2f1   : > { %v6038_v6 = vrot.slane %v6030_v63, %v11863_v34  ;;  %v6842_v20 = vpop.f32.mrb[78].mxu1 }
 0x2f2   : > { %v6282_v10 = vpop.f32.mrb[72].mxu0  ;;  %v10146_v22 = vpop.f32.mrb[79].mxu1 }
 0x2f3   : > { %v6039_v13 = vcombine.high %v6038_v6, %v6038_v6  ;;  %v6046_v14 = vrot.slane %v6038_v6, %v11863_v34  ;;  %v6286_v2 = vadd.f32 %v6282_v10, %v6209_v11  ;;  %v10111_v15 = vpop.f32.mrb[73].mxu0 }
 0x2f5   : > { %v6053_v16 = vrot.slane %v6039_v13, %v11863_v34  ;;  %v6054_v17 = vcombine.high %v6046_v14, %v6046_v14  ;;  %6060 = vst.msk [vmem:[%s11871_s9 + $0x9] sm:$0x1] %vm1660_vm7, %v6046_v14  ;;  %v6361_v18 = vadd.f32 %v6357_v54, %v6286_v2  ;;  %v7000_v27 = vpop.f32.mrb[80].mxu1 }
 0x2f6   : > { %v6432_v21 = vpop.f32.mrb[74].mxu0  ;;  %v10156_v29 = vpop.f32.mrb[81].mxu1 }
 0x2f7   : > { %v6055_v24 = vcombine.high %v6053_v16, %v6053_v16  ;;  %6061 = vst.msk [vmem:[%s11871_s9 + $0x19] sm:$0x1] %vm1660_vm7, %v6053_v16  ;;  %6062 = vst.msk [vmem:[%s11871_s9 + $0x29] sm:$0x1] %vm1660_vm7, %v6054_v17  ;;  %v6436_v1 = vadd.f32 %v6432_v21, %v6361_v18  ;;  %v10121_v25 = vpop.f32.mrb[75].mxu0 }
 0x2f9   : > { %6063 = vst.msk [vmem:[%s11871_s9 + $0x39] sm:$0x1] %vm1660_vm7, %v6055_v24  ;;  %v6511_v26 = vadd.f32 %v6507_v60, %v6436_v1  ;;  %v7183_v19 = vpop.f32.mrb[82].mxu1 }
 0x2fa   : > { %v6617_v28 = vpop.f32.mrb[76].mxu0  ;;  %v10166_v36 = vpop.f32.mrb[83].mxu1 }
 0x2fb   : > { %v6512_v30 = vadd.f32 %v6511_v26, %v11861_v33  ;;  %v10131_v31 = vpop.f32.mrb[77].mxu0  ;;  %v6691_v62 = vadd.f32 %v6690_v8, %v6617_v28 }
 0x2fd   : > { %v6520_v32 = vrot.slane %v6512_v30, %v11863_v34  ;;  %v7332_v43 = vpop.f32.mrb[84].mxu1 }
 0x2fe   : > { %v6764_v35 = vpop.f32.mrb[78].mxu0  ;;  %v10176_v7 = vpop.f32.mrb[85].mxu1 }
 0x2ff   : > { %v6521_v37 = vcombine.high %v6520_v32, %v6520_v32  ;;  %v6528_v38 = vrot.slane %v6520_v32, %v11863_v34  ;;  %v6768_v23 = vadd.f32 %v6764_v35, %v6691_v62  ;;  %v10141_v39 = vpop.f32.mrb[79].mxu0 }
 0x301   : > { %v6535_v40 = vrot.slane %v6521_v37, %v11863_v34  ;;  %v6536_v41 = vcombine.high %v6528_v38, %v6528_v38  ;;  %6542 = vst.msk [vmem:[%s11871_s9 + $0xa] sm:$0x1] %vm1660_vm7, %v6528_v38  ;;  %v6846_v42 = vadd.f32 %v6842_v20, %v6768_v23  ;;  %v7482_v48 = vpop.f32.mrb[86].mxu1 }
 0x302   : > { %v6921_v44 = vpop.f32.mrb[80].mxu0  ;;  %v10186_v50 = vpop.f32.mrb[87].mxu1 }
 0x303   : > { %v6537_v45 = vcombine.high %v6535_v40, %v6535_v40  ;;  %6543 = vst.msk [vmem:[%s11871_s9 + $0x1a] sm:$0x1] %vm1660_vm7, %v6535_v40  ;;  %6544 = vst.msk [vmem:[%s11871_s9 + $0x2a] sm:$0x1] %vm1660_vm7, %v6536_v41  ;;  %v6925_v46 = vadd.f32 %v6921_v44, %v6846_v42  ;;  %v10151_v0 = vpop.f32.mrb[81].mxu0 }
 0x305   : > { %6545 = vst.msk [vmem:[%s11871_s9 + $0x3a] sm:$0x1] %vm1660_vm7, %v6537_v45  ;;  %v7004_v47 = vadd.f32 %v7000_v27, %v6925_v46  ;;  %v7665_v54 = vpop.f32.mrb[88].mxu1 }
 0x306   : > { %v7110_v49 = vpop.f32.mrb[82].mxu0  ;;  %v10196_v4 = vpop.f32.mrb[89].mxu1 }
 0x307   : > { %v7005_v51 = vadd.f32 %v7004_v47, %v11861_v33  ;;  %v10161_v5 = vpop.f32.mrb[83].mxu0  ;;  %v7184_v52 = vadd.f32 %v7183_v19, %v7110_v49 }
 0x309   : > { %v7013_v53 = vrot.slane %v7005_v51, %v11863_v34  ;;  %v7817_v63 = vpop.f32.mrb[90].mxu1 }
 0x30a   : > { %v7257_v55 = vpop.f32.mrb[84].mxu0  ;;  %v10206_v11 = vpop.f32.mrb[91].mxu1 }
 0x30b   : > { %v7014_v56 = vcombine.high %v7013_v53, %v7013_v53  ;;  %v7021_v57 = vrot.slane %v7013_v53, %v11863_v34  ;;  %v7261_v58 = vadd.f32 %v7257_v55, %v7184_v52  ;;  %v10171_v59 = vpop.f32.mrb[85].mxu0 }
 0x30d   : > { %v7028_v60 = vrot.slane %v7014_v56, %v11863_v34  ;;  %v7029_v61 = vcombine.high %v7021_v57, %v7021_v57  ;;  %7035 = vst.msk [vmem:[%s11871_s9 + $0xb] sm:$0x1] %vm1660_vm7, %v7021_v57  ;;  %v7336_v9 = vadd.f32 %v7332_v43, %v7261_v58  ;;  %v7975_v13 = vpop.f32.mrb[92].mxu1 }
 0x30e   : > { %v7407_v3 = vpop.f32.mrb[86].mxu0  ;;  %v10216_v2 = vpop.f32.mrb[93].mxu1 }
 0x30f   : > { %v7030_v6 = vcombine.high %v7028_v60, %v7028_v60  ;;  %7036 = vst.msk [vmem:[%s11871_s9 + $0x1b] sm:$0x1] %vm1660_vm7, %v7028_v60  ;;  %7037 = vst.msk [vmem:[%s11871_s9 + $0x2b] sm:$0x1] %vm1660_vm7, %v7029_v61  ;;  %v7411_v8 = vadd.f32 %v7407_v3, %v7336_v9  ;;  %v10181_v10 = vpop.f32.mrb[87].mxu0 }
 0x311   : > { %7038 = vst.msk [vmem:[%s11871_s9 + $0x3b] sm:$0x1] %vm1660_vm7, %v7030_v6  ;;  %v7486_v12 = vadd.f32 %v7482_v48, %v7411_v8  ;;  %v8158_v20 = vpop.f32.mrb[94].mxu1 }
 0x312   : > { %v7592_v14 = vpop.f32.mrb[88].mxu0  ;;  %v10226_v22 = vpop.f32.mrb[95].mxu1 }
 0x313   : > { %v7487_v15 = vadd.f32 %v7486_v12, %v11861_v33  ;;  %v10191_v16 = vpop.f32.mrb[89].mxu0  ;;  %v7666_v17 = vadd.f32 %v7665_v54, %v7592_v14 }
 0x315   : > { %v7495_v18 = vrot.slane %v7487_v15, %v11863_v34  ;;  %v8307_v30 = vpop.f32.mrb[96].mxu1 }
 0x316   : > { %v7739_v21 = vpop.f32.mrb[90].mxu0  ;;  %v10236_v62 = vpop.f32.mrb[97].mxu1 }
 0x317   : > { %v7496_v24 = vcombine.high %v7495_v18, %v7495_v18  ;;  %v7503_v1 = vrot.slane %v7495_v18, %v11863_v34  ;;  %v7743_v25 = vadd.f32 %v7739_v21, %v7666_v17  ;;  %v10201_v26 = vpop.f32.mrb[91].mxu0 }
 0x319   : > { %v7510_v27 = vrot.slane %v7496_v24, %v11863_v34  ;;  %v7511_v28 = vcombine.high %v7503_v1, %v7503_v1  ;;  %7517 = vst.msk [vmem:[%s11871_s9 + $0xc] sm:$0x1] %vm1660_vm7, %v7503_v1  ;;  %v7821_v29 = vadd.f32 %v7817_v63, %v7743_v25  ;;  %v8457_v37 = vpop.f32.mrb[98].mxu1 }
 0x31a   : > { %v7896_v31 = vpop.f32.mrb[92].mxu0  ;;  %v10246_v23 = vpop.f32.mrb[99].mxu1 }
 0x31b   : > { %v7512_v32 = vcombine.high %v7510_v27, %v7510_v27  ;;  %7518 = vst.msk [vmem:[%s11871_s9 + $0x1c] sm:$0x1] %vm1660_vm7, %v7510_v27  ;;  %7519 = vst.msk [vmem:[%s11871_s9 + $0x2c] sm:$0x1] %vm1660_vm7, %v7511_v28  ;;  %v7900_v19 = vadd.f32 %v7896_v31, %v7821_v29  ;;  %v10211_v35 = vpop.f32.mrb[93].mxu0 }
 0x31d   : > { %7520 = vst.msk [vmem:[%s11871_s9 + $0x3c] sm:$0x1] %vm1660_vm7, %v7512_v32  ;;  %v7979_v36 = vadd.f32 %v7975_v13, %v7900_v19  ;;  %v8640_v43 = vpop.f32.mrb[100].mxu1 }
 0x31e   : > { %v8085_v38 = vpop.f32.mrb[94].mxu0  ;;  %v10256_v7 = vpop.f32.mrb[101].mxu1 }
 0x31f   : > { %v7980_v39 = vadd.f32 %v7979_v36, %v11861_v33  ;;  %v10221_v40 = vpop.f32.mrb[95].mxu0  ;;  %v8159_v41 = vadd.f32 %v8158_v20, %v8085_v38 }
 0x321   : > { %v7988_v42 = vrot.slane %v7980_v39, %v11863_v34  ;;  %v8792_v51 = vpop.f32.mrb[102].mxu1 }
 0x322   : > { %v8232_v44 = vpop.f32.mrb[96].mxu0  ;;  %v10266_v52 = vpop.f32.mrb[103].mxu1 }
 0x323   : > { %v7989_v45 = vcombine.high %v7988_v42, %v7988_v42  ;;  %v7996_v46 = vrot.slane %v7988_v42, %v11863_v34  ;;  %v8236_v0 = vadd.f32 %v8232_v44, %v8159_v41  ;;  %v10231_v47 = vpop.f32.mrb[97].mxu0 }
 0x325   : > { %v8003_v48 = vrot.slane %v7989_v45, %v11863_v34  ;;  %v8004_v49 = vcombine.high %v7996_v46, %v7996_v46  ;;  %8010 = vst.msk [vmem:[%s11871_s9 + $0xd] sm:$0x1] %vm1660_vm7, %v7996_v46  ;;  %v8311_v50 = vadd.f32 %v8307_v30, %v8236_v0  ;;  %v8950_v56 = vpop.f32.mrb[104].mxu1 }
 0x326   : > { %v8382_v5 = vpop.f32.mrb[98].mxu0  ;;  %v10276_v58 = vpop.f32.mrb[105].mxu1 }
 0x327   : > { %v8005_v53 = vcombine.high %v8003_v48, %v8003_v48  ;;  %8011 = vst.msk [vmem:[%s11871_s9 + $0x1d] sm:$0x1] %vm1660_vm7, %v8003_v48  ;;  %8012 = vst.msk [vmem:[%s11871_s9 + $0x2d] sm:$0x1] %vm1660_vm7, %v8004_v49  ;;  %v8386_v54 = vadd.f32 %v8382_v5, %v8311_v50  ;;  %v10241_v55 = vpop.f32.mrb[99].mxu0 }
 0x329   : > { %8013 = vst.msk [vmem:[%s11871_s9 + $0x3d] sm:$0x1] %vm1660_vm7, %v8005_v53  ;;  %v8461_v4 = vadd.f32 %v8457_v37, %v8386_v54 }
 0x32a   : > { %v8567_v57 = vpop.f32.mrb[100].mxu0 }
 0x32b   : > { %v8462_v59 = vadd.f32 %v8461_v4, %v11861_v33  ;;  %v10251_v60 = vpop.f32.mrb[101].mxu0  ;;  %v8641_v61 = vadd.f32 %v8640_v43, %v8567_v57 }
 0x32d   : > { %v8470_v9 = vrot.slane %v8462_v59, %v11863_v34 }
 0x32e   : > { %v8714_v63 = vpop.f32.mrb[102].mxu0 }
 0x32f   : > { %v8471_v3 = vcombine.high %v8470_v9, %v8470_v9  ;;  %v8478_v11 = vrot.slane %v8470_v9, %v11863_v34  ;;  %v8718_v6 = vadd.f32 %v8714_v63, %v8641_v61  ;;  %v10261_v8 = vpop.f32.mrb[103].mxu0 }
 0x331   : > { %v8485_v10 = vrot.slane %v8471_v3, %v11863_v34  ;;  %v8486_v12 = vcombine.high %v8478_v11, %v8478_v11  ;;  %8492 = vst.msk [vmem:[%s11871_s9 + $0xe] sm:$0x1] %vm1660_vm7, %v8478_v11  ;;  %v8796_v13 = vadd.f32 %v8792_v51, %v8718_v6 }
 0x332   : > { %v8871_v14 = vpop.f32.mrb[104].mxu0 }
 0x333   : > { %v8487_v2 = vcombine.high %v8485_v10, %v8485_v10  ;;  %8493 = vst.msk [vmem:[%s11871_s9 + $0x1e] sm:$0x1] %vm1660_vm7, %v8485_v10  ;;  %8494 = vst.msk [vmem:[%s11871_s9 + $0x2e] sm:$0x1] %vm1660_vm7, %v8486_v12  ;;  %v8875_v15 = vadd.f32 %v8871_v14, %v8796_v13  ;;  %v10271_v16 = vpop.f32.mrb[105].mxu0 }
 0x335   : > { %8495 = vst.msk [vmem:[%s11871_s9 + $0x3e] sm:$0x1] %vm1660_vm7, %v8487_v2  ;;  %v8954_v17 = vadd.f32 %v8950_v56, %v8875_v15 }
 0x337   : > { %v8955_v18 = vadd.f32 %v8954_v17, %v11861_v33 }
 0x339   : > { %v8963_v20 = vrot.slane %v8955_v18, %v11863_v34 }
 0x33b   : > { %v8964_v21 = vcombine.high %v8963_v20, %v8963_v20  ;;  %v8971_v22 = vrot.slane %v8963_v20, %v11863_v34 }
 0x33d   : > { %v8978_v24 = vrot.slane %v8964_v21, %v11863_v34  ;;  %v8979_v1 = vcombine.high %v8971_v22, %v8971_v22  ;;  %8985 = vst.msk [vmem:[%s11871_s9 + $0xf] sm:$0x1] %vm1660_vm7, %v8971_v22 }
 0x33f   : > { %v8980_v25 = vcombine.high %v8978_v24, %v8978_v24  ;;  %8986 = vst.msk [vmem:[%s11871_s9 + $0x1f] sm:$0x1] %vm1660_vm7, %v8978_v24  ;;  %8987 = vst.msk [vmem:[%s11871_s9 + $0x2f] sm:$0x1] %vm1660_vm7, %v8979_v1 }
 0x341   : > { %8988 = vst.msk [vmem:[%s11871_s9 + $0x3f] sm:$0x1] %vm1660_vm7, %v8980_v25 }
 0x342   : > { %s9495_s5 = sshll.u32 %s10540_s21, 1  ;;  %s9496_s30 = sshll.u32 %s10544_s22, 4 }
 0x343   : > { %s9002_s18 = sadd.s32 %s9496_s30, %s9495_s5  ;;  %s9021_s26 = sshll.u32 %s11871_s9, 4  ;;  %s9022_s26 = int_to_ptr.vmem [resolvable:$true] %s9021_s26 }
 0x344   : > { %s9497_s27 = sshll.u32 %s9002_s18, 7  ;;  %s10568_s7 = smov 256  }
 0x345   : > { %s9004_s10 = scalar_lea.hbm %s12124_s4, %s9497_s27  ;;  %p12140_p13 = scmp.ne.s32.totalorder %s12133_s11, 0 }
 0x346   : > { %s10569_s28 = smov 512   ;;  %s10570_s0 = smov 2  }
 0x347   : > { %10309 = sst [smem:[#allocation7]] (%p12140_p13), %s10568_s7  ;;  %s10571_s21 = smov 128  }
 0x348   : > { %10310 = sst [smem:[#allocation7 + $0x1]] (%p12140_p13), %s10569_s28  ;;  %s10572_s22 = smov 8  }
 0x349   : > { %10311 = sst [smem:[#allocation7 + $0x2]] (%p12140_p13), %s10570_s0  ;;  %s10573_s9 = smov [#allocation6]  }
 0x34a   : > { %10312 = sst [smem:[#allocation7 + $0x3]] (%p12140_p13), %s10571_s21  ;;  %s10574_s5 = smov 0  }
 0x34b   : > { %10313 = sst [smem:[#allocation7 + $0x4]] (%p12140_p13), %s10571_s21 }
 0x34c   : > { %10314 = sst [smem:[#allocation7 + $0x5]] (%p12140_p13), %s10572_s22 }
 0x34d   : > { %10315 = dma.general (%p12140_p13), %s9022_s26, 1024, %s9004_s10, %s8990_s6, %s10573_s9, [#allocation7], %s10574_s5, 0  }
 0x34e PF: > { %p10326_p5 = scmp.ge.s32.totalorder %s10556_s25, 2  ;;  %s9049_s30 = sand.u32 1, %s10516_s15  }
 0x34f   : > { %p12141_p8 = scmp.ne.s32.totalorder %s12134_s14, 0  ;;  %s9050_s0 = scalar_lea.sflag [#allocation4], %s9049_s30 }
 0x351   : > { %p10322_p10 = pnand %p10326_p5, %p12141_p8 }
 0x353   : > { %10511 = dma.done.wait (!%p10322_p10), %s9050_s0, 1024  }
 0x354   : > { %10513 = vsyncadd (!%p10322_p10), %s9050_s0, 4294966272  ;;  %s20_s25 = sadd.s32 1, %s10556_s25   ;;  %s12142_s11 = sld [smem:[#allocation10_spill]] }
 0x355   : > { %p17_p7 = scmp.ge.s32.totalorder %s20_s25, 6   ;;  %s12143_s6 = sld [smem:[#allocation11_spill]] }
 0x356   : > { %s12144_s15 = smov %s10520_s16  ;;  %s12145_s16 = smov %s10524_s17 }
 0x357   : > { %s12146_s17 = smov %s10690_s13  ;;  %s12147_s18 = smov %s10532_s19 }
 0x358   : > { %s12148_s19 = smov %s10536_s20  ;;  %s12149_s20 = smov %s10687_s12 }
 0x359   : > { %s12150_s21 = smov %s10548_s23  ;;  %s12151_s22 = smov %s10552_s24 }
 0x35a   : > { %s12152_s23 = smov %s12142_s11  ;;  %19 = sbr.rel (!%p17_p7) target bundleno = 11 (0xb), region = 107 }
 0x35b   : > { %s12153_s24 = smov %s12143_s6 }
 0x361   :  { %9055 = vsyncpa [#allocation3], 1 }
 0x362   :  { %9057 = vsyncpa [#allocation3 + $0x1], 1 }
 0x363   :  { %9058 = vsyncpa [#allocation4], 1 }
 0x364   :  { %9060 = vsyncpa [#allocation4 + $0x1], 1 }

</bundles_post_ra>
